<compile_context>
chip_gen: v7x
topology: tpu7x:2x2x1
jax: 0.10.0
libtpu: 0.0.40
codegen_flags: <defaults>
</compile_context>

<pallas_src>
import numpy as np
import jax
import jax.numpy as jnp
from jax import lax
from jax.experimental import pallas as pl
from jax.experimental.pallas import tpu as pltpu


OUT_LANES = 128  # lane-dense output slab (avoids masked vst.msk partial stores)


def _conv_out(n, k, s):
    return (n - k) // s + 1


def _pick_tb(n):
    """Batch rows per grid step: multiple of 8, at most 32."""
    npad8 = ((n + 7) // 8) * 8
    return min(32, npad8)


# ------------------------------ Fused kernel ------------------------------- #

def _fused_value_net_kernel(x_ref, w1_ref, b1_ref, w2_ref, b2_ref,
                            w3_ref, b3_ref, fw1_ref, fb1_ref,
                            fw2_ref, fb2_ref, o_ref):
    # x_ref: (2, 2, PP, QQ, TB, 16*C) where
    #   x_ref[ry, rx, P, Q, b, (di,dj,c)] = x[b, c, 8P + 4ry + di, 8Q + 4rx + dj]
    # i.e. space-to-depth(4) of the input with conv1-output parity (ry, rx)
    # pulled out so all slices below are contiguous.
    _, _, PP, QQ, tb, k1 = x_ref.shape
    oh1h, ow1h = PP - 1, QQ - 1            # conv1 output size per parity plane
    oh2, ow2 = oh1h - 1, ow1h - 1          # conv2 output (k4, s2)
    oh3, ow3 = fw1_ref.shape[0], fw1_ref.shape[1]   # conv3 output (k3, s1)
    c1o = w1_ref.shape[-1]                 # 32
    c2o = w2_ref.shape[-1]                 # 64
    c3o = w3_ref.shape[-1]                 # 64

    # ---- conv1 + ReLU: k8/s4 conv == k2/s1 conv in s2d(4) space, computed per
    #      output-parity plane (dy, dx). 16 MXU matmuls, K = 16*C. ----
    y1 = {}
    for dy in range(2):
        for dx in range(2):
            acc = None
            for i in range(2):
                for j in range(2):
                    e, f = dy + i, dx + j
                    patch = x_ref[e % 2, f % 2,
                                  e // 2:e // 2 + oh1h,
                                  f // 2:f // 2 + ow1h, :, :]
                    patch = patch.reshape(oh1h * ow1h * tb, k1)
                    term = jnp.dot(patch, w1_ref[i, j],
                                   preferred_element_type=jnp.float32)
                    acc = term if acc is None else acc + term
            acc = jnp.maximum(acc + b1_ref[...], 0.0)
            y1[(dy, dx)] = acc.reshape(oh1h, ow1h, tb, c1o)

    # ---- conv2 + ReLU: k4/s2 conv consumed directly from the parity planes;
    #      kernel offset i2 = 2*qi + dy, j2 = 2*qj + dx (16 matmuls, K=32). ----
    acc2 = None
    for dy in range(2):
        for dx in range(2):
            plane = y1[(dy, dx)]
            for qi in range(2):
                for qj in range(2):
                    patch = plane[qi:qi + oh2, qj:qj + ow2, :, :]
                    patch = patch.reshape(oh2 * ow2 * tb, c1o)
                    term = jnp.dot(patch, w2_ref[2 * qi + dy, 2 * qj + dx],
                                   preferred_element_type=jnp.float32)
                    acc2 = term if acc2 is None else acc2 + term
    y2 = jnp.maximum(acc2 + b2_ref[...], 0.0).reshape(oh2, ow2, tb, c2o)

    # ---- conv3 + ReLU: k3/s1 conv, 9 matmuls (K=64). ----
    acc3 = None
    for i in range(3):
        for j in range(3):
            patch = y2[i:i + oh3, j:j + ow3, :, :].reshape(oh3 * ow3 * tb, c2o)
            term = jnp.dot(patch, w3_ref[i, j],
                           preferred_element_type=jnp.float32)
            acc3 = term if acc3 is None else acc3 + term
    y3 = jnp.maximum(acc3 + b3_ref[...], 0.0).reshape(oh3, ow3, tb, c3o)

    # ---- fc1 + ReLU (PyTorch NCHW flatten folded into fw1's layout), fc2. ----
    h = None
    for y in range(oh3):
        for xc in range(ow3):
            term = jnp.dot(y3[y, xc], fw1_ref[y, xc],
                           preferred_element_type=jnp.float32)
            h = term if h is None else h + term
    h = jnp.maximum(h + fb1_ref[...], 0.0)
    v = jnp.dot(h, fw2_ref[...], preferred_element_type=jnp.float32) + fb2_ref[...]
    # Lane-dense (TB, 128) store: one unmasked vst instead of a masked (TB, 1)
    # partial store.  The wrapper slices column 0.
    o_ref[...] = jnp.broadcast_to(v, (tb, OUT_LANES))


# -------------------------------- Forward ---------------------------------- #

def value_net_forward(params, x_nchw, tb=None):
    """x_nchw: (N, C, H, W) float32 -> (N,) value estimates."""
    N, C, H, W = x_nchw.shape
    oh1, ow1 = _conv_out(H, 8, 4), _conv_out(W, 8, 4)
    assert oh1 % 2 == 0 and ow1 % 2 == 0, (
        "this fused kernel requires an even conv1 output size "
        "(true for 36x36 and the canonical 84x84 Atari frames)")
    oh1h, ow1h = oh1 // 2, ow1 // 2
    oh2, ow2 = _conv_out(oh1, 4, 2), _conv_out(ow1, 4, 2)
    oh3, ow3 = _conv_out(oh2, 3, 1), _conv_out(ow2, 3, 1)
    assert oh3 >= 1 and ow3 >= 1
    PP, QQ = oh1h + 1, ow1h + 1
    Hp, Wp = 8 * PP, 8 * QQ                 # padded region is never read
    if tb is None:
        tb = _pick_tb(N)
    Npad = ((N + tb - 1) // tb) * tb        # keep M a multiple of the tile

    # Layout-only glue (no im2col expansion, same byte count as the input):
    # pad, space-to-depth(4), split by conv1-output parity, channels last.
    xp = jnp.pad(x_nchw, ((0, Npad - N), (0, 0), (0, Hp - H), (0, Wp - W)))
    x8 = xp.reshape(Npad, C, PP, 2, 4, QQ, 2, 4)
    # (b, c, P, ry, di, Q, rx, dj) -> (ry, rx, P, Q, b, di, dj, c)
    xpp = jnp.transpose(x8, (3, 6, 2, 5, 0, 4, 7, 1)).reshape(
        2, 2, PP, QQ, Npad, 16 * C)

    w_args = (params["conv1_w"], params["conv1_b"],
              params["conv2_w"], params["conv2_b"],
              params["conv3_w"], params["conv3_b"],
              params["fc1_w"], params["fc1_b"],
              params["fc2_w"], params["fc2_b"])

    def _const_spec(a):
        zeros = (0,) * a.ndim
        return pl.BlockSpec(a.shape, lambda i, _z=zeros: _z)

    in_specs = [pl.BlockSpec((2, 2, PP, QQ, tb, 16 * C),
                             lambda i: (0, 0, 0, 0, i, 0))]
    in_specs += [_const_spec(a) for a in w_args]

    out = pl.pallas_call(
        _fused_value_net_kernel,
        grid=(Npad // tb,),
        out_shape=jax.ShapeDtypeStruct((Npad, OUT_LANES), jnp.float32),
        in_specs=in_specs,
        out_specs=pl.BlockSpec((tb, OUT_LANES), lambda i: (i, 0)),
        compiler_params=pltpu.CompilerParams(
            dimension_semantics=("parallel",),        # shard batch across TCs
            vmem_limit_bytes=32 * 1024 * 1024),        # safe on v5e/v6e/v7x
    )(xpp, *w_args)
    return out[:N, 0]                                  # .squeeze(-1)


# ------------------------------- Parameters -------------------------------- #

def _orthogonal(key, shape, gain=1.0):
    """Orthogonal init (same semantics as nn.init.orthogonal_, not bit-identical)."""
    rows = shape[0]
    cols = int(np.prod(shape[1:]))
    n = max(rows, cols)
    a = jax.random.normal(key, (n, n), jnp.float32)
    q, r = jnp.linalg.qr(a)
    q = q * jnp.sign(jnp.diag(r))
    return (gain * q[:rows, :cols]).reshape(shape).astype(jnp.float32)


def init_torch_layout_params(img_size, key):
    """Weights in PyTorch layout: Conv (O, I, KH, KW), Linear (out, in)."""
    c, h, w = img_size
    oh1, ow1 = _conv_out(h, 8, 4), _conv_out(w, 8, 4)
    oh2, ow2 = _conv_out(oh1, 4, 2), _conv_out(ow1, 4, 2)
    oh3, ow3 = _conv_out(oh2, 3, 1), _conv_out(ow2, 3, 1)
    feat = 64 * oh3 * ow3
    ks = jax.random.split(key, 5)
    return {
        "conv1_w": _orthogonal(ks[0], (32, c, 8, 8)),
        "conv1_b": jnp.zeros((32,), jnp.float32),
        "conv2_w": _orthogonal(ks[1], (64, 32, 4, 4)),
        "conv2_b": jnp.zeros((64,), jnp.float32),
        "conv3_w": _orthogonal(ks[2], (64, 64, 3, 3)),
        "conv3_b": jnp.zeros((64,), jnp.float32),
        "fc1_w": _orthogonal(ks[3], (512, feat)),
        "fc1_b": jnp.zeros((512,), jnp.float32),
        "fc2_w": _orthogonal(ks[4], (1, 512)),
        "fc2_b": jnp.zeros((1,), jnp.float32),
    }


def convert_params_for_kernel(tp, img_size):
    """Pre-transpose / reshape all weights ONCE into the kernel's layouts."""
    c, h, w = img_size
    oh1, ow1 = _conv_out(h, 8, 4), _conv_out(w, 8, 4)
    oh2, ow2 = _conv_out(oh1, 4, 2), _conv_out(ow1, 4, 2)
    oh3, ow3 = _conv_out(oh2, 3, 1), _conv_out(ow2, 3, 1)

    # conv1: (O, C, 8, 8) -> (2, 2, 16*C, O); row index (di*4 + dj)*C + c matches
    # the space-to-depth(4) channel order of the kernel input.
    w1 = jnp.transpose(tp["conv1_w"], (2, 3, 1, 0))      # (kh, kw, c, o)
    w1 = w1.reshape(2, 4, 2, 4, c, 32)                   # (i, di, j, dj, c, o)
    w1 = jnp.transpose(w1, (0, 2, 1, 3, 4, 5)).reshape(2, 2, 16 * c, 32)

    w2 = jnp.transpose(tp["conv2_w"], (2, 3, 1, 0))      # (4, 4, 32, 64)
    w3 = jnp.transpose(tp["conv3_w"], (2, 3, 1, 0))      # (3, 3, 64, 64)

    # fc1: fold PyTorch's NCHW .view(N, -1) flatten into the weight layout.
    fw1 = tp["fc1_w"].reshape(512, 64, oh3, ow3)         # (o, c, y, x)
    fw1 = jnp.transpose(fw1, (2, 3, 1, 0))               # (y, x, c, o)
    fw2 = jnp.transpose(tp["fc2_w"], (1, 0))             # (512, 1)

    # TODO(synk): optionally store weights in bf16 (f32 accumulation) on v6e/v7x.
    return {
        "conv1_w": w1, "conv1_b": tp["conv1_b"].reshape(1, 32),
        "conv2_w": w2, "conv2_b": tp["conv2_b"].reshape(1, 64),
        "conv3_w": w3, "conv3_b": tp["conv3_b"].reshape(1, 64),
        "fc1_w": fw1, "fc1_b": tp["fc1_b"].reshape(1, 512),
        "fc2_w": fw2, "fc2_b": tp["fc2_b"].reshape(1, 1),
    }


# ------------------------- Pure-JAX reference check ------------------------ #

def value_net_forward_ref(tp, x):
    dn = ("NCHW", "OIHW", "NCHW")
    y = lax.conv_general_dilated(x, tp["conv1_w"], (4, 4), "VALID",
                                 dimension_numbers=dn)
    y = jax.nn.relu(y + tp["conv1_b"][None, :, None, None])
    y = lax.conv_general_dilated(y, tp["conv2_w"], (2, 2), "VALID",
                                 dimension_numbers=dn)
    y = jax.nn.relu(y + tp["conv2_b"][None, :, None, None])
    y = lax.conv_general_dilated(y, tp["conv3_w"], (1, 1), "VALID",
                                 dimension_numbers=dn)
    y = jax.nn.relu(y + tp["conv3_b"][None, :, None, None])
    f = y.reshape(y.shape[0], -1)
    h = jax.nn.relu(f @ tp["fc1_w"].T + tp["fc1_b"])
    return (h @ tp["fc2_w"].T + tp["fc2_b"])[:, 0]


# ---------------------------------- Main ------------------------------------ #

if __name__ == "__main__":
    # 4-channel 36x36 frames: the conv stack (k8s4 -> k4s2 -> k3s1) produces
    # 8x8 -> 3x3 -> 1x1 spatial maps, so feat = 64.  (36 is the smallest valid
    # spatial size for this conv stack.)
    img_size = (4, 36, 36)
    batch = 2

    key = jax.random.PRNGKey(0)
    k_params, k_x = jax.random.split(key)
    torch_params = init_torch_layout_params(img_size, k_params)
    params = convert_params_for_kernel(torch_params, img_size)
    x = jax.random.normal(k_x, (batch,) + img_size, dtype=jnp.float32)

    fwd = jax.jit(value_net_forward)
    values = fwd(params, x)
    jax.block_until_ready(values)
    assert values.shape == (batch,), values.shape
    assert values.dtype == jnp.float32

    ref = value_net_forward_ref(torch_params, x)
    assert np.allclose(np.asarray(values), np.asarray(ref),
                       rtol=1e-2, atol=1e-2), (np.asarray(values),
                                               np.asarray(ref))
    print("KERNEL_OK")
</pallas_src>

<mosaic_0001>
module attributes {stable_mosaic.version = 11 : i64} {
  func.func @_fused_value_net_kernel(%arg0: i32, %arg1: memref<2x2x5x5x8x64xf32, #tpu.memory_space<vmem>>, %arg2: memref<2x2x64x32xf32, #tpu.memory_space<vmem>>, %arg3: memref<1x32xf32, #tpu.memory_space<vmem>>, %arg4: memref<4x4x32x64xf32, #tpu.memory_space<vmem>>, %arg5: memref<1x64xf32, #tpu.memory_space<vmem>>, %arg6: memref<3x3x64x64xf32, #tpu.memory_space<vmem>>, %arg7: memref<1x64xf32, #tpu.memory_space<vmem>>, %arg8: memref<1x1x64x512xf32, #tpu.memory_space<vmem>>, %arg9: memref<1x512xf32, #tpu.memory_space<vmem>>, %arg10: memref<512x1xf32, #tpu.memory_space<vmem>>, %arg11: memref<1x1xf32, #tpu.memory_space<vmem>>, %arg12: memref<8x128xf32, #tpu.memory_space<vmem>>) attributes {dimension_semantics = [#tpu.dimension_semantics<parallel>], iteration_bounds = array<i64: 1>, scalar_prefetch = 0 : i64, scratch_operands = 0 : i64, tpu.core_type = #tpu.core_type<tc>, window_params = [{transform_indices = @transform_0, window_bounds = array<i64: 2, 2, 5, 5, 8, 64>}, {pipeline_mode = #tpu.pipeline_mode<synchronous>, transform_indices = @transform_1, window_bounds = array<i64: 2, 2, 64, 32>}, {pipeline_mode = #tpu.pipeline_mode<synchronous>, transform_indices = @transform_2, window_bounds = array<i64: 1, 32>}, {pipeline_mode = #tpu.pipeline_mode<synchronous>, transform_indices = @transform_3, window_bounds = array<i64: 4, 4, 32, 64>}, {pipeline_mode = #tpu.pipeline_mode<synchronous>, transform_indices = @transform_4, window_bounds = array<i64: 1, 64>}, {pipeline_mode = #tpu.pipeline_mode<synchronous>, transform_indices = @transform_5, window_bounds = array<i64: 3, 3, 64, 64>}, {pipeline_mode = #tpu.pipeline_mode<synchronous>, transform_indices = @transform_6, window_bounds = array<i64: 1, 64>}, {pipeline_mode = #tpu.pipeline_mode<synchronous>, transform_indices = @transform_7, window_bounds = array<i64: 1, 1, 64, 512>}, {pipeline_mode = #tpu.pipeline_mode<synchronous>, transform_indices = @transform_8, window_bounds = array<i64: 1, 512>}, {pipeline_mode = #tpu.pipeline_mode<synchronous>, transform_indices = @transform_9, window_bounds = array<i64: 512, 1>}, {pipeline_mode = #tpu.pipeline_mode<synchronous>, transform_indices = @transform_10, window_bounds = array<i64: 1, 1>}, {transform_indices = @transform_11, window_bounds = array<i64: 8, 128>}]} {
    %c0 = arith.constant 0 : index
    %c0_0 = arith.constant 0 : index
    %c0_1 = arith.constant 0 : index
    %c0_2 = arith.constant 0 : index
    %c0_3 = arith.constant 0 : index
    %c0_4 = arith.constant 0 : index
    %0 = vector.load %arg1[%c0, %c0_0, %c0_1, %c0_2, %c0_3, %c0_4] : memref<2x2x5x5x8x64xf32, #tpu.memory_space<vmem>>, vector<1x1x4x4x8x64xf32>
    %1 = vector.shape_cast %0 : vector<1x1x4x4x8x64xf32> to vector<4x4x8x64xf32>
    %2 = vector.shape_cast %1 : vector<4x4x8x64xf32> to vector<128x64xf32>
    %c0_5 = arith.constant 0 : index
    %c0_6 = arith.constant 0 : index
    %c0_7 = arith.constant 0 : index
    %c0_8 = arith.constant 0 : index
    %3 = vector.load %arg2[%c0_5, %c0_6, %c0_7, %c0_8] : memref<2x2x64x32xf32, #tpu.memory_space<vmem>>, vector<1x1x64x32xf32>
    %4 = vector.shape_cast %3 : vector<1x1x64x32xf32> to vector<64x32xf32>
    %cst = arith.constant dense<0.000000e+00> : vector<128x32xf32>
    %5 = tpu.matmul %2, %4, %cst {dimension_numbers = #tpu.dot_dimension_numbers<[1], [0], [0], [1], [0, 0, 1, 1], [], []>} : vector<128x64xf32>, vector<64x32xf32>, vector<128x32xf32> -> vector<128x32xf32>
    %c0_9 = arith.constant 0 : index
    %c1 = arith.constant 1 : index
    %c0_10 = arith.constant 0 : index
    %c0_11 = arith.constant 0 : index
    %c0_12 = arith.constant 0 : index
    %c0_13 = arith.constant 0 : index
    %6 = vector.load %arg1[%c0_9, %c1, %c0_10, %c0_11, %c0_12, %c0_13] : memref<2x2x5x5x8x64xf32, #tpu.memory_space<vmem>>, vector<1x1x4x4x8x64xf32>
    %7 = vector.shape_cast %6 : vector<1x1x4x4x8x64xf32> to vector<4x4x8x64xf32>
    %8 = vector.shape_cast %7 : vector<4x4x8x64xf32> to vector<128x64xf32>
    %c0_14 = arith.constant 0 : index
    %c1_15 = arith.constant 1 : index
    %c0_16 = arith.constant 0 : index
    %c0_17 = arith.constant 0 : index
    %9 = vector.load %arg2[%c0_14, %c1_15, %c0_16, %c0_17] : memref<2x2x64x32xf32, #tpu.memory_space<vmem>>, vector<1x1x64x32xf32>
    %10 = vector.shape_cast %9 : vector<1x1x64x32xf32> to vector<64x32xf32>
    %cst_18 = arith.constant dense<0.000000e+00> : vector<128x32xf32>
    %11 = tpu.matmul %8, %10, %cst_18 {dimension_numbers = #tpu.dot_dimension_numbers<[1], [0], [0], [1], [0, 0, 1, 1], [], []>} : vector<128x64xf32>, vector<64x32xf32>, vector<128x32xf32> -> vector<128x32xf32>
    %12 = arith.addf %5, %11 : vector<128x32xf32>
    %c1_19 = arith.constant 1 : index
    %c0_20 = arith.constant 0 : index
    %c0_21 = arith.constant 0 : index
    %c0_22 = arith.constant 0 : index
    %c0_23 = arith.constant 0 : index
    %c0_24 = arith.constant 0 : index
    %13 = vector.load %arg1[%c1_19, %c0_20, %c0_21, %c0_22, %c0_23, %c0_24] : memref<2x2x5x5x8x64xf32, #tpu.memory_space<vmem>>, vector<1x1x4x4x8x64xf32>
    %14 = vector.shape_cast %13 : vector<1x1x4x4x8x64xf32> to vector<4x4x8x64xf32>
    %15 = vector.shape_cast %14 : vector<4x4x8x64xf32> to vector<128x64xf32>
    %c1_25 = arith.constant 1 : index
    %c0_26 = arith.constant 0 : index
    %c0_27 = arith.constant 0 : index
    %c0_28 = arith.constant 0 : index
    %16 = vector.load %arg2[%c1_25, %c0_26, %c0_27, %c0_28] : memref<2x2x64x32xf32, #tpu.memory_space<vmem>>, vector<1x1x64x32xf32>
    %17 = vector.shape_cast %16 : vector<1x1x64x32xf32> to vector<64x32xf32>
    %cst_29 = arith.constant dense<0.000000e+00> : vector<128x32xf32>
    %18 = tpu.matmul %15, %17, %cst_29 {dimension_numbers = #tpu.dot_dimension_numbers<[1], [0], [0], [1], [0, 0, 1, 1], [], []>} : vector<128x64xf32>, vector<64x32xf32>, vector<128x32xf32> -> vector<128x32xf32>
    %19 = arith.addf %12, %18 : vector<128x32xf32>
    %c1_30 = arith.constant 1 : index
    %c1_31 = arith.constant 1 : index
    %c0_32 = arith.constant 0 : index
    %c0_33 = arith.constant 0 : index
    %c0_34 = arith.constant 0 : index
    %c0_35 = arith.constant 0 : index
    %20 = vector.load %arg1[%c1_30, %c1_31, %c0_32, %c0_33, %c0_34, %c0_35] : memref<2x2x5x5x8x64xf32, #tpu.memory_space<vmem>>, vector<1x1x4x4x8x64xf32>
    %21 = vector.shape_cast %20 : vector<1x1x4x4x8x64xf32> to vector<4x4x8x64xf32>
    %22 = vector.shape_cast %21 : vector<4x4x8x64xf32> to vector<128x64xf32>
    %c1_36 = arith.constant 1 : index
    %c1_37 = arith.constant 1 : index
    %c0_38 = arith.constant 0 : index
    %c0_39 = arith.constant 0 : index
    %23 = vector.load %arg2[%c1_36, %c1_37, %c0_38, %c0_39] : memref<2x2x64x32xf32, #tpu.memory_space<vmem>>, vector<1x1x64x32xf32>
    %24 = vector.shape_cast %23 : vector<1x1x64x32xf32> to vector<64x32xf32>
    %cst_40 = arith.constant dense<0.000000e+00> : vector<128x32xf32>
    %25 = tpu.matmul %22, %24, %cst_40 {dimension_numbers = #tpu.dot_dimension_numbers<[1], [0], [0], [1], [0, 0, 1, 1], [], []>} : vector<128x64xf32>, vector<64x32xf32>, vector<128x32xf32> -> vector<128x32xf32>
    %26 = arith.addf %19, %25 : vector<128x32xf32>
    %c0_41 = arith.constant 0 : index
    %c0_42 = arith.constant 0 : index
    %27 = vector.load %arg3[%c0_41, %c0_42] : memref<1x32xf32, #tpu.memory_space<vmem>>, vector<1x32xf32>
    %28 = vector.broadcast %27 : vector<1x32xf32> to vector<128x32xf32>
    %29 = arith.addf %26, %28 : vector<128x32xf32>
    %cst_43 = arith.constant 0.000000e+00 : f32
    %30 = vector.broadcast %cst_43 : f32 to vector<128x32xf32>
    %31 = arith.maximumf %29, %30 : vector<128x32xf32>
    %32 = vector.shape_cast %31 : vector<128x32xf32> to vector<4x4x8x32xf32>
    %c0_44 = arith.constant 0 : index
    %c1_45 = arith.constant 1 : index
    %c0_46 = arith.constant 0 : index
    %c0_47 = arith.constant 0 : index
    %c0_48 = arith.constant 0 : index
    %c0_49 = arith.constant 0 : index
    %33 = vector.load %arg1[%c0_44, %c1_45, %c0_46, %c0_47, %c0_48, %c0_49] : memref<2x2x5x5x8x64xf32, #tpu.memory_space<vmem>>, vector<1x1x4x4x8x64xf32>
    %34 = vector.shape_cast %33 : vector<1x1x4x4x8x64xf32> to vector<4x4x8x64xf32>
    %35 = vector.shape_cast %34 : vector<4x4x8x64xf32> to vector<128x64xf32>
    %c0_50 = arith.constant 0 : index
    %c0_51 = arith.constant 0 : index
    %c0_52 = arith.constant 0 : index
    %c0_53 = arith.constant 0 : index
    %36 = vector.load %arg2[%c0_50, %c0_51, %c0_52, %c0_53] : memref<2x2x64x32xf32, #tpu.memory_space<vmem>>, vector<1x1x64x32xf32>
    %37 = vector.shape_cast %36 : vector<1x1x64x32xf32> to vector<64x32xf32>
    %cst_54 = arith.constant dense<0.000000e+00> : vector<128x32xf32>
    %38 = tpu.matmul %35, %37, %cst_54 {dimension_numbers = #tpu.dot_dimension_numbers<[1], [0], [0], [1], [0, 0, 1, 1], [], []>} : vector<128x64xf32>, vector<64x32xf32>, vector<128x32xf32> -> vector<128x32xf32>
    %c0_55 = arith.constant 0 : index
    %c0_56 = arith.constant 0 : index
    %c0_57 = arith.constant 0 : index
    %c1_58 = arith.constant 1 : index
    %c0_59 = arith.constant 0 : index
    %c0_60 = arith.constant 0 : index
    %39 = vector.load %arg1[%c0_55, %c0_56, %c0_57, %c1_58, %c0_59, %c0_60] : memref<2x2x5x5x8x64xf32, #tpu.memory_space<vmem>>, vector<1x1x4x4x8x64xf32>
    %40 = vector.shape_cast %39 : vector<1x1x4x4x8x64xf32> to vector<4x4x8x64xf32>
    %41 = vector.shape_cast %40 : vector<4x4x8x64xf32> to vector<128x64xf32>
    %c0_61 = arith.constant 0 : index
    %c1_62 = arith.constant 1 : index
    %c0_63 = arith.constant 0 : index
    %c0_64 = arith.constant 0 : index
    %42 = vector.load %arg2[%c0_61, %c1_62, %c0_63, %c0_64] : memref<2x2x64x32xf32, #tpu.memory_space<vmem>>, vector<1x1x64x32xf32>
    %43 = vector.shape_cast %42 : vector<1x1x64x32xf32> to vector<64x32xf32>
    %cst_65 = arith.constant dense<0.000000e+00> : vector<128x32xf32>
    %44 = tpu.matmul %41, %43, %cst_65 {dimension_numbers = #tpu.dot_dimension_numbers<[1], [0], [0], [1], [0, 0, 1, 1], [], []>} : vector<128x64xf32>, vector<64x32xf32>, vector<128x32xf32> -> vector<128x32xf32>
    %45 = arith.addf %38, %44 : vector<128x32xf32>
    %c1_66 = arith.constant 1 : index
    %c1_67 = arith.constant 1 : index
    %c0_68 = arith.constant 0 : index
    %c0_69 = arith.constant 0 : index
    %c0_70 = arith.constant 0 : index
    %c0_71 = arith.constant 0 : index
    %46 = vector.load %arg1[%c1_66, %c1_67, %c0_68, %c0_69, %c0_70, %c0_71] : memref<2x2x5x5x8x64xf32, #tpu.memory_space<vmem>>, vector<1x1x4x4x8x64xf32>
    %47 = vector.shape_cast %46 : vector<1x1x4x4x8x64xf32> to vector<4x4x8x64xf32>
    %48 = vector.shape_cast %47 : vector<4x4x8x64xf32> to vector<128x64xf32>
    %c1_72 = arith.constant 1 : index
    %c0_73 = arith.constant 0 : index
    %c0_74 = arith.constant 0 : index
    %c0_75 = arith.constant 0 : index
    %49 = vector.load %arg2[%c1_72, %c0_73, %c0_74, %c0_75] : memref<2x2x64x32xf32, #tpu.memory_space<vmem>>, vector<1x1x64x32xf32>
    %50 = vector.shape_cast %49 : vector<1x1x64x32xf32> to vector<64x32xf32>
    %cst_76 = arith.constant dense<0.000000e+00> : vector<128x32xf32>
    %51 = tpu.matmul %48, %50, %cst_76 {dimension_numbers = #tpu.dot_dimension_numbers<[1], [0], [0], [1], [0, 0, 1, 1], [], []>} : vector<128x64xf32>, vector<64x32xf32>, vector<128x32xf32> -> vector<128x32xf32>
    %52 = arith.addf %45, %51 : vector<128x32xf32>
    %c1_77 = arith.constant 1 : index
    %c0_78 = arith.constant 0 : index
    %c0_79 = arith.constant 0 : index
    %c1_80 = arith.constant 1 : index
    %c0_81 = arith.constant 0 : index
    %c0_82 = arith.constant 0 : index
    %53 = vector.load %arg1[%c1_77, %c0_78, %c0_79, %c1_80, %c0_81, %c0_82] : memref<2x2x5x5x8x64xf32, #tpu.memory_space<vmem>>, vector<1x1x4x4x8x64xf32>
    %54 = vector.shape_cast %53 : vector<1x1x4x4x8x64xf32> to vector<4x4x8x64xf32>
    %55 = vector.shape_cast %54 : vector<4x4x8x64xf32> to vector<128x64xf32>
    %c1_83 = arith.constant 1 : index
    %c1_84 = arith.constant 1 : index
    %c0_85 = arith.constant 0 : index
    %c0_86 = arith.constant 0 : index
    %56 = vector.load %arg2[%c1_83, %c1_84, %c0_85, %c0_86] : memref<2x2x64x32xf32, #tpu.memory_space<vmem>>, vector<1x1x64x32xf32>
    %57 = vector.shape_cast %56 : vector<1x1x64x32xf32> to vector<64x32xf32>
    %cst_87 = arith.constant dense<0.000000e+00> : vector<128x32xf32>
    %58 = tpu.matmul %55, %57, %cst_87 {dimension_numbers = #tpu.dot_dimension_numbers<[1], [0], [0], [1], [0, 0, 1, 1], [], []>} : vector<128x64xf32>, vector<64x32xf32>, vector<128x32xf32> -> vector<128x32xf32>
    %59 = arith.addf %52, %58 : vector<128x32xf32>
    %c0_88 = arith.constant 0 : index
    %c0_89 = arith.constant 0 : index
    %60 = vector.load %arg3[%c0_88, %c0_89] : memref<1x32xf32, #tpu.memory_space<vmem>>, vector<1x32xf32>
    %61 = vector.broadcast %60 : vector<1x32xf32> to vector<128x32xf32>
    %62 = arith.addf %59, %61 : vector<128x32xf32>
    %cst_90 = arith.constant 0.000000e+00 : f32
    %63 = vector.broadcast %cst_90 : f32 to vector<128x32xf32>
    %64 = arith.maximumf %62, %63 : vector<128x32xf32>
    %65 = vector.shape_cast %64 : vector<128x32xf32> to vector<4x4x8x32xf32>
    %c1_91 = arith.constant 1 : index
    %c0_92 = arith.constant 0 : index
    %c0_93 = arith.constant 0 : index
    %c0_94 = arith.constant 0 : index
    %c0_95 = arith.constant 0 : index
    %c0_96 = arith.constant 0 : index
    %66 = vector.load %arg1[%c1_91, %c0_92, %c0_93, %c0_94, %c0_95, %c0_96] : memref<2x2x5x5x8x64xf32, #tpu.memory_space<vmem>>, vector<1x1x4x4x8x64xf32>
    %67 = vector.shape_cast %66 : vector<1x1x4x4x8x64xf32> to vector<4x4x8x64xf32>
    %68 = vector.shape_cast %67 : vector<4x4x8x64xf32> to vector<128x64xf32>
    %c0_97 = arith.constant 0 : index
    %c0_98 = arith.constant 0 : index
    %c0_99 = arith.constant 0 : index
    %c0_100 = arith.constant 0 : index
    %69 = vector.load %arg2[%c0_97, %c0_98, %c0_99, %c0_100] : memref<2x2x64x32xf32, #tpu.memory_space<vmem>>, vector<1x1x64x32xf32>
    %70 = vector.shape_cast %69 : vector<1x1x64x32xf32> to vector<64x32xf32>
    %cst_101 = arith.constant dense<0.000000e+00> : vector<128x32xf32>
    %71 = tpu.matmul %68, %70, %cst_101 {dimension_numbers = #tpu.dot_dimension_numbers<[1], [0], [0], [1], [0, 0, 1, 1], [], []>} : vector<128x64xf32>, vector<64x32xf32>, vector<128x32xf32> -> vector<128x32xf32>
    %c1_102 = arith.constant 1 : index
    %c1_103 = arith.constant 1 : index
    %c0_104 = arith.constant 0 : index
    %c0_105 = arith.constant 0 : index
    %c0_106 = arith.constant 0 : index
    %c0_107 = arith.constant 0 : index
    %72 = vector.load %arg1[%c1_102, %c1_103, %c0_104, %c0_105, %c0_106, %c0_107] : memref<2x2x5x5x8x64xf32, #tpu.memory_space<vmem>>, vector<1x1x4x4x8x64xf32>
    %73 = vector.shape_cast %72 : vector<1x1x4x4x8x64xf32> to vector<4x4x8x64xf32>
    %74 = vector.shape_cast %73 : vector<4x4x8x64xf32> to vector<128x64xf32>
    %c0_108 = arith.constant 0 : index
    %c1_109 = arith.constant 1 : index
    %c0_110 = arith.constant 0 : index
    %c0_111 = arith.constant 0 : index
    %75 = vector.load %arg2[%c0_108, %c1_109, %c0_110, %c0_111] : memref<2x2x64x32xf32, #tpu.memory_space<vmem>>, vector<1x1x64x32xf32>
    %76 = vector.shape_cast %75 : vector<1x1x64x32xf32> to vector<64x32xf32>
    %cst_112 = arith.constant dense<0.000000e+00> : vector<128x32xf32>
    %77 = tpu.matmul %74, %76, %cst_112 {dimension_numbers = #tpu.dot_dimension_numbers<[1], [0], [0], [1], [0, 0, 1, 1], [], []>} : vector<128x64xf32>, vector<64x32xf32>, vector<128x32xf32> -> vector<128x32xf32>
    %78 = arith.addf %71, %77 : vector<128x32xf32>
    %c0_113 = arith.constant 0 : index
    %c0_114 = arith.constant 0 : index
    %c1_115 = arith.constant 1 : index
    %c0_116 = arith.constant 0 : index
    %c0_117 = arith.constant 0 : index
    %c0_118 = arith.constant 0 : index
    %79 = vector.load %arg1[%c0_113, %c0_114, %c1_115, %c0_116, %c0_117, %c0_118] : memref<2x2x5x5x8x64xf32, #tpu.memory_space<vmem>>, vector<1x1x4x4x8x64xf32>
    %80 = vector.shape_cast %79 : vector<1x1x4x4x8x64xf32> to vector<4x4x8x64xf32>
    %81 = vector.shape_cast %80 : vector<4x4x8x64xf32> to vector<128x64xf32>
    %c1_119 = arith.constant 1 : index
    %c0_120 = arith.constant 0 : index
    %c0_121 = arith.constant 0 : index
    %c0_122 = arith.constant 0 : index
    %82 = vector.load %arg2[%c1_119, %c0_120, %c0_121, %c0_122] : memref<2x2x64x32xf32, #tpu.memory_space<vmem>>, vector<1x1x64x32xf32>
    %83 = vector.shape_cast %82 : vector<1x1x64x32xf32> to vector<64x32xf32>
    %cst_123 = arith.constant dense<0.000000e+00> : vector<128x32xf32>
    %84 = tpu.matmul %81, %83, %cst_123 {dimension_numbers = #tpu.dot_dimension_numbers<[1], [0], [0], [1], [0, 0, 1, 1], [], []>} : vector<128x64xf32>, vector<64x32xf32>, vector<128x32xf32> -> vector<128x32xf32>
    %85 = arith.addf %78, %84 : vector<128x32xf32>
    %c0_124 = arith.constant 0 : index
    %c1_125 = arith.constant 1 : index
    %c1_126 = arith.constant 1 : index
    %c0_127 = arith.constant 0 : index
    %c0_128 = arith.constant 0 : index
    %c0_129 = arith.constant 0 : index
    %86 = vector.load %arg1[%c0_124, %c1_125, %c1_126, %c0_127, %c0_128, %c0_129] : memref<2x2x5x5x8x64xf32, #tpu.memory_space<vmem>>, vector<1x1x4x4x8x64xf32>
    %87 = vector.shape_cast %86 : vector<1x1x4x4x8x64xf32> to vector<4x4x8x64xf32>
    %88 = vector.shape_cast %87 : vector<4x4x8x64xf32> to vector<128x64xf32>
    %c1_130 = arith.constant 1 : index
    %c1_131 = arith.constant 1 : index
    %c0_132 = arith.constant 0 : index
    %c0_133 = arith.constant 0 : index
    %89 = vector.load %arg2[%c1_130, %c1_131, %c0_132, %c0_133] : memref<2x2x64x32xf32, #tpu.memory_space<vmem>>, vector<1x1x64x32xf32>
    %90 = vector.shape_cast %89 : vector<1x1x64x32xf32> to vector<64x32xf32>
    %cst_134 = arith.constant dense<0.000000e+00> : vector<128x32xf32>
    %91 = tpu.matmul %88, %90, %cst_134 {dimension_numbers = #tpu.dot_dimension_numbers<[1], [0], [0], [1], [0, 0, 1, 1], [], []>} : vector<128x64xf32>, vector<64x32xf32>, vector<128x32xf32> -> vector<128x32xf32>
    %92 = arith.addf %85, %91 : vector<128x32xf32>
    %c0_135 = arith.constant 0 : index
    %c0_136 = arith.constant 0 : index
    %93 = vector.load %arg3[%c0_135, %c0_136] : memref<1x32xf32, #tpu.memory_space<vmem>>, vector<1x32xf32>
    %94 = vector.broadcast %93 : vector<1x32xf32> to vector<128x32xf32>
    %95 = arith.addf %92, %94 : vector<128x32xf32>
    %cst_137 = arith.constant 0.000000e+00 : f32
    %96 = vector.broadcast %cst_137 : f32 to vector<128x32xf32>
    %97 = arith.maximumf %95, %96 : vector<128x32xf32>
    %98 = vector.shape_cast %97 : vector<128x32xf32> to vector<4x4x8x32xf32>
    %c1_138 = arith.constant 1 : index
    %c1_139 = arith.constant 1 : index
    %c0_140 = arith.constant 0 : index
    %c0_141 = arith.constant 0 : index
    %c0_142 = arith.constant 0 : index
    %c0_143 = arith.constant 0 : index
    %99 = vector.load %arg1[%c1_138, %c1_139, %c0_140, %c0_141, %c0_142, %c0_143] : memref<2x2x5x5x8x64xf32, #tpu.memory_space<vmem>>, vector<1x1x4x4x8x64xf32>
    %100 = vector.shape_cast %99 : vector<1x1x4x4x8x64xf32> to vector<4x4x8x64xf32>
    %101 = vector.shape_cast %100 : vector<4x4x8x64xf32> to vector<128x64xf32>
    %c0_144 = arith.constant 0 : index
    %c0_145 = arith.constant 0 : index
    %c0_146 = arith.constant 0 : index
    %c0_147 = arith.constant 0 : index
    %102 = vector.load %arg2[%c0_144, %c0_145, %c0_146, %c0_147] : memref<2x2x64x32xf32, #tpu.memory_space<vmem>>, vector<1x1x64x32xf32>
    %103 = vector.shape_cast %102 : vector<1x1x64x32xf32> to vector<64x32xf32>
    %cst_148 = arith.constant dense<0.000000e+00> : vector<128x32xf32>
    %104 = tpu.matmul %101, %103, %cst_148 {dimension_numbers = #tpu.dot_dimension_numbers<[1], [0], [0], [1], [0, 0, 1, 1], [], []>} : vector<128x64xf32>, vector<64x32xf32>, vector<128x32xf32> -> vector<128x32xf32>
    %c1_149 = arith.constant 1 : index
    %c0_150 = arith.constant 0 : index
    %c0_151 = arith.constant 0 : index
    %c1_152 = arith.constant 1 : index
    %c0_153 = arith.constant 0 : index
    %c0_154 = arith.constant 0 : index
    %105 = vector.load %arg1[%c1_149, %c0_150, %c0_151, %c1_152, %c0_153, %c0_154] : memref<2x2x5x5x8x64xf32, #tpu.memory_space<vmem>>, vector<1x1x4x4x8x64xf32>
    %106 = vector.shape_cast %105 : vector<1x1x4x4x8x64xf32> to vector<4x4x8x64xf32>
    %107 = vector.shape_cast %106 : vector<4x4x8x64xf32> to vector<128x64xf32>
    %c0_155 = arith.constant 0 : index
    %c1_156 = arith.constant 1 : index
    %c0_157 = arith.constant 0 : index
    %c0_158 = arith.constant 0 : index
    %108 = vector.load %arg2[%c0_155, %c1_156, %c0_157, %c0_158] : memref<2x2x64x32xf32, #tpu.memory_space<vmem>>, vector<1x1x64x32xf32>
    %109 = vector.shape_cast %108 : vector<1x1x64x32xf32> to vector<64x32xf32>
    %cst_159 = arith.constant dense<0.000000e+00> : vector<128x32xf32>
    %110 = tpu.matmul %107, %109, %cst_159 {dimension_numbers = #tpu.dot_dimension_numbers<[1], [0], [0], [1], [0, 0, 1, 1], [], []>} : vector<128x64xf32>, vector<64x32xf32>, vector<128x32xf32> -> vector<128x32xf32>
    %111 = arith.addf %104, %110 : vector<128x32xf32>
    %c0_160 = arith.constant 0 : index
    %c1_161 = arith.constant 1 : index
    %c1_162 = arith.constant 1 : index
    %c0_163 = arith.constant 0 : index
    %c0_164 = arith.constant 0 : index
    %c0_165 = arith.constant 0 : index
    %112 = vector.load %arg1[%c0_160, %c1_161, %c1_162, %c0_163, %c0_164, %c0_165] : memref<2x2x5x5x8x64xf32, #tpu.memory_space<vmem>>, vector<1x1x4x4x8x64xf32>
    %113 = vector.shape_cast %112 : vector<1x1x4x4x8x64xf32> to vector<4x4x8x64xf32>
    %114 = vector.shape_cast %113 : vector<4x4x8x64xf32> to vector<128x64xf32>
    %c1_166 = arith.constant 1 : index
    %c0_167 = arith.constant 0 : index
    %c0_168 = arith.constant 0 : index
    %c0_169 = arith.constant 0 : index
    %115 = vector.load %arg2[%c1_166, %c0_167, %c0_168, %c0_169] : memref<2x2x64x32xf32, #tpu.memory_space<vmem>>, vector<1x1x64x32xf32>
    %116 = vector.shape_cast %115 : vector<1x1x64x32xf32> to vector<64x32xf32>
    %cst_170 = arith.constant dense<0.000000e+00> : vector<128x32xf32>
    %117 = tpu.matmul %114, %116, %cst_170 {dimension_numbers = #tpu.dot_dimension_numbers<[1], [0], [0], [1], [0, 0, 1, 1], [], []>} : vector<128x64xf32>, vector<64x32xf32>, vector<128x32xf32> -> vector<128x32xf32>
    %118 = arith.addf %111, %117 : vector<128x32xf32>
    %c0_171 = arith.constant 0 : index
    %c0_172 = arith.constant 0 : index
    %c1_173 = arith.constant 1 : index
    %c1_174 = arith.constant 1 : index
    %c0_175 = arith.constant 0 : index
    %c0_176 = arith.constant 0 : index
    %119 = vector.load %arg1[%c0_171, %c0_172, %c1_173, %c1_174, %c0_175, %c0_176] : memref<2x2x5x5x8x64xf32, #tpu.memory_space<vmem>>, vector<1x1x4x4x8x64xf32>
    %120 = vector.shape_cast %119 : vector<1x1x4x4x8x64xf32> to vector<4x4x8x64xf32>
    %121 = vector.shape_cast %120 : vector<4x4x8x64xf32> to vector<128x64xf32>
    %c1_177 = arith.constant 1 : index
    %c1_178 = arith.constant 1 : index
    %c0_179 = arith.constant 0 : index
    %c0_180 = arith.constant 0 : index
    %122 = vector.load %arg2[%c1_177, %c1_178, %c0_179, %c0_180] : memref<2x2x64x32xf32, #tpu.memory_space<vmem>>, vector<1x1x64x32xf32>
    %123 = vector.shape_cast %122 : vector<1x1x64x32xf32> to vector<64x32xf32>
    %cst_181 = arith.constant dense<0.000000e+00> : vector<128x32xf32>
    %124 = tpu.matmul %121, %123, %cst_181 {dimension_numbers = #tpu.dot_dimension_numbers<[1], [0], [0], [1], [0, 0, 1, 1], [], []>} : vector<128x64xf32>, vector<64x32xf32>, vector<128x32xf32> -> vector<128x32xf32>
    %125 = arith.addf %118, %124 : vector<128x32xf32>
    %c0_182 = arith.constant 0 : index
    %c0_183 = arith.constant 0 : index
    %126 = vector.load %arg3[%c0_182, %c0_183] : memref<1x32xf32, #tpu.memory_space<vmem>>, vector<1x32xf32>
    %127 = vector.broadcast %126 : vector<1x32xf32> to vector<128x32xf32>
    %128 = arith.addf %125, %127 : vector<128x32xf32>
    %cst_184 = arith.constant 0.000000e+00 : f32
    %129 = vector.broadcast %cst_184 : f32 to vector<128x32xf32>
    %130 = arith.maximumf %128, %129 : vector<128x32xf32>
    %131 = vector.shape_cast %130 : vector<128x32xf32> to vector<4x4x8x32xf32>
    %132 = vector.extract_strided_slice %32 {offsets = [0, 0, 0, 0], sizes = [3, 3, 8, 32], strides = [1, 1, 1, 1]} : vector<4x4x8x32xf32> to vector<3x3x8x32xf32>
    %133 = vector.shape_cast %132 : vector<3x3x8x32xf32> to vector<72x32xf32>
    %c0_185 = arith.constant 0 : index
    %c0_186 = arith.constant 0 : index
    %c0_187 = arith.constant 0 : index
    %c0_188 = arith.constant 0 : index
    %134 = vector.load %arg4[%c0_185, %c0_186, %c0_187, %c0_188] : memref<4x4x32x64xf32, #tpu.memory_space<vmem>>, vector<1x1x32x64xf32>
    %135 = vector.shape_cast %134 : vector<1x1x32x64xf32> to vector<32x64xf32>
    %cst_189 = arith.constant dense<0.000000e+00> : vector<72x64xf32>
    %136 = tpu.matmul %133, %135, %cst_189 {dimension_numbers = #tpu.dot_dimension_numbers<[1], [0], [0], [1], [0, 0, 1, 1], [], []>} : vector<72x32xf32>, vector<32x64xf32>, vector<72x64xf32> -> vector<72x64xf32>
    %137 = vector.extract_strided_slice %32 {offsets = [0, 1, 0, 0], sizes = [3, 3, 8, 32], strides = [1, 1, 1, 1]} : vector<4x4x8x32xf32> to vector<3x3x8x32xf32>
    %138 = vector.shape_cast %137 : vector<3x3x8x32xf32> to vector<72x32xf32>
    %c0_190 = arith.constant 0 : index
    %c2 = arith.constant 2 : index
    %c0_191 = arith.constant 0 : index
    %c0_192 = arith.constant 0 : index
    %139 = vector.load %arg4[%c0_190, %c2, %c0_191, %c0_192] : memref<4x4x32x64xf32, #tpu.memory_space<vmem>>, vector<1x1x32x64xf32>
    %140 = vector.shape_cast %139 : vector<1x1x32x64xf32> to vector<32x64xf32>
    %cst_193 = arith.constant dense<0.000000e+00> : vector<72x64xf32>
    %141 = tpu.matmul %138, %140, %cst_193 {dimension_numbers = #tpu.dot_dimension_numbers<[1], [0], [0], [1], [0, 0, 1, 1], [], []>} : vector<72x32xf32>, vector<32x64xf32>, vector<72x64xf32> -> vector<72x64xf32>
    %142 = arith.addf %136, %141 : vector<72x64xf32>
    %143 = vector.extract_strided_slice %32 {offsets = [1, 0, 0, 0], sizes = [3, 3, 8, 32], strides = [1, 1, 1, 1]} : vector<4x4x8x32xf32> to vector<3x3x8x32xf32>
    %144 = vector.shape_cast %143 : vector<3x3x8x32xf32> to vector<72x32xf32>
    %c2_194 = arith.constant 2 : index
    %c0_195 = arith.constant 0 : index
    %c0_196 = arith.constant 0 : index
    %c0_197 = arith.constant 0 : index
    %145 = vector.load %arg4[%c2_194, %c0_195, %c0_196, %c0_197] : memref<4x4x32x64xf32, #tpu.memory_space<vmem>>, vector<1x1x32x64xf32>
    %146 = vector.shape_cast %145 : vector<1x1x32x64xf32> to vector<32x64xf32>
    %cst_198 = arith.constant dense<0.000000e+00> : vector<72x64xf32>
    %147 = tpu.matmul %144, %146, %cst_198 {dimension_numbers = #tpu.dot_dimension_numbers<[1], [0], [0], [1], [0, 0, 1, 1], [], []>} : vector<72x32xf32>, vector<32x64xf32>, vector<72x64xf32> -> vector<72x64xf32>
    %148 = arith.addf %142, %147 : vector<72x64xf32>
    %149 = vector.extract_strided_slice %32 {offsets = [1, 1, 0, 0], sizes = [3, 3, 8, 32], strides = [1, 1, 1, 1]} : vector<4x4x8x32xf32> to vector<3x3x8x32xf32>
    %150 = vector.shape_cast %149 : vector<3x3x8x32xf32> to vector<72x32xf32>
    %c2_199 = arith.constant 2 : index
    %c2_200 = arith.constant 2 : index
    %c0_201 = arith.constant 0 : index
    %c0_202 = arith.constant 0 : index
    %151 = vector.load %arg4[%c2_199, %c2_200, %c0_201, %c0_202] : memref<4x4x32x64xf32, #tpu.memory_space<vmem>>, vector<1x1x32x64xf32>
    %152 = vector.shape_cast %151 : vector<1x1x32x64xf32> to vector<32x64xf32>
    %cst_203 = arith.constant dense<0.000000e+00> : vector<72x64xf32>
    %153 = tpu.matmul %150, %152, %cst_203 {dimension_numbers = #tpu.dot_dimension_numbers<[1], [0], [0], [1], [0, 0, 1, 1], [], []>} : vector<72x32xf32>, vector<32x64xf32>, vector<72x64xf32> -> vector<72x64xf32>
    %154 = arith.addf %148, %153 : vector<72x64xf32>
    %155 = vector.extract_strided_slice %65 {offsets = [0, 0, 0, 0], sizes = [3, 3, 8, 32], strides = [1, 1, 1, 1]} : vector<4x4x8x32xf32> to vector<3x3x8x32xf32>
    %156 = vector.shape_cast %155 : vector<3x3x8x32xf32> to vector<72x32xf32>
    %c0_204 = arith.constant 0 : index
    %c1_205 = arith.constant 1 : index
    %c0_206 = arith.constant 0 : index
    %c0_207 = arith.constant 0 : index
    %157 = vector.load %arg4[%c0_204, %c1_205, %c0_206, %c0_207] : memref<4x4x32x64xf32, #tpu.memory_space<vmem>>, vector<1x1x32x64xf32>
    %158 = vector.shape_cast %157 : vector<1x1x32x64xf32> to vector<32x64xf32>
    %cst_208 = arith.constant dense<0.000000e+00> : vector<72x64xf32>
    %159 = tpu.matmul %156, %158, %cst_208 {dimension_numbers = #tpu.dot_dimension_numbers<[1], [0], [0], [1], [0, 0, 1, 1], [], []>} : vector<72x32xf32>, vector<32x64xf32>, vector<72x64xf32> -> vector<72x64xf32>
    %160 = arith.addf %154, %159 : vector<72x64xf32>
    %161 = vector.extract_strided_slice %65 {offsets = [0, 1, 0, 0], sizes = [3, 3, 8, 32], strides = [1, 1, 1, 1]} : vector<4x4x8x32xf32> to vector<3x3x8x32xf32>
    %162 = vector.shape_cast %161 : vector<3x3x8x32xf32> to vector<72x32xf32>
    %c0_209 = arith.constant 0 : index
    %c3 = arith.constant 3 : index
    %c0_210 = arith.constant 0 : index
    %c0_211 = arith.constant 0 : index
    %163 = vector.load %arg4[%c0_209, %c3, %c0_210, %c0_211] : memref<4x4x32x64xf32, #tpu.memory_space<vmem>>, vector<1x1x32x64xf32>
    %164 = vector.shape_cast %163 : vector<1x1x32x64xf32> to vector<32x64xf32>
    %cst_212 = arith.constant dense<0.000000e+00> : vector<72x64xf32>
    %165 = tpu.matmul %162, %164, %cst_212 {dimension_numbers = #tpu.dot_dimension_numbers<[1], [0], [0], [1], [0, 0, 1, 1], [], []>} : vector<72x32xf32>, vector<32x64xf32>, vector<72x64xf32> -> vector<72x64xf32>
    %166 = arith.addf %160, %165 : vector<72x64xf32>
    %167 = vector.extract_strided_slice %65 {offsets = [1, 0, 0, 0], sizes = [3, 3, 8, 32], strides = [1, 1, 1, 1]} : vector<4x4x8x32xf32> to vector<3x3x8x32xf32>
    %168 = vector.shape_cast %167 : vector<3x3x8x32xf32> to vector<72x32xf32>
    %c2_213 = arith.constant 2 : index
    %c1_214 = arith.constant 1 : index
    %c0_215 = arith.constant 0 : index
    %c0_216 = arith.constant 0 : index
    %169 = vector.load %arg4[%c2_213, %c1_214, %c0_215, %c0_216] : memref<4x4x32x64xf32, #tpu.memory_space<vmem>>, vector<1x1x32x64xf32>
    %170 = vector.shape_cast %169 : vector<1x1x32x64xf32> to vector<32x64xf32>
    %cst_217 = arith.constant dense<0.000000e+00> : vector<72x64xf32>
    %171 = tpu.matmul %168, %170, %cst_217 {dimension_numbers = #tpu.dot_dimension_numbers<[1], [0], [0], [1], [0, 0, 1, 1], [], []>} : vector<72x32xf32>, vector<32x64xf32>, vector<72x64xf32> -> vector<72x64xf32>
    %172 = arith.addf %166, %171 : vector<72x64xf32>
    %173 = vector.extract_strided_slice %65 {offsets = [1, 1, 0, 0], sizes = [3, 3, 8, 32], strides = [1, 1, 1, 1]} : vector<4x4x8x32xf32> to vector<3x3x8x32xf32>
    %174 = vector.shape_cast %173 : vector<3x3x8x32xf32> to vector<72x32xf32>
    %c2_218 = arith.constant 2 : index
    %c3_219 = arith.constant 3 : index
    %c0_220 = arith.constant 0 : index
    %c0_221 = arith.constant 0 : index
    %175 = vector.load %arg4[%c2_218, %c3_219, %c0_220, %c0_221] : memref<4x4x32x64xf32, #tpu.memory_space<vmem>>, vector<1x1x32x64xf32>
    %176 = vector.shape_cast %175 : vector<1x1x32x64xf32> to vector<32x64xf32>
    %cst_222 = arith.constant dense<0.000000e+00> : vector<72x64xf32>
    %177 = tpu.matmul %174, %176, %cst_222 {dimension_numbers = #tpu.dot_dimension_numbers<[1], [0], [0], [1], [0, 0, 1, 1], [], []>} : vector<72x32xf32>, vector<32x64xf32>, vector<72x64xf32> -> vector<72x64xf32>
    %178 = arith.addf %172, %177 : vector<72x64xf32>
    %179 = vector.extract_strided_slice %98 {offsets = [0, 0, 0, 0], sizes = [3, 3, 8, 32], strides = [1, 1, 1, 1]} : vector<4x4x8x32xf32> to vector<3x3x8x32xf32>
    %180 = vector.shape_cast %179 : vector<3x3x8x32xf32> to vector<72x32xf32>
    %c1_223 = arith.constant 1 : index
    %c0_224 = arith.constant 0 : index
    %c0_225 = arith.constant 0 : index
    %c0_226 = arith.constant 0 : index
    %181 = vector.load %arg4[%c1_223, %c0_224, %c0_225, %c0_226] : memref<4x4x32x64xf32, #tpu.memory_space<vmem>>, vector<1x1x32x64xf32>
    %182 = vector.shape_cast %181 : vector<1x1x32x64xf32> to vector<32x64xf32>
    %cst_227 = arith.constant dense<0.000000e+00> : vector<72x64xf32>
    %183 = tpu.matmul %180, %182, %cst_227 {dimension_numbers = #tpu.dot_dimension_numbers<[1], [0], [0], [1], [0, 0, 1, 1], [], []>} : vector<72x32xf32>, vector<32x64xf32>, vector<72x64xf32> -> vector<72x64xf32>
    %184 = arith.addf %178, %183 : vector<72x64xf32>
    %185 = vector.extract_strided_slice %98 {offsets = [0, 1, 0, 0], sizes = [3, 3, 8, 32], strides = [1, 1, 1, 1]} : vector<4x4x8x32xf32> to vector<3x3x8x32xf32>
    %186 = vector.shape_cast %185 : vector<3x3x8x32xf32> to vector<72x32xf32>
    %c1_228 = arith.constant 1 : index
    %c2_229 = arith.constant 2 : index
    %c0_230 = arith.constant 0 : index
    %c0_231 = arith.constant 0 : index
    %187 = vector.load %arg4[%c1_228, %c2_229, %c0_230, %c0_231] : memref<4x4x32x64xf32, #tpu.memory_space<vmem>>, vector<1x1x32x64xf32>
    %188 = vector.shape_cast %187 : vector<1x1x32x64xf32> to vector<32x64xf32>
    %cst_232 = arith.constant dense<0.000000e+00> : vector<72x64xf32>
    %189 = tpu.matmul %186, %188, %cst_232 {dimension_numbers = #tpu.dot_dimension_numbers<[1], [0], [0], [1], [0, 0, 1, 1], [], []>} : vector<72x32xf32>, vector<32x64xf32>, vector<72x64xf32> -> vector<72x64xf32>
    %190 = arith.addf %184, %189 : vector<72x64xf32>
    %191 = vector.extract_strided_slice %98 {offsets = [1, 0, 0, 0], sizes = [3, 3, 8, 32], strides = [1, 1, 1, 1]} : vector<4x4x8x32xf32> to vector<3x3x8x32xf32>
    %192 = vector.shape_cast %191 : vector<3x3x8x32xf32> to vector<72x32xf32>
    %c3_233 = arith.constant 3 : index
    %c0_234 = arith.constant 0 : index
    %c0_235 = arith.constant 0 : index
    %c0_236 = arith.constant 0 : index
    %193 = vector.load %arg4[%c3_233, %c0_234, %c0_235, %c0_236] : memref<4x4x32x64xf32, #tpu.memory_space<vmem>>, vector<1x1x32x64xf32>
    %194 = vector.shape_cast %193 : vector<1x1x32x64xf32> to vector<32x64xf32>
    %cst_237 = arith.constant dense<0.000000e+00> : vector<72x64xf32>
    %195 = tpu.matmul %192, %194, %cst_237 {dimension_numbers = #tpu.dot_dimension_numbers<[1], [0], [0], [1], [0, 0, 1, 1], [], []>} : vector<72x32xf32>, vector<32x64xf32>, vector<72x64xf32> -> vector<72x64xf32>
    %196 = arith.addf %190, %195 : vector<72x64xf32>
    %197 = vector.extract_strided_slice %98 {offsets = [1, 1, 0, 0], sizes = [3, 3, 8, 32], strides = [1, 1, 1, 1]} : vector<4x4x8x32xf32> to vector<3x3x8x32xf32>
    %198 = vector.shape_cast %197 : vector<3x3x8x32xf32> to vector<72x32xf32>
    %c3_238 = arith.constant 3 : index
    %c2_239 = arith.constant 2 : index
    %c0_240 = arith.constant 0 : index
    %c0_241 = arith.constant 0 : index
    %199 = vector.load %arg4[%c3_238, %c2_239, %c0_240, %c0_241] : memref<4x4x32x64xf32, #tpu.memory_space<vmem>>, vector<1x1x32x64xf32>
    %200 = vector.shape_cast %199 : vector<1x1x32x64xf32> to vector<32x64xf32>
    %cst_242 = arith.constant dense<0.000000e+00> : vector<72x64xf32>
    %201 = tpu.matmul %198, %200, %cst_242 {dimension_numbers = #tpu.dot_dimension_numbers<[1], [0], [0], [1], [0, 0, 1, 1], [], []>} : vector<72x32xf32>, vector<32x64xf32>, vector<72x64xf32> -> vector<72x64xf32>
    %202 = arith.addf %196, %201 : vector<72x64xf32>
    %203 = vector.extract_strided_slice %131 {offsets = [0, 0, 0, 0], sizes = [3, 3, 8, 32], strides = [1, 1, 1, 1]} : vector<4x4x8x32xf32> to vector<3x3x8x32xf32>
    %204 = vector.shape_cast %203 : vector<3x3x8x32xf32> to vector<72x32xf32>
    %c1_243 = arith.constant 1 : index
    %c1_244 = arith.constant 1 : index
    %c0_245 = arith.constant 0 : index
    %c0_246 = arith.constant 0 : index
    %205 = vector.load %arg4[%c1_243, %c1_244, %c0_245, %c0_246] : memref<4x4x32x64xf32, #tpu.memory_space<vmem>>, vector<1x1x32x64xf32>
    %206 = vector.shape_cast %205 : vector<1x1x32x64xf32> to vector<32x64xf32>
    %cst_247 = arith.constant dense<0.000000e+00> : vector<72x64xf32>
    %207 = tpu.matmul %204, %206, %cst_247 {dimension_numbers = #tpu.dot_dimension_numbers<[1], [0], [0], [1], [0, 0, 1, 1], [], []>} : vector<72x32xf32>, vector<32x64xf32>, vector<72x64xf32> -> vector<72x64xf32>
    %208 = arith.addf %202, %207 : vector<72x64xf32>
    %209 = vector.extract_strided_slice %131 {offsets = [0, 1, 0, 0], sizes = [3, 3, 8, 32], strides = [1, 1, 1, 1]} : vector<4x4x8x32xf32> to vector<3x3x8x32xf32>
    %210 = vector.shape_cast %209 : vector<3x3x8x32xf32> to vector<72x32xf32>
    %c1_248 = arith.constant 1 : index
    %c3_249 = arith.constant 3 : index
    %c0_250 = arith.constant 0 : index
    %c0_251 = arith.constant 0 : index
    %211 = vector.load %arg4[%c1_248, %c3_249, %c0_250, %c0_251] : memref<4x4x32x64xf32, #tpu.memory_space<vmem>>, vector<1x1x32x64xf32>
    %212 = vector.shape_cast %211 : vector<1x1x32x64xf32> to vector<32x64xf32>
    %cst_252 = arith.constant dense<0.000000e+00> : vector<72x64xf32>
    %213 = tpu.matmul %210, %212, %cst_252 {dimension_numbers = #tpu.dot_dimension_numbers<[1], [0], [0], [1], [0, 0, 1, 1], [], []>} : vector<72x32xf32>, vector<32x64xf32>, vector<72x64xf32> -> vector<72x64xf32>
    %214 = arith.addf %208, %213 : vector<72x64xf32>
    %215 = vector.extract_strided_slice %131 {offsets = [1, 0, 0, 0], sizes = [3, 3, 8, 32], strides = [1, 1, 1, 1]} : vector<4x4x8x32xf32> to vector<3x3x8x32xf32>
    %216 = vector.shape_cast %215 : vector<3x3x8x32xf32> to vector<72x32xf32>
    %c3_253 = arith.constant 3 : index
    %c1_254 = arith.constant 1 : index
    %c0_255 = arith.constant 0 : index
    %c0_256 = arith.constant 0 : index
    %217 = vector.load %arg4[%c3_253, %c1_254, %c0_255, %c0_256] : memref<4x4x32x64xf32, #tpu.memory_space<vmem>>, vector<1x1x32x64xf32>
    %218 = vector.shape_cast %217 : vector<1x1x32x64xf32> to vector<32x64xf32>
    %cst_257 = arith.constant dense<0.000000e+00> : vector<72x64xf32>
    %219 = tpu.matmul %216, %218, %cst_257 {dimension_numbers = #tpu.dot_dimension_numbers<[1], [0], [0], [1], [0, 0, 1, 1], [], []>} : vector<72x32xf32>, vector<32x64xf32>, vector<72x64xf32> -> vector<72x64xf32>
    %220 = arith.addf %214, %219 : vector<72x64xf32>
    %221 = vector.extract_strided_slice %131 {offsets = [1, 1, 0, 0], sizes = [3, 3, 8, 32], strides = [1, 1, 1, 1]} : vector<4x4x8x32xf32> to vector<3x3x8x32xf32>
    %222 = vector.shape_cast %221 : vector<3x3x8x32xf32> to vector<72x32xf32>
    %c3_258 = arith.constant 3 : index
    %c3_259 = arith.constant 3 : index
    %c0_260 = arith.constant 0 : index
    %c0_261 = arith.constant 0 : index
    %223 = vector.load %arg4[%c3_258, %c3_259, %c0_260, %c0_261] : memref<4x4x32x64xf32, #tpu.memory_space<vmem>>, vector<1x1x32x64xf32>
    %224 = vector.shape_cast %223 : vector<1x1x32x64xf32> to vector<32x64xf32>
    %cst_262 = arith.constant dense<0.000000e+00> : vector<72x64xf32>
    %225 = tpu.matmul %222, %224, %cst_262 {dimension_numbers = #tpu.dot_dimension_numbers<[1], [0], [0], [1], [0, 0, 1, 1], [], []>} : vector<72x32xf32>, vector<32x64xf32>, vector<72x64xf32> -> vector<72x64xf32>
    %226 = arith.addf %220, %225 : vector<72x64xf32>
    %c0_263 = arith.constant 0 : index
    %c0_264 = arith.constant 0 : index
    %227 = vector.load %arg5[%c0_263, %c0_264] : memref<1x64xf32, #tpu.memory_space<vmem>>, vector<1x64xf32>
    %228 = vector.broadcast %227 : vector<1x64xf32> to vector<72x64xf32>
    %229 = arith.addf %226, %228 : vector<72x64xf32>
    %cst_265 = arith.constant 0.000000e+00 : f32
    %230 = vector.broadcast %cst_265 : f32 to vector<72x64xf32>
    %231 = arith.maximumf %229, %230 : vector<72x64xf32>
    %232 = vector.shape_cast %231 : vector<72x64xf32> to vector<3x3x8x64xf32>
    %233 = vector.extract_strided_slice %232 {offsets = [0, 0, 0, 0], sizes = [1, 1, 8, 64], strides = [1, 1, 1, 1]} : vector<3x3x8x64xf32> to vector<1x1x8x64xf32>
    %234 = vector.shape_cast %233 : vector<1x1x8x64xf32> to vector<8x64xf32>
    %c0_266 = arith.constant 0 : index
    %c0_267 = arith.constant 0 : index
    %c0_268 = arith.constant 0 : index
    %c0_269 = arith.constant 0 : index
    %235 = vector.load %arg6[%c0_266, %c0_267, %c0_268, %c0_269] : memref<3x3x64x64xf32, #tpu.memory_space<vmem>>, vector<1x1x64x64xf32>
    %236 = vector.shape_cast %235 : vector<1x1x64x64xf32> to vector<64x64xf32>
    %cst_270 = arith.constant dense<0.000000e+00> : vector<8x64xf32>
    %237 = tpu.matmul %234, %236, %cst_270 {dimension_numbers = #tpu.dot_dimension_numbers<[1], [0], [0], [1], [0, 0, 1, 1], [], []>} : vector<8x64xf32>, vector<64x64xf32>, vector<8x64xf32> -> vector<8x64xf32>
    %238 = vector.extract_strided_slice %232 {offsets = [0, 1, 0, 0], sizes = [1, 1, 8, 64], strides = [1, 1, 1, 1]} : vector<3x3x8x64xf32> to vector<1x1x8x64xf32>
    %239 = vector.shape_cast %238 : vector<1x1x8x64xf32> to vector<8x64xf32>
    %c0_271 = arith.constant 0 : index
    %c1_272 = arith.constant 1 : index
    %c0_273 = arith.constant 0 : index
    %c0_274 = arith.constant 0 : index
    %240 = vector.load %arg6[%c0_271, %c1_272, %c0_273, %c0_274] : memref<3x3x64x64xf32, #tpu.memory_space<vmem>>, vector<1x1x64x64xf32>
    %241 = vector.shape_cast %240 : vector<1x1x64x64xf32> to vector<64x64xf32>
    %cst_275 = arith.constant dense<0.000000e+00> : vector<8x64xf32>
    %242 = tpu.matmul %239, %241, %cst_275 {dimension_numbers = #tpu.dot_dimension_numbers<[1], [0], [0], [1], [0, 0, 1, 1], [], []>} : vector<8x64xf32>, vector<64x64xf32>, vector<8x64xf32> -> vector<8x64xf32>
    %243 = arith.addf %237, %242 : vector<8x64xf32>
    %244 = vector.extract_strided_slice %232 {offsets = [0, 2, 0, 0], sizes = [1, 1, 8, 64], strides = [1, 1, 1, 1]} : vector<3x3x8x64xf32> to vector<1x1x8x64xf32>
    %245 = vector.shape_cast %244 : vector<1x1x8x64xf32> to vector<8x64xf32>
    %c0_276 = arith.constant 0 : index
    %c2_277 = arith.constant 2 : index
    %c0_278 = arith.constant 0 : index
    %c0_279 = arith.constant 0 : index
    %246 = vector.load %arg6[%c0_276, %c2_277, %c0_278, %c0_279] : memref<3x3x64x64xf32, #tpu.memory_space<vmem>>, vector<1x1x64x64xf32>
    %247 = vector.shape_cast %246 : vector<1x1x64x64xf32> to vector<64x64xf32>
    %cst_280 = arith.constant dense<0.000000e+00> : vector<8x64xf32>
    %248 = tpu.matmul %245, %247, %cst_280 {dimension_numbers = #tpu.dot_dimension_numbers<[1], [0], [0], [1], [0, 0, 1, 1], [], []>} : vector<8x64xf32>, vector<64x64xf32>, vector<8x64xf32> -> vector<8x64xf32>
    %249 = arith.addf %243, %248 : vector<8x64xf32>
    %250 = vector.extract_strided_slice %232 {offsets = [1, 0, 0, 0], sizes = [1, 1, 8, 64], strides = [1, 1, 1, 1]} : vector<3x3x8x64xf32> to vector<1x1x8x64xf32>
    %251 = vector.shape_cast %250 : vector<1x1x8x64xf32> to vector<8x64xf32>
    %c1_281 = arith.constant 1 : index
    %c0_282 = arith.constant 0 : index
    %c0_283 = arith.constant 0 : index
    %c0_284 = arith.constant 0 : index
    %252 = vector.load %arg6[%c1_281, %c0_282, %c0_283, %c0_284] : memref<3x3x64x64xf32, #tpu.memory_space<vmem>>, vector<1x1x64x64xf32>
    %253 = vector.shape_cast %252 : vector<1x1x64x64xf32> to vector<64x64xf32>
    %cst_285 = arith.constant dense<0.000000e+00> : vector<8x64xf32>
    %254 = tpu.matmul %251, %253, %cst_285 {dimension_numbers = #tpu.dot_dimension_numbers<[1], [0], [0], [1], [0, 0, 1, 1], [], []>} : vector<8x64xf32>, vector<64x64xf32>, vector<8x64xf32> -> vector<8x64xf32>
    %255 = arith.addf %249, %254 : vector<8x64xf32>
    %256 = vector.extract_strided_slice %232 {offsets = [1, 1, 0, 0], sizes = [1, 1, 8, 64], strides = [1, 1, 1, 1]} : vector<3x3x8x64xf32> to vector<1x1x8x64xf32>
    %257 = vector.shape_cast %256 : vector<1x1x8x64xf32> to vector<8x64xf32>
    %c1_286 = arith.constant 1 : index
    %c1_287 = arith.constant 1 : index
    %c0_288 = arith.constant 0 : index
    %c0_289 = arith.constant 0 : index
    %258 = vector.load %arg6[%c1_286, %c1_287, %c0_288, %c0_289] : memref<3x3x64x64xf32, #tpu.memory_space<vmem>>, vector<1x1x64x64xf32>
    %259 = vector.shape_cast %258 : vector<1x1x64x64xf32> to vector<64x64xf32>
    %cst_290 = arith.constant dense<0.000000e+00> : vector<8x64xf32>
    %260 = tpu.matmul %257, %259, %cst_290 {dimension_numbers = #tpu.dot_dimension_numbers<[1], [0], [0], [1], [0, 0, 1, 1], [], []>} : vector<8x64xf32>, vector<64x64xf32>, vector<8x64xf32> -> vector<8x64xf32>
    %261 = arith.addf %255, %260 : vector<8x64xf32>
    %262 = vector.extract_strided_slice %232 {offsets = [1, 2, 0, 0], sizes = [1, 1, 8, 64], strides = [1, 1, 1, 1]} : vector<3x3x8x64xf32> to vector<1x1x8x64xf32>
    %263 = vector.shape_cast %262 : vector<1x1x8x64xf32> to vector<8x64xf32>
    %c1_291 = arith.constant 1 : index
    %c2_292 = arith.constant 2 : index
    %c0_293 = arith.constant 0 : index
    %c0_294 = arith.constant 0 : index
    %264 = vector.load %arg6[%c1_291, %c2_292, %c0_293, %c0_294] : memref<3x3x64x64xf32, #tpu.memory_space<vmem>>, vector<1x1x64x64xf32>
    %265 = vector.shape_cast %264 : vector<1x1x64x64xf32> to vector<64x64xf32>
    %cst_295 = arith.constant dense<0.000000e+00> : vector<8x64xf32>
    %266 = tpu.matmul %263, %265, %cst_295 {dimension_numbers = #tpu.dot_dimension_numbers<[1], [0], [0], [1], [0, 0, 1, 1], [], []>} : vector<8x64xf32>, vector<64x64xf32>, vector<8x64xf32> -> vector<8x64xf32>
    %267 = arith.addf %261, %266 : vector<8x64xf32>
    %268 = vector.extract_strided_slice %232 {offsets = [2, 0, 0, 0], sizes = [1, 1, 8, 64], strides = [1, 1, 1, 1]} : vector<3x3x8x64xf32> to vector<1x1x8x64xf32>
    %269 = vector.shape_cast %268 : vector<1x1x8x64xf32> to vector<8x64xf32>
    %c2_296 = arith.constant 2 : index
    %c0_297 = arith.constant 0 : index
    %c0_298 = arith.constant 0 : index
    %c0_299 = arith.constant 0 : index
    %270 = vector.load %arg6[%c2_296, %c0_297, %c0_298, %c0_299] : memref<3x3x64x64xf32, #tpu.memory_space<vmem>>, vector<1x1x64x64xf32>
    %271 = vector.shape_cast %270 : vector<1x1x64x64xf32> to vector<64x64xf32>
    %cst_300 = arith.constant dense<0.000000e+00> : vector<8x64xf32>
    %272 = tpu.matmul %269, %271, %cst_300 {dimension_numbers = #tpu.dot_dimension_numbers<[1], [0], [0], [1], [0, 0, 1, 1], [], []>} : vector<8x64xf32>, vector<64x64xf32>, vector<8x64xf32> -> vector<8x64xf32>
    %273 = arith.addf %267, %272 : vector<8x64xf32>
    %274 = vector.extract_strided_slice %232 {offsets = [2, 1, 0, 0], sizes = [1, 1, 8, 64], strides = [1, 1, 1, 1]} : vector<3x3x8x64xf32> to vector<1x1x8x64xf32>
    %275 = vector.shape_cast %274 : vector<1x1x8x64xf32> to vector<8x64xf32>
    %c2_301 = arith.constant 2 : index
    %c1_302 = arith.constant 1 : index
    %c0_303 = arith.constant 0 : index
    %c0_304 = arith.constant 0 : index
    %276 = vector.load %arg6[%c2_301, %c1_302, %c0_303, %c0_304] : memref<3x3x64x64xf32, #tpu.memory_space<vmem>>, vector<1x1x64x64xf32>
    %277 = vector.shape_cast %276 : vector<1x1x64x64xf32> to vector<64x64xf32>
    %cst_305 = arith.constant dense<0.000000e+00> : vector<8x64xf32>
    %278 = tpu.matmul %275, %277, %cst_305 {dimension_numbers = #tpu.dot_dimension_numbers<[1], [0], [0], [1], [0, 0, 1, 1], [], []>} : vector<8x64xf32>, vector<64x64xf32>, vector<8x64xf32> -> vector<8x64xf32>
    %279 = arith.addf %273, %278 : vector<8x64xf32>
    %280 = vector.extract_strided_slice %232 {offsets = [2, 2, 0, 0], sizes = [1, 1, 8, 64], strides = [1, 1, 1, 1]} : vector<3x3x8x64xf32> to vector<1x1x8x64xf32>
    %281 = vector.shape_cast %280 : vector<1x1x8x64xf32> to vector<8x64xf32>
    %c2_306 = arith.constant 2 : index
    %c2_307 = arith.constant 2 : index
    %c0_308 = arith.constant 0 : index
    %c0_309 = arith.constant 0 : index
    %282 = vector.load %arg6[%c2_306, %c2_307, %c0_308, %c0_309] : memref<3x3x64x64xf32, #tpu.memory_space<vmem>>, vector<1x1x64x64xf32>
    %283 = vector.shape_cast %282 : vector<1x1x64x64xf32> to vector<64x64xf32>
    %cst_310 = arith.constant dense<0.000000e+00> : vector<8x64xf32>
    %284 = tpu.matmul %281, %283, %cst_310 {dimension_numbers = #tpu.dot_dimension_numbers<[1], [0], [0], [1], [0, 0, 1, 1], [], []>} : vector<8x64xf32>, vector<64x64xf32>, vector<8x64xf32> -> vector<8x64xf32>
    %285 = arith.addf %279, %284 : vector<8x64xf32>
    %c0_311 = arith.constant 0 : index
    %c0_312 = arith.constant 0 : index
    %286 = vector.load %arg7[%c0_311, %c0_312] : memref<1x64xf32, #tpu.memory_space<vmem>>, vector<1x64xf32>
    %287 = vector.broadcast %286 : vector<1x64xf32> to vector<8x64xf32>
    %288 = arith.addf %285, %287 : vector<8x64xf32>
    %cst_313 = arith.constant 0.000000e+00 : f32
    %289 = vector.broadcast %cst_313 : f32 to vector<8x64xf32>
    %290 = arith.maximumf %288, %289 : vector<8x64xf32>
    %291 = vector.shape_cast %290 : vector<8x64xf32> to vector<1x1x8x64xf32>
    %292 = vector.shape_cast %291 : vector<1x1x8x64xf32> to vector<8x64xf32>
    %c0_314 = arith.constant 0 : index
    %c0_315 = arith.constant 0 : index
    %c0_316 = arith.constant 0 : index
    %c0_317 = arith.constant 0 : index
    %293 = vector.load %arg8[%c0_314, %c0_315, %c0_316, %c0_317] : memref<1x1x64x512xf32, #tpu.memory_space<vmem>>, vector<1x1x64x512xf32>
    %294 = vector.shape_cast %293 : vector<1x1x64x512xf32> to vector<64x512xf32>
    %cst_318 = arith.constant dense<0.000000e+00> : vector<8x512xf32>
    %295 = tpu.matmul %292, %294, %cst_318 {dimension_numbers = #tpu.dot_dimension_numbers<[1], [0], [0], [1], [0, 0, 1, 1], [], []>} : vector<8x64xf32>, vector<64x512xf32>, vector<8x512xf32> -> vector<8x512xf32>
    %c0_319 = arith.constant 0 : index
    %c0_320 = arith.constant 0 : index
    %296 = vector.load %arg9[%c0_319, %c0_320] : memref<1x512xf32, #tpu.memory_space<vmem>>, vector<1x512xf32>
    %297 = vector.broadcast %296 : vector<1x512xf32> to vector<8x512xf32>
    %298 = arith.addf %295, %297 : vector<8x512xf32>
    %cst_321 = arith.constant 0.000000e+00 : f32
    %299 = vector.broadcast %cst_321 : f32 to vector<8x512xf32>
    %300 = arith.maximumf %298, %299 : vector<8x512xf32>
    %c0_322 = arith.constant 0 : index
    %c0_323 = arith.constant 0 : index
    %301 = vector.load %arg10[%c0_322, %c0_323] : memref<512x1xf32, #tpu.memory_space<vmem>>, vector<512x1xf32>
    %cst_324 = arith.constant dense<0.000000e+00> : vector<8x1xf32>
    %302 = tpu.matmul %300, %301, %cst_324 {dimension_numbers = #tpu.dot_dimension_numbers<[1], [0], [0], [1], [0, 0, 1, 1], [], []>} : vector<8x512xf32>, vector<512x1xf32>, vector<8x1xf32> -> vector<8x1xf32>
    %c0_325 = arith.constant 0 : index
    %c0_326 = arith.constant 0 : index
    %303 = vector.load %arg11[%c0_325, %c0_326] : memref<1x1xf32, #tpu.memory_space<vmem>>, vector<1x1xf32>
    %304 = vector.broadcast %303 : vector<1x1xf32> to vector<8x1xf32>
    %305 = arith.addf %302, %304 : vector<8x1xf32>
    %306 = vector.shape_cast %305 : vector<8x1xf32> to vector<8x1xf32>
    %307 = vector.broadcast %306 : vector<8x1xf32> to vector<8x128xf32>
    %c0_327 = arith.constant 0 : index
    %c0_328 = arith.constant 0 : index
    %308 = vector.load %arg12[%c0_327, %c0_328] : memref<8x128xf32, #tpu.memory_space<vmem>>, vector<8x128xf32>
    tpu.vector_store %arg12[%c0_327, %c0_328], %307 {strides = array<i32>} : memref<8x128xf32, #tpu.memory_space<vmem>>, vector<8x128xf32>,
    return
  }
  func.func @transform_0(%arg0: i32) -> (i32, i32, i32, i32, i32, i32) {
    %c0_i32 = arith.constant 0 : i32
    %c0_i32_0 = arith.constant 0 : i32
    %c0_i32_1 = arith.constant 0 : i32
    %c0_i32_2 = arith.constant 0 : i32
    %c0_i32_3 = arith.constant 0 : i32
    %c0_i32_4 = arith.constant 0 : i32
    return %c0_i32, %c0_i32_0, %c0_i32_1, %c0_i32_2, %arg0, %c0_i32_3 : i32, i32, i32, i32, i32, i32
  }
  func.func @transform_1(%arg0: i32) -> (i32, i32, i32, i32) {
    %c0_i32 = arith.constant 0 : i32
    %c0_i32_0 = arith.constant 0 : i32
    %c0_i32_1 = arith.constant 0 : i32
    %c0_i32_2 = arith.constant 0 : i32
    %c0_i32_3 = arith.constant 0 : i32
    return %c0_i32, %c0_i32_0, %c0_i32_1, %c0_i32_2 : i32, i32, i32, i32
  }
  func.func @transform_2(%arg0: i32) -> (i32, i32) {
    %c0_i32 = arith.constant 0 : i32
    %c0_i32_0 = arith.constant 0 : i32
    %c0_i32_1 = arith.constant 0 : i32
    return %c0_i32, %c0_i32_0 : i32, i32
  }
  func.func @transform_3(%arg0: i32) -> (i32, i32, i32, i32) {
    %c0_i32 = arith.constant 0 : i32
    %c0_i32_0 = arith.constant 0 : i32
    %c0_i32_1 = arith.constant 0 : i32
    %c0_i32_2 = arith.constant 0 : i32
    %c0_i32_3 = arith.constant 0 : i32
    return %c0_i32, %c0_i32_0, %c0_i32_1, %c0_i32_2 : i32, i32, i32, i32
  }
  func.func @transform_4(%arg0: i32) -> (i32, i32) {
    %c0_i32 = arith.constant 0 : i32
    %c0_i32_0 = arith.constant 0 : i32
    %c0_i32_1 = arith.constant 0 : i32
    return %c0_i32, %c0_i32_0 : i32, i32
  }
  func.func @transform_5(%arg0: i32) -> (i32, i32, i32, i32) {
    %c0_i32 = arith.constant 0 : i32
    %c0_i32_0 = arith.constant 0 : i32
    %c0_i32_1 = arith.constant 0 : i32
    %c0_i32_2 = arith.constant 0 : i32
    %c0_i32_3 = arith.constant 0 : i32
    return %c0_i32, %c0_i32_0, %c0_i32_1, %c0_i32_2 : i32, i32, i32, i32
  }
  func.func @transform_6(%arg0: i32) -> (i32, i32) {
    %c0_i32 = arith.constant 0 : i32
    %c0_i32_0 = arith.constant 0 : i32
    %c0_i32_1 = arith.constant 0 : i32
    return %c0_i32, %c0_i32_0 : i32, i32
  }
  func.func @transform_7(%arg0: i32) -> (i32, i32, i32, i32) {
    %c0_i32 = arith.constant 0 : i32
    %c0_i32_0 = arith.constant 0 : i32
    %c0_i32_1 = arith.constant 0 : i32
    %c0_i32_2 = arith.constant 0 : i32
    %c0_i32_3 = arith.constant 0 : i32
    return %c0_i32, %c0_i32_0, %c0_i32_1, %c0_i32_2 : i32, i32, i32, i32
  }
  func.func @transform_8(%arg0: i32) -> (i32, i32) {
    %c0_i32 = arith.constant 0 : i32
    %c0_i32_0 = arith.constant 0 : i32
    %c0_i32_1 = arith.constant 0 : i32
    return %c0_i32, %c0_i32_0 : i32, i32
  }
  func.func @transform_9(%arg0: i32) -> (i32, i32) {
    %c0_i32 = arith.constant 0 : i32
    %c0_i32_0 = arith.constant 0 : i32
    %c0_i32_1 = arith.constant 0 : i32
    return %c0_i32, %c0_i32_0 : i32, i32
  }
  func.func @transform_10(%arg0: i32) -> (i32, i32) {
    %c0_i32 = arith.constant 0 : i32
    %c0_i32_0 = arith.constant 0 : i32
    %c0_i32_1 = arith.constant 0 : i32
    return %c0_i32, %c0_i32_0 : i32, i32
  }
  func.func @transform_11(%arg0: i32) -> (i32, i32) {
    %c0_i32 = arith.constant 0 : i32
    %c0_i32_0 = arith.constant 0 : i32
    return %arg0, %c0_i32 : i32, i32
  }
}

</mosaic_0001>

<bundles_post_ra>
// kernel: value_net_forward.1
= control target key start
LH: loop header
LB: loop body
LE: loop exit
PB: predicated region body
PF: predicated region fallthrough
CT: control target
= control target key end

     0   :  { %vm90_vm0 = vcmask 523264   ;;  %vm10167_vm1 = vmmov 0   ;;  %vm3252_vm2 = vcmask 261120   ;;  %s13220_s1 = inlined_call_operand.vmem [shape: f32[2,2,64,32], index: 1, kind: input, shape index: {}]   ;;  %s13221_s0 = inlined_call_operand.vmem [shape: f32[2,2,5,5,8,64], index: 0, kind: input, shape index: {}]   ;;  %s13222_s3 = inlined_call_operand.vmem [shape: f32[4,4,32,64], index: 3, kind: input, shape index: {}]   ;;  %s13223_s2 = inlined_call_operand.vmem [shape: f32[1,32], index: 2, kind: input, shape index: {}]   ;;  %s13224_s5 = inlined_call_operand.vmem [shape: f32[3,3,64,64], index: 5, kind: input, shape index: {}]   ;;  %s13225_s4 = inlined_call_operand.vmem [shape: f32[1,64], index: 4, kind: input, shape index: {}]   ;;  %s13226_s7 = inlined_call_operand.vmem [shape: f32[1,1,64,512], index: 7, kind: input, shape index: {}]   ;;  %s13227_s9 = inlined_call_operand.vmem [shape: f32[512,1], index: 9, kind: input, shape index: {}]   ;;  %s13228_s6 = inlined_call_operand.vmem [shape: f32[1,64], index: 6, kind: input, shape index: {}]   ;;  %s13229_s8 = inlined_call_operand.vmem [shape: f32[1,512], index: 8, kind: input, shape index: {}]   ;;  %s13230_s10 = inlined_call_operand.<no memory space> [shape: f32[1,1], index: 10, kind: input, shape index: {}]   ;;  %s13231_s11 = inlined_call_operand.vmem [shape: f32[8,128], index: 11, kind: output, shape index: {}]  }
   0x1   :  { %v6619_v0 = vld [vmem:[%s13220_s1 + $0x40] sm:$0xff]  ;;  %v6620_v1 = vld [vmem:[%s13220_s1 + $0x48] sm:$0xff]  ;;  %v6621_v2 = vld [vmem:[%s13220_s1 + $0x50] sm:$0xff] }
   0x2   :  { %v10239_v3 = vpack.c.bf16 %v6620_v1, %v6619_v0  ;;  %v6622_v4 = vld [vmem:[%s13220_s1 + $0x58] sm:$0xff]  ;;  %v6623_v6 = vld [vmem:[%s13220_s1 + $0x60] sm:$0xff]  ;;  %v6624_v7 = vld [vmem:[%s13220_s1 + $0x68] sm:$0xff] }
   0x3   :  { %v10244_v5 = vpack.c.bf16 %v6622_v4, %v6621_v2  ;;  %v10257_v8 = vld [vmem:[%s13221_s0 + $0xc8] sm:$0xff]  ;;  %v10268_v10 = vpack.c.bf16 %v6624_v7, %v6623_v6  ;;  %v6625_v11 = vld [vmem:[%s13220_s1 + $0x70] sm:$0xff]  ;;  %v6626_v12 = vld [vmem:[%s13220_s1 + $0x78] sm:$0xff] }
   0x4   :  { %9409 = vmatprep.subr.bf16.mxu0 %v10239_v3  ;;  %9473 = vmatprep.subr.bf16.mxu1 %v10239_v3  ;;  %v10262_v9 = vld [vmem:[%s13221_s0 + $0x8] sm:$0xff]  ;;  %v10284_v13 = vpack.c.bf16 %v6626_v12, %v6625_v11  ;;  %v56_v14 = vld [vmem:[%s13220_s1] sm:$0xff]  ;;  %v58_v17 = vld [vmem:[%s13220_s1 + $0x10] sm:$0xff] }
   0x5   :  { %9411 = vmatpush3.bf16.msra.mxu0 %v10239_v3  ;;  %9475 = vmatpush3.bf16.msra.mxu1 %v10239_v3  ;;  %v57_v15 = vld [vmem:[%s13220_s1 + $0x8] sm:$0xff]  ;;  %v59_v18 = vld [vmem:[%s13220_s1 + $0x18] sm:$0xff]  ;;  %v10309_v19 = vld [vmem:[%s13221_s0 + $0xd0] sm:$0xff] }
   0x6   :  { %9413 = vmatprep.subr.bf16.mxu0 %v10244_v5  ;;  %9477 = vmatprep.subr.bf16.mxu1 %v10244_v5  ;;  %v10296_v16 = vpack.c.bf16 %v57_v15, %v56_v14  ;;  %v10314_v20 = vld [vmem:[%s13221_s0 + $0x10] sm:$0xff]  ;;  %v10320_v21 = vld [vmem:[%s13221_s0 + $0xd8] sm:$0xff]  ;;  %v10322_v22 = vpack.c.bf16 %v59_v18, %v58_v17  ;;  %v60_v24 = vld [vmem:[%s13220_s1 + $0x20] sm:$0xff] }
   0x7   :  { %8053 = vmatprep.mubr.msk.f32.mxu0 %vm90_vm0, %v10257_v8  ;;  %8213 = vmatprep.mubr.msk.f32.mxu1 %vm90_vm0, %v10262_v9  ;;  %v10328_v23 = vld [vmem:[%s13221_s0 + $0x18] sm:$0xff]  ;;  %v61_v25 = vld [vmem:[%s13220_s1 + $0x28] sm:$0xff]  ;;  %v10346_v26 = vld [vmem:[%s13221_s0 + $0xe0] sm:$0xff] }
   0x8   :  { %v6743_v27 = vld [vmem:[%s13221_s0 + $0x20] sm:$0xff]  ;;  %v10356_v28 = vld [vmem:[%s13221_s0 + $0xf0] sm:$0xff]  ;;  %v10364_v30 = vpack.c.bf16 %v61_v25, %v60_v24  ;;  %v63_v32 = vld [vmem:[%s13220_s1 + $0x38] sm:$0xff] }
   0x9   :  { %9415 = vmatpush3.bf16.msra.mxu0 %v10244_v5  ;;  %9479 = vmatpush3.bf16.msra.mxu1 %v10244_v5  ;;  %v10361_v29 = vld [vmem:[%s13221_s0 + $0x30] sm:$0xff]  ;;  %v10383_v33 = vld [vmem:[%s13221_s0 + $0xf8] sm:$0xff]  ;;  %v10394_v35 = vld [vmem:[%s13221_s0 + $0x100] sm:$0xff] }
   0xa   :  { %9417 = vmatprep.subr.bf16.mxu0 %v10268_v10  ;;  %9481 = vmatprep.subr.bf16.mxu1 %v10268_v10  ;;  %v62_v31 = vld [vmem:[%s13220_s1 + $0x30] sm:$0xff]  ;;  %v10388_v34 = vld [vmem:[%s13221_s0 + $0x38] sm:$0xff]  ;;  %v10399_v36 = vld [vmem:[%s13221_s0 + $0x40] sm:$0xff] }
   0xb   :  { %v10404_v37 = vpack.c.bf16 %v63_v32, %v62_v31  ;;  %v6675_v38 = vld [vmem:[%s13220_s1 + $0x80] sm:$0xff]  ;;  %v6676_v39 = vld [vmem:[%s13220_s1 + $0x88] sm:$0xff]  ;;  %v10433_v42 = vld [vmem:[%s13221_s0 + $0x118] sm:$0xff] }
   0xc   :  { %v10423_v40 = vld [vmem:[%s13221_s0 + $0x108] sm:$0xff]  ;;  %v10438_v43 = vld [vmem:[%s13221_s0 + $0x58] sm:$0xff]  ;;  %v10444_v44 = vpack.c.bf16 %v6676_v39, %v6675_v38  ;;  %v10457_v45 = vld [vmem:[%s13221_s0 + $0x120] sm:$0xff] }
   0xd   :  { %9419 = vmatpush3.bf16.msra.mxu0 %v10268_v10  ;;  %9483 = vmatpush3.bf16.msra.mxu1 %v10268_v10  ;;  %v10428_v41 = vld [vmem:[%s13221_s0 + $0x48] sm:$0xff]  ;;  %v10462_v46 = vld [vmem:[%s13221_s0 + $0x60] sm:$0xff]  ;;  %v10489_v49 = vld [vmem:[%s13221_s0 + $0x130] sm:$0xff] }
   0xe   :  { %9421 = vmatprep.subr.bf16.mxu0 %v10284_v13  ;;  %9485 = vmatprep.subr.bf16.mxu1 %v10284_v13  ;;  %13252 = vst [vmem:[#allocation3_spill] sm:$0xff] %v10428_v41  ;;  %v10467_v47 = vld [vmem:[%s13221_s0 + $0x128] sm:$0xff]  ;;  %13253 = vst [vmem:[#allocation4_spill] sm:$0xff] %v10489_v49  ;;  %v10494_v50 = vld [vmem:[%s13221_s0 + $0x70] sm:$0xff] }
   0xf   :  { %v10472_v48 = vld [vmem:[%s13221_s0 + $0x68] sm:$0xff]  ;;  %13254 = vst [vmem:[#allocation5_spill] sm:$0xff] %v10494_v50  ;;  %v10499_v51 = vld [vmem:[%s13221_s0 + $0x140] sm:$0xff]  ;;  %v10528_v55 = vld [vmem:[%s13221_s0 + $0x150] sm:$0xff] }
  0x10   :  { %13255 = vst [vmem:[#allocation6_spill] sm:$0xff] %v10499_v51  ;;  %v10504_v52 = vld [vmem:[%s13221_s0 + $0x80] sm:$0xff]  ;;  %v10518_v53 = vld [vmem:[%s13221_s0 + $0x148] sm:$0xff]  ;;  %13259 = vst [vmem:[#allocation10_spill] sm:$0xff] %v10528_v55 }
  0x11   :  { %9423 = vmatpush3.bf16.msra.mxu0 %v10284_v13  ;;  %9487 = vmatpush3.bf16.msra.mxu1 %v10284_v13  ;;  %13256 = vst [vmem:[#allocation7_spill] sm:$0xff] %v10504_v52  ;;  %13257 = vst [vmem:[#allocation8_spill] sm:$0xff] %v10518_v53  ;;  %v10523_v54 = vld [vmem:[%s13221_s0 + $0x88] sm:$0xff]  ;;  %v10533_v56 = vld [vmem:[%s13221_s0 + $0x90] sm:$0xff] }
  0x12   :  { %9425 = vmatprep.subr.bf16.mxu0 %v10296_v16  ;;  %9489 = vmatprep.subr.bf16.mxu1 %v10296_v16  ;;  %13258 = vst [vmem:[#allocation9_spill] sm:$0xff] %v10523_v54  ;;  %13260 = vst [vmem:[#allocation11_spill] sm:$0xff] %v10533_v56  ;;  %v10546_v57 = vld [vmem:[%s13221_s0 + $0x158] sm:$0xff]  ;;  %v40_v59 = vld [vmem:[%s13221_s0] sm:$0xff] }
  0x13   :  { %13261 = vst [vmem:[#allocation12_spill] sm:$0xff] %v10546_v57  ;;  %v10551_v58 = vld [vmem:[%s13221_s0 + $0x98] sm:$0xff]  ;;  %v6677_v60 = vld [vmem:[%s13220_s1 + $0x90] sm:$0xff]  ;;  %v6679_v63 = vld [vmem:[%s13220_s1 + $0xa0] sm:$0xff] }
  0x14   :  { %8054 = vmatmul.mubr.msk.f32.vlgmr.msra.gmra.mrb[0].mxu0 %vm90_vm0, %v10309_v19  ;;  %8214 = vmatmul.mubr.msk.f32.vlgmr.msra.gmra.mrb[0].mxu1 %vm90_vm0, %v10314_v20  ;;  %13262 = vst [vmem:[#allocation13_spill] sm:$0xff] %v10551_v58  ;;  %v6678_v61 = vld [vmem:[%s13220_s1 + $0x98] sm:$0xff]  ;;  %v6680_v0 = vld [vmem:[%s13220_s1 + $0xa8] sm:$0xff]  ;;  %v6681_v4 = vld [vmem:[%s13220_s1 + $0xb0] sm:$0xff] }
  0x15   :  { %9427 = vmatpush3.bf16.msra.mxu0 %v10296_v16  ;;  %8056 = vmatprep.mubr.msk.f32.mxu0 %vm90_vm0, %v10320_v21  ;;  %v10569_v62 = vpack.c.bf16 %v6678_v61, %v6677_v60  ;;  %v10589_v1 = vld [vmem:[%s13221_s0 + $0x28] sm:$0xff]  ;;  %v10592_v2 = vpack.c.bf16 %v6680_v0, %v6679_v63  ;;  %v6682_v6 = vld [vmem:[%s13220_s1 + $0xb8] sm:$0xff]  ;;  %v10632_v11 = vld [vmem:[%s13221_s0 + $0x50] sm:$0xff] }
  0x16   :  { %8216 = vmatprep.mubr.msk.f32.mxu1 %vm90_vm0, %v10328_v23  ;;  %9429 = vmatprep.subr.bf16.mxu0 %v10322_v22  ;;  %v10613_v7 = vpack.c.bf16 %v6682_v6, %v6681_v4  ;;  %v10663_v14 = vld [vmem:[%s13221_s0 + $0x78] sm:$0xff]  ;;  %v10685_v15 = vld [vmem:[%s13221_s0 + $0x190] sm:$0xff]  ;;  %v10726_v25 = vld [vmem:[%s13221_s0 + $0x268] sm:$0xff] }
  0x17   :  { %9491 = vmatpush3.bf16.msra.mxu1 %v10296_v16  ;;  %13263 = vst [vmem:[#allocation14_spill] sm:$0xff] %v10663_v14  ;;  %v10690_v17 = vld [vmem:[%s13221_s0 + $0x258] sm:$0xff]  ;;  %v6717_v18 = vld [vmem:[%s13220_s1 + $0xd0] sm:$0xff]  ;;  %v10744_v31 = vld [vmem:[%s13221_s0 + $0x1a8] sm:$0xff] }
  0x18   :  { %8057 = vmatmul.mubr.msk.f32.gmra.mrb[2].mxu0 %vm90_vm0, %v10346_v26  ;;  %8217 = vmatmul.mubr.msk.f32.gmra.mrb[2].mxu1 %vm90_vm0, %v6743_v27  ;;  %v6720_v27 = vld [vmem:[%s13220_s1 + $0xe8] sm:$0xff]  ;;  %v10749_v32 = vld [vmem:[%s13221_s0 + $0x270] sm:$0xff]  ;;  %v10756_v38 = vld [vmem:[%s13221_s0 + $0x1b8] sm:$0xff] }
  0x19   :  { %8059 = vmatprep.mubr.msk.f32.mxu0 %vm90_vm0, %v10356_v28  ;;  %8219 = vmatprep.mubr.msk.f32.mxu1 %vm90_vm0, %v10361_v29  ;;  %v10761_v39 = vld [vmem:[%s13221_s0 + $0x280] sm:$0xff]  ;;  %v6721_v60 = vld [vmem:[%s13220_s1 + $0xf0] sm:$0xff]  ;;  %v6722_v61 = vld [vmem:[%s13220_s1 + $0xf8] sm:$0xff] }
  0x1a   :  { %9431 = vmatpush3.bf16.msra.mxu0 %v10322_v22  ;;  %9493 = vmatprep.subr.bf16.mxu1 %v10322_v22  ;;  %v10784_v63 = vld [vmem:[%s13221_s0 + $0x1c0] sm:$0xff]  ;;  %v10789_v0 = vld [vmem:[%s13221_s0 + $0x288] sm:$0xff]  ;;  %v10800_v6 = vld [vmem:[%s13221_s0 + $0x290] sm:$0xff] }
  0x1b   :  { %9433 = vmatprep.subr.bf16.mxu0 %v10364_v30  ;;  %9495 = vmatpush3.bf16.msra.mxu1 %v10322_v22  ;;  %v10795_v4 = vld [vmem:[%s13221_s0 + $0x1c8] sm:$0xff] }
  0x1c   :  { %8060 = vmatmul.mubr.msk.f32.gmra.mrb[4].mxu0 %vm90_vm0, %v10383_v33  ;;  %8220 = vmatmul.mubr.msk.f32.gmra.mrb[4].mxu1 %vm90_vm0, %v10388_v34 }
  0x1d   :  { %8062 = vmatprep.mubr.msk.f32.mxu0 %vm90_vm0, %v10394_v35  ;;  %8222 = vmatprep.mubr.msk.f32.mxu1 %vm90_vm0, %v10399_v36 }
  0x1e   :  { %9435 = vmatpush3.bf16.msra.mxu0 %v10364_v30  ;;  %9497 = vmatprep.subr.bf16.mxu1 %v10364_v30 }
  0x1f   :  { %9437 = vmatprep.subr.bf16.mxu0 %v10404_v37  ;;  %9499 = vmatpush3.bf16.msra.mxu1 %v10364_v30 }
  0x20   :  { %8063 = vmatmul.mubr.msk.f32.gmra.mrb[6].mxu0 %vm90_vm0, %v10423_v40  ;;  %8223 = vmatmul.mubr.msk.f32.gmra.mrb[6].mxu1 %vm90_vm0, %v10428_v41  ;;  %v10887_v41 = vld [vmem:[%s13221_s0 + $0x2c0] sm:$0xff] }
  0x21   :  { %8065 = vmatprep.mubr.msk.f32.mxu0 %vm90_vm0, %v10433_v42  ;;  %8225 = vmatprep.mubr.msk.f32.mxu1 %vm90_vm0, %v10438_v43 }
  0x22   :  { %9439 = vmatpush3.bf16.msra.mxu0 %v10404_v37  ;;  %9501 = vmatprep.subr.bf16.mxu1 %v10404_v37 }
  0x23   :  { %9503 = vmatpush3.bf16.msra.mxu1 %v10404_v37  ;;  %9441 = vmatprep.subr.bf16.mxu0 %v10444_v44 }
  0x24   :  { %8066 = vmatmul.mubr.msk.f32.gmra.mrb[8].mxu0 %vm90_vm0, %v10457_v45  ;;  %8226 = vmatmul.mubr.msk.f32.gmra.mrb[8].mxu1 %vm90_vm0, %v10462_v46 }
  0x25   :  { %8068 = vmatprep.mubr.msk.f32.mxu0 %vm90_vm0, %v10467_v47  ;;  %8228 = vmatprep.mubr.msk.f32.mxu1 %vm90_vm0, %v10472_v48 }
  0x26   :  { %9505 = vmatprep.subr.bf16.mxu1 %v10444_v44 }
  0x28   :  { %8069 = vmatmul.mubr.msk.f32.gmra.mrb[10].mxu0 %vm90_vm0, %v10489_v49  ;;  %8229 = vmatmul.mubr.msk.f32.gmra.mrb[10].mxu1 %vm90_vm0, %v10494_v50  ;;  %v10882_v50 = vld [vmem:[%s13221_s0 + $0x1f8] sm:$0xff] }
  0x29   :  { %8071 = vmatprep.mubr.msk.f32.mxu0 %vm90_vm0, %v10499_v51  ;;  %8231 = vmatprep.mubr.msk.f32.mxu1 %vm90_vm0, %v10504_v52 }
  0x2c   :  { %8072 = vmatmul.mubr.msk.f32.gmra.mrb[12].mxu0 %vm90_vm0, %v10518_v53  ;;  %8232 = vmatmul.mubr.msk.f32.gmra.mrb[12].mxu1 %vm90_vm0, %v10523_v54 }
  0x2d   :  { %8074 = vmatprep.mubr.msk.f32.mxu0 %vm90_vm0, %v10528_v55  ;;  %8234 = vmatprep.mubr.msk.f32.mxu1 %vm90_vm0, %v10533_v56 }
  0x30   :  { %8075 = vmatmul.mubr.msk.f32.gmra.mrb[14].mxu0 %vm90_vm0, %v10546_v57  ;;  %8235 = vmatmul.mubr.msk.f32.gmra.mrb[14].mxu1 %vm90_vm0, %v10551_v58  ;;  %v10865_v58 = vld [vmem:[%s13221_s0 + $0x2b8] sm:$0xff] }
  0x31   :  { %8093 = vmatprep.mubr.msk.f32.mxu0 %vm90_vm0, %v40_v59  ;;  %8253 = vmatprep.mubr.msk.f32.mxu1 %vm90_vm0, %v10257_v8  ;;  %v6715_v8 = vld [vmem:[%s13220_s1 + $0xc0] sm:$0xff] }
  0x34   :  { %8094 = vmatmul.mubr.msk.f32.vlgmr.msra.gmra.mrb[0].mxu0 %vm90_vm0, %v10262_v9  ;;  %8254 = vmatmul.mubr.msk.f32.vlgmr.msra.gmra.mrb[0].mxu1 %vm90_vm0, %v10309_v19  ;;  %v6716_v9 = vld [vmem:[%s13220_s1 + $0xc8] sm:$0xff]  ;;  %v6718_v19 = vld [vmem:[%s13220_s1 + $0xd8] sm:$0xff] }
  0x35   :  { %9443 = vmatpush3.bf16.msra.mxu0 %v10444_v44  ;;  %8096 = vmatprep.mubr.msk.f32.mxu0 %vm90_vm0, %v10314_v20  ;;  %v10638_v12 = vpack.c.bf16 %v6716_v9, %v6715_v8  ;;  %v10709_v20 = vld [vmem:[%s13221_s0 + $0x198] sm:$0xff]  ;;  %v10721_v24 = vpack.c.bf16 %v6718_v19, %v6717_v18  ;;  %v10805_v8 = vpack.c.bf16 %v6722_v61, %v6721_v60  ;;  %v10818_v9 = vld [vmem:[%s13221_s0 + $0x1d0] sm:$0xff]  ;;  %v10828_v19 = vld [vmem:[%s13221_s0 + $0x1e0] sm:$0xff] }
  0x36   :  { %8256 = vmatprep.mubr.msk.f32.mxu1 %vm90_vm0, %v10320_v21  ;;  %9445 = vmatprep.subr.bf16.mxu0 %v10569_v62  ;;  %v10714_v21 = vld [vmem:[%s13221_s0 + $0x260] sm:$0xff]  ;;  %v10823_v18 = vld [vmem:[%s13221_s0 + $0x298] sm:$0xff]  ;;  %v10855_v60 = vld [vmem:[%s13221_s0 + $0x2b0] sm:$0xff] }
  0x37   :  { %9507 = vmatpush3.bf16.msra.mxu1 %v10444_v44  ;;  %v10860_v61 = vld [vmem:[%s13221_s0 + $0x1f0] sm:$0xff] }
  0x38   :  { %8097 = vmatmul.mubr.msk.f32.gmra.mrb[2].mxu0 %vm90_vm0, %v10328_v23  ;;  %8257 = vmatmul.mubr.msk.f32.gmra.mrb[2].mxu1 %vm90_vm0, %v10346_v26  ;;  %v10719_v23 = vld [vmem:[%s13221_s0 + $0x1a0] sm:$0xff] }
  0x39   :  { %8099 = vmatprep.mubr.msk.f32.mxu0 %vm90_vm0, %v10589_v1  ;;  %8259 = vmatprep.mubr.msk.f32.mxu1 %vm90_vm0, %v10356_v28  ;;  %v6719_v26 = vld [vmem:[%s13220_s1 + $0xe0] sm:$0xff] }
  0x3a   :  { %9447 = vmatpush3.bf16.msra.mxu0 %v10569_v62  ;;  %9509 = vmatprep.subr.bf16.mxu1 %v10569_v62  ;;  %v10764_v59 = vpack.c.bf16 %v6720_v27, %v6719_v26  ;;  %v10833_v26 = vld [vmem:[%s13221_s0 + $0x2a8] sm:$0xff] }
  0x3b   :  { %9449 = vmatprep.subr.bf16.mxu0 %v10592_v2  ;;  %9511 = vmatpush3.bf16.msra.mxu1 %v10569_v62  ;;  %v10850_v27 = vld [vmem:[%s13221_s0 + $0x1e8] sm:$0xff] }
  0x3c   :  { %8100 = vmatmul.mubr.msk.f32.gmra.mrb[4].mxu0 %vm90_vm0, %v10361_v29  ;;  %8260 = vmatmul.mubr.msk.f32.gmra.mrb[4].mxu1 %vm90_vm0, %v10383_v33 }
  0x3d   :  { %8102 = vmatprep.mubr.msk.f32.mxu0 %vm90_vm0, %v10388_v34  ;;  %8262 = vmatprep.mubr.msk.f32.mxu1 %vm90_vm0, %v10394_v35 }
  0x3e   :  { %9451 = vmatpush3.bf16.msra.mxu0 %v10592_v2  ;;  %9513 = vmatprep.subr.bf16.mxu1 %v10592_v2 }
  0x3f   :  { %9453 = vmatprep.subr.bf16.mxu0 %v10613_v7  ;;  %9515 = vmatpush3.bf16.msra.mxu1 %v10592_v2 }
  0x40   :  { %8103 = vmatmul.mubr.msk.f32.gmra.mrb[6].mxu0 %vm90_vm0, %v10399_v36  ;;  %8263 = vmatmul.mubr.msk.f32.gmra.mrb[6].mxu1 %vm90_vm0, %v10423_v40 }
  0x41   :  { %8105 = vmatprep.mubr.msk.f32.mxu0 %vm90_vm0, %v10632_v11  ;;  %8265 = vmatprep.mubr.msk.f32.mxu1 %vm90_vm0, %v10433_v42 }
  0x42   :  { %9455 = vmatpush3.bf16.msra.mxu0 %v10613_v7  ;;  %9517 = vmatprep.subr.bf16.mxu1 %v10613_v7 }
  0x43   :  { %9519 = vmatpush3.bf16.msra.mxu1 %v10613_v7  ;;  %9457 = vmatprep.subr.bf16.mxu0 %v10638_v12 }
  0x44   :  { %8106 = vmatmul.mubr.msk.f32.gmra.mrb[8].mxu0 %vm90_vm0, %v10438_v43  ;;  %8266 = vmatmul.mubr.msk.f32.gmra.mrb[8].mxu1 %vm90_vm0, %v10457_v45 }
  0x45   :  { %8108 = vmatprep.mubr.msk.f32.mxu0 %vm90_vm0, %v10462_v46  ;;  %8268 = vmatprep.mubr.msk.f32.mxu1 %vm90_vm0, %v10467_v47 }
  0x46   :  { %9521 = vmatprep.subr.bf16.mxu1 %v10638_v12 }
  0x48   :  { %8109 = vmatmul.mubr.msk.f32.gmra.mrb[10].mxu0 %vm90_vm0, %v10472_v48  ;;  %8269 = vmatmul.mubr.msk.f32.gmra.mrb[10].mxu1 %vm90_vm0, %v10489_v49  ;;  %v6807_v49 = vld [vmem:[%s13221_s0 + $0x1b0] sm:$0xff] }
  0x49   :  { %8111 = vmatprep.mubr.msk.f32.mxu0 %vm90_vm0, %v10663_v14  ;;  %8271 = vmatprep.mubr.msk.f32.mxu1 %vm90_vm0, %v10499_v51  ;;  %v10939_v51 = vld [vmem:[%s13221_s0 + $0x220] sm:$0xff]  ;;  %v10944_v14 = vld [vmem:[%s13221_s0 + $0x2e8] sm:$0xff] }
  0x4c   :  { %8112 = vmatmul.mubr.msk.f32.gmra.mrb[12].mxu0 %vm90_vm0, %v10504_v52  ;;  %8272 = vmatmul.mubr.msk.f32.gmra.mrb[12].mxu1 %vm90_vm0, %v10518_v53  ;;  %v10921_v53 = vld [vmem:[%s13221_s0 + $0x218] sm:$0xff]  ;;  %v10926_v52 = vld [vmem:[%s13221_s0 + $0x2e0] sm:$0xff] }
  0x4d   :  { %8114 = vmatprep.mubr.msk.f32.mxu0 %vm90_vm0, %v10523_v54  ;;  %8274 = vmatprep.mubr.msk.f32.mxu1 %vm90_vm0, %v10528_v55  ;;  %v10911_v55 = vld [vmem:[%s13221_s0 + $0x210] sm:$0xff]  ;;  %v10916_v54 = vld [vmem:[%s13221_s0 + $0x2d8] sm:$0xff] }
  0x50   :  { %8115 = vmatmul.mubr.msk.f32.gmra.mrb[14].mxu0 %vm90_vm0, %v10533_v56  ;;  %8275 = vmatmul.mubr.msk.f32.gmra.mrb[14].mxu1 %vm90_vm0, %v10546_v57  ;;  %v10892_v57 = vld [vmem:[%s13221_s0 + $0x208] sm:$0xff]  ;;  %v10897_v56 = vld [vmem:[%s13221_s0 + $0x2d0] sm:$0xff] }
  0x51   :  { %8133 = vmatprep.mubr.msk.f32.mxu0 %vm90_vm0, %v10685_v15  ;;  %8293 = vmatprep.mubr.msk.f32.mxu1 %vm90_vm0, %v10690_v17 }
  0x54   :  { %8134 = vmatmul.mubr.msk.f32.vlgmr.msra.gmra.mrb[0].mxu0 %vm90_vm0, %v10709_v20  ;;  %8294 = vmatmul.mubr.msk.f32.vlgmr.msra.gmra.mrb[0].mxu1 %vm90_vm0, %v10714_v21 }
  0x55   :  { %9459 = vmatpush3.bf16.msra.mxu0 %v10638_v12  ;;  %8136 = vmatprep.mubr.msk.f32.mxu0 %vm90_vm0, %v10719_v23 }
  0x56   :  { %8296 = vmatprep.mubr.msk.f32.mxu1 %vm90_vm0, %v10726_v25  ;;  %9461 = vmatprep.subr.bf16.mxu0 %v10721_v24 }
  0x57   :  { %9523 = vmatpush3.bf16.msra.mxu1 %v10638_v12 }
  0x58   :  { %8137 = vmatmul.mubr.msk.f32.gmra.mrb[2].mxu0 %vm90_vm0, %v10744_v31  ;;  %8297 = vmatmul.mubr.msk.f32.gmra.mrb[2].mxu1 %vm90_vm0, %v10749_v32 }
  0x59   :  { %8139 = vmatprep.mubr.msk.f32.mxu0 %vm90_vm0, %v10756_v38  ;;  %8299 = vmatprep.mubr.msk.f32.mxu1 %vm90_vm0, %v10761_v39 }
  0x5a   :  { %9463 = vmatpush3.bf16.msra.mxu0 %v10721_v24  ;;  %9525 = vmatprep.subr.bf16.mxu1 %v10721_v24 }
  0x5b   :  { %9465 = vmatprep.subr.bf16.mxu0 %v10764_v59  ;;  %9527 = vmatpush3.bf16.msra.mxu1 %v10721_v24 }
  0x5c   :  { %8140 = vmatmul.mubr.msk.f32.gmra.mrb[4].mxu0 %vm90_vm0, %v10784_v63  ;;  %8300 = vmatmul.mubr.msk.f32.gmra.mrb[4].mxu1 %vm90_vm0, %v10789_v0 }
  0x5d   :  { %8142 = vmatprep.mubr.msk.f32.mxu0 %vm90_vm0, %v10795_v4  ;;  %8302 = vmatprep.mubr.msk.f32.mxu1 %vm90_vm0, %v10800_v6 }
  0x5e   :  { %9467 = vmatpush3.bf16.msra.mxu0 %v10764_v59  ;;  %9529 = vmatprep.subr.bf16.mxu1 %v10764_v59 }
  0x5f   :  { %9469 = vmatprep.subr.bf16.mxu0 %v10805_v8  ;;  %9531 = vmatpush3.bf16.msra.mxu1 %v10764_v59 }
  0x60   :  { %8143 = vmatmul.mubr.msk.f32.gmra.mrb[6].mxu0 %vm90_vm0, %v10818_v9  ;;  %8303 = vmatmul.mubr.msk.f32.gmra.mrb[6].mxu1 %vm90_vm0, %v10823_v18 }
  0x61   :  { %8145 = vmatprep.mubr.msk.f32.mxu0 %vm90_vm0, %v10828_v19  ;;  %8305 = vmatprep.mubr.msk.f32.mxu1 %vm90_vm0, %v10833_v26 }
  0x62   :  { %9471 = vmatpush3.bf16.msra.mxu0 %v10805_v8  ;;  %9533 = vmatprep.subr.bf16.mxu1 %v10805_v8 }
  0x63   :  { %9535 = vmatpush3.bf16.msra.mxu1 %v10805_v8  ;;  %9537 = vmatprep.subr.bf16.mxu0 %v10239_v3 }
  0x64   :  { %8146 = vmatmul.mubr.msk.f32.gmra.mrb[8].mxu0 %vm90_vm0, %v10850_v27  ;;  %8306 = vmatmul.mubr.msk.f32.gmra.mrb[8].mxu1 %vm90_vm0, %v10855_v60 }
  0x65   :  { %8148 = vmatprep.mubr.msk.f32.mxu0 %vm90_vm0, %v10860_v61  ;;  %8308 = vmatprep.mubr.msk.f32.mxu1 %vm90_vm0, %v10865_v58 }
  0x66   :  { %9601 = vmatprep.subr.bf16.mxu1 %v10239_v3 }
  0x68   :  { %8149 = vmatmul.mubr.msk.f32.gmra.mrb[10].mxu0 %vm90_vm0, %v10882_v50  ;;  %8309 = vmatmul.mubr.msk.f32.gmra.mrb[10].mxu1 %vm90_vm0, %v10887_v41 }
  0x69   :  { %8151 = vmatprep.mubr.msk.f32.mxu0 %vm90_vm0, %v10892_v57  ;;  %8311 = vmatprep.mubr.msk.f32.mxu1 %vm90_vm0, %v10897_v56 }
  0x6c   :  { %8152 = vmatmul.mubr.msk.f32.gmra.mrb[12].mxu0 %vm90_vm0, %v10911_v55  ;;  %8312 = vmatmul.mubr.msk.f32.gmra.mrb[12].mxu1 %vm90_vm0, %v10916_v54 }
  0x6d   :  { %8154 = vmatprep.mubr.msk.f32.mxu0 %vm90_vm0, %v10921_v53  ;;  %8314 = vmatprep.mubr.msk.f32.mxu1 %vm90_vm0, %v10926_v52 }
  0x70   :  { %8155 = vmatmul.mubr.msk.f32.gmra.mrb[14].mxu0 %vm90_vm0, %v10939_v51  ;;  %8315 = vmatmul.mubr.msk.f32.gmra.mrb[14].mxu1 %vm90_vm0, %v10944_v14 }
  0x71   :  { %8173 = vmatprep.mubr.msk.f32.mxu0 %vm90_vm0, %v10690_v17  ;;  %8333 = vmatprep.mubr.msk.f32.mxu1 %vm90_vm0, %v10709_v20 }
  0x74   :  { %8174 = vmatmul.mubr.msk.f32.vlgmr.msra.gmra.mrb[0].mxu0 %vm90_vm0, %v10714_v21  ;;  %8334 = vmatmul.mubr.msk.f32.vlgmr.msra.gmra.mrb[0].mxu1 %vm90_vm0, %v10719_v23 }
  0x75   :  { %8176 = vmatprep.mubr.msk.f32.mxu0 %vm90_vm0, %v10726_v25  ;;  %8336 = vmatprep.mubr.msk.f32.mxu1 %vm90_vm0, %v10744_v31 }
  0x76   :  { %9539 = vmatpush3.bf16.msra.mxu0 %v10239_v3  ;;  %9603 = vmatpush3.bf16.msra.mxu1 %v10239_v3  ;;  %v6811_v3 = vld [vmem:[%s13221_s0 + $0x1d8] sm:$0xff] }
  0x77   :  { %9541 = vmatprep.subr.bf16.mxu0 %v10244_v5  ;;  %9605 = vmatprep.subr.bf16.mxu1 %v10244_v5 }
  0x78   :  { %8177 = vmatmul.mubr.msk.f32.gmra.mrb[2].mxu0 %vm90_vm0, %v10749_v32  ;;  %8337 = vmatmul.mubr.msk.f32.gmra.mrb[2].mxu1 %vm90_vm0, %v6807_v49 }
  0x79   :  { %8179 = vmatprep.mubr.msk.f32.mxu0 %vm90_vm0, %v10761_v39  ;;  %8339 = vmatprep.mubr.msk.f32.mxu1 %vm90_vm0, %v10784_v63 }
  0x7a   :  { %9543 = vmatpush3.bf16.msra.mxu0 %v10244_v5  ;;  %9607 = vmatpush3.bf16.msra.mxu1 %v10244_v5  ;;  %v6815_v5 = vld [vmem:[%s13221_s0 + $0x200] sm:$0xff] }
  0x7b   :  { %9545 = vmatprep.subr.bf16.mxu0 %v10268_v10  ;;  %9609 = vmatprep.subr.bf16.mxu1 %v10268_v10 }
  0x7c   :  { %8180 = vmatmul.mubr.msk.f32.gmra.mrb[4].mxu0 %vm90_vm0, %v10789_v0  ;;  %8340 = vmatmul.mubr.msk.f32.gmra.mrb[4].mxu1 %vm90_vm0, %v10795_v4 }
  0x7d   :  { %8182 = vmatprep.mubr.msk.f32.mxu0 %vm90_vm0, %v10800_v6  ;;  %8342 = vmatprep.mubr.msk.f32.mxu1 %vm90_vm0, %v10818_v9 }
  0x7e   :  { %9547 = vmatpush3.bf16.msra.mxu0 %v10268_v10  ;;  %9611 = vmatpush3.bf16.msra.mxu1 %v10268_v10  ;;  %v6819_v10 = vld [vmem:[%s13221_s0 + $0x228] sm:$0xff] }
  0x7f   :  { %9549 = vmatprep.subr.bf16.mxu0 %v10284_v13  ;;  %9613 = vmatprep.subr.bf16.mxu1 %v10284_v13 }
  0x80   :  { %8183 = vmatmul.mubr.msk.f32.gmra.mrb[6].mxu0 %vm90_vm0, %v10823_v18  ;;  %8343 = vmatmul.mubr.msk.f32.gmra.mrb[6].mxu1 %vm90_vm0, %v6811_v3 }
  0x81   :  { %8185 = vmatprep.mubr.msk.f32.mxu0 %vm90_vm0, %v10833_v26  ;;  %8345 = vmatprep.mubr.msk.f32.mxu1 %vm90_vm0, %v10850_v27 }
  0x82   :  { %9551 = vmatpush3.bf16.msra.mxu0 %v10284_v13  ;;  %9615 = vmatpush3.bf16.msra.mxu1 %v10284_v13  ;;  %v13264_v13 = vld [vmem:[#allocation4_spill] sm:$0xff] }
  0x83   :  { %9553 = vmatprep.subr.bf16.mxu0 %v10296_v16  ;;  %9617 = vmatprep.subr.bf16.mxu1 %v10296_v16 }
  0x84   :  { %8186 = vmatmul.mubr.msk.f32.gmra.mrb[8].mxu0 %vm90_vm0, %v10855_v60  ;;  %8346 = vmatmul.mubr.msk.f32.gmra.mrb[8].mxu1 %vm90_vm0, %v10860_v61 }
  0x85   :  { %8188 = vmatprep.mubr.msk.f32.mxu0 %vm90_vm0, %v10865_v58  ;;  %8348 = vmatprep.mubr.msk.f32.mxu1 %vm90_vm0, %v10882_v50 }
  0x88   :  { %8189 = vmatmul.mubr.msk.f32.gmra.mrb[10].mxu0 %vm90_vm0, %v10887_v41  ;;  %8349 = vmatmul.mubr.msk.f32.gmra.mrb[10].mxu1 %vm90_vm0, %v6815_v5 }
  0x89   :  { %8191 = vmatprep.mubr.msk.f32.mxu0 %vm90_vm0, %v10897_v56  ;;  %8351 = vmatprep.mubr.msk.f32.mxu1 %vm90_vm0, %v10911_v55 }
  0x8c   :  { %8192 = vmatmul.mubr.msk.f32.gmra.mrb[12].mxu0 %vm90_vm0, %v10916_v54  ;;  %8352 = vmatmul.mubr.msk.f32.gmra.mrb[12].mxu1 %vm90_vm0, %v10921_v53 }
  0x8d   :  { %8194 = vmatprep.mubr.msk.f32.mxu0 %vm90_vm0, %v10926_v52  ;;  %8354 = vmatprep.mubr.msk.f32.mxu1 %vm90_vm0, %v10939_v51 }
  0x90   :  { %8195 = vmatmul.mubr.msk.f32.gmra.mrb[14].mxu0 %vm90_vm0, %v10944_v14  ;;  %8355 = vmatmul.mubr.msk.f32.gmra.mrb[14].mxu1 %vm90_vm0, %v6819_v10 }
  0x91   :  { %8373 = vmatprep.mubr.msk.f32.mxu0 %vm90_vm0, %v10690_v17  ;;  %8533 = vmatprep.mubr.msk.f32.mxu1 %vm90_vm0, %v10709_v20 }
  0x94   :  { %8374 = vmatmul.mubr.msk.f32.vlgmr.msra.gmra.mrb[16].mxu0 %vm90_vm0, %v10714_v21  ;;  %8534 = vmatmul.mubr.msk.f32.vlgmr.msra.gmra.mrb[16].mxu1 %vm90_vm0, %v10719_v23 }
  0x95   :  { %8376 = vmatprep.mubr.msk.f32.mxu0 %vm90_vm0, %v10726_v25  ;;  %8536 = vmatprep.mubr.msk.f32.mxu1 %vm90_vm0, %v10744_v31 }
  0x96   :  { %9555 = vmatpush3.bf16.msra.mxu0 %v10296_v16  ;;  %9619 = vmatpush3.bf16.msra.mxu1 %v10296_v16  ;;  %v13265_v16 = vld [vmem:[#allocation14_spill] sm:$0xff] }
  0x97   :  { %9557 = vmatprep.subr.bf16.mxu0 %v10322_v22  ;;  %9621 = vmatprep.subr.bf16.mxu1 %v10322_v22 }
  0x98   :  { %8377 = vmatmul.mubr.msk.f32.gmra.mrb[18].mxu0 %vm90_vm0, %v10749_v32  ;;  %8537 = vmatmul.mubr.msk.f32.gmra.mrb[18].mxu1 %vm90_vm0, %v6807_v49  ;;  %v13270_v49 = vld [vmem:[#allocation10_spill] sm:$0xff] }
  0x99   :  { %8379 = vmatprep.mubr.msk.f32.mxu0 %vm90_vm0, %v10761_v39  ;;  %8539 = vmatprep.mubr.msk.f32.mxu1 %vm90_vm0, %v10784_v63 }
  0x9a   :  { %9559 = vmatpush3.bf16.msra.mxu0 %v10322_v22  ;;  %9623 = vmatpush3.bf16.msra.mxu1 %v10322_v22  ;;  %v13266_v22 = vld [vmem:[#allocation6_spill] sm:$0xff] }
  0x9b   :  { %9561 = vmatprep.subr.bf16.mxu0 %v10364_v30  ;;  %9625 = vmatprep.subr.bf16.mxu1 %v10364_v30 }
  0x9c   :  { %8380 = vmatmul.mubr.msk.f32.gmra.mrb[20].mxu0 %vm90_vm0, %v10789_v0  ;;  %8540 = vmatmul.mubr.msk.f32.gmra.mrb[20].mxu1 %vm90_vm0, %v10795_v4 }
  0x9d   :  { %8382 = vmatprep.mubr.msk.f32.mxu0 %vm90_vm0, %v10800_v6  ;;  %8542 = vmatprep.mubr.msk.f32.mxu1 %vm90_vm0, %v10818_v9 }
  0x9e   :  { %9563 = vmatpush3.bf16.msra.mxu0 %v10364_v30  ;;  %9627 = vmatpush3.bf16.msra.mxu1 %v10364_v30  ;;  %v10166_v30 = vmov 0.0|0.0  }
  0x9f   :  { %9565 = vmatprep.subr.bf16.mxu0 %v10404_v37  ;;  %9629 = vmatprep.subr.bf16.mxu1 %v10404_v37 }
  0xa0   :  { %8383 = vmatmul.mubr.msk.f32.gmra.mrb[22].mxu0 %vm90_vm0, %v10823_v18  ;;  %8543 = vmatmul.mubr.msk.f32.gmra.mrb[22].mxu1 %vm90_vm0, %v6811_v3 }
  0xa1   :  { %8385 = vmatprep.mubr.msk.f32.mxu0 %vm90_vm0, %v10833_v26  ;;  %8545 = vmatprep.mubr.msk.f32.mxu1 %vm90_vm0, %v10850_v27 }
  0xa2   :  { %9567 = vmatpush3.bf16.msra.mxu0 %v10404_v37  ;;  %9631 = vmatpush3.bf16.msra.mxu1 %v10404_v37  ;;  %v13267_v37 = vld [vmem:[#allocation7_spill] sm:$0xff] }
  0xa3   :  { %9569 = vmatprep.subr.bf16.mxu0 %v10444_v44  ;;  %9633 = vmatprep.subr.bf16.mxu1 %v10444_v44 }
  0xa4   :  { %8386 = vmatmul.mubr.msk.f32.gmra.mrb[24].mxu0 %vm90_vm0, %v10855_v60  ;;  %8546 = vmatmul.mubr.msk.f32.gmra.mrb[24].mxu1 %vm90_vm0, %v10860_v61 }
  0xa5   :  { %8388 = vmatprep.mubr.msk.f32.mxu0 %vm90_vm0, %v10865_v58  ;;  %8548 = vmatprep.mubr.msk.f32.mxu1 %vm90_vm0, %v10882_v50 }
  0xa8   :  { %8389 = vmatmul.mubr.msk.f32.gmra.mrb[26].mxu0 %vm90_vm0, %v10887_v41  ;;  %8549 = vmatmul.mubr.msk.f32.gmra.mrb[26].mxu1 %vm90_vm0, %v6815_v5 }
  0xa9   :  { %8391 = vmatprep.mubr.msk.f32.mxu0 %vm90_vm0, %v10897_v56  ;;  %8551 = vmatprep.mubr.msk.f32.mxu1 %vm90_vm0, %v10911_v55 }
  0xac   :  { %8392 = vmatmul.mubr.msk.f32.gmra.mrb[28].mxu0 %vm90_vm0, %v10916_v54  ;;  %8552 = vmatmul.mubr.msk.f32.gmra.mrb[28].mxu1 %vm90_vm0, %v10921_v53 }
  0xad   :  { %8394 = vmatprep.mubr.msk.f32.mxu0 %vm90_vm0, %v10926_v52  ;;  %8554 = vmatprep.mubr.msk.f32.mxu1 %vm90_vm0, %v10939_v51 }
  0xb0   :  { %8395 = vmatmul.mubr.msk.f32.gmra.mrb[30].mxu0 %vm90_vm0, %v10944_v14  ;;  %8555 = vmatmul.mubr.msk.f32.gmra.mrb[30].mxu1 %vm90_vm0, %v6819_v10 }
  0xb1   :  { %8413 = vmatprep.mubr.msk.f32.mxu0 %vm90_vm0, %v10685_v15  ;;  %8573 = vmatprep.mubr.msk.f32.mxu1 %vm90_vm0, %v10690_v17 }
  0xb4   :  { %8414 = vmatmul.mubr.msk.f32.vlgmr.msra.gmra.mrb[16].mxu0 %vm90_vm0, %v10709_v20  ;;  %8574 = vmatmul.mubr.msk.f32.vlgmr.msra.gmra.mrb[16].mxu1 %vm90_vm0, %v10714_v21 }
  0xb5   :  { %8416 = vmatprep.mubr.msk.f32.mxu0 %vm90_vm0, %v10719_v23  ;;  %8576 = vmatprep.mubr.msk.f32.mxu1 %vm90_vm0, %v10726_v25  ;;  %v7036_v23 = vld [vmem:[%s13222_s3 + $0x110] sm:$0xff] }
  0xb6   :  { %9571 = vmatpush3.bf16.msra.mxu0 %v10444_v44  ;;  %9635 = vmatpush3.bf16.msra.mxu1 %v10444_v44  ;;  %v13269_v44 = vld [vmem:[#allocation9_spill] sm:$0xff] }
  0xb7   :  { %9573 = vmatprep.subr.bf16.mxu0 %v10569_v62  ;;  %9637 = vmatprep.subr.bf16.mxu1 %v10569_v62 }
  0xb8   :  { %8417 = vmatmul.mubr.msk.f32.gmra.mrb[18].mxu0 %vm90_vm0, %v10744_v31  ;;  %8577 = vmatmul.mubr.msk.f32.gmra.mrb[18].mxu1 %vm90_vm0, %v10749_v32 }
  0xb9   :  { %8419 = vmatprep.mubr.msk.f32.mxu0 %vm90_vm0, %v10756_v38  ;;  %8579 = vmatprep.mubr.msk.f32.mxu1 %vm90_vm0, %v10761_v39 }
  0xba   :  { %9575 = vmatpush3.bf16.msra.mxu0 %v10569_v62  ;;  %9639 = vmatpush3.bf16.msra.mxu1 %v10569_v62  ;;  %v6915_v62 = vld [vmem:[%s13221_s0 + $0x180] sm:$0xff] }
  0xbb   :  { %9577 = vmatprep.subr.bf16.mxu0 %v10592_v2  ;;  %9641 = vmatprep.subr.bf16.mxu1 %v10592_v2 }
  0xbc   :  { %8420 = vmatmul.mubr.msk.f32.gmra.mrb[20].mxu0 %vm90_vm0, %v10784_v63  ;;  %8580 = vmatmul.mubr.msk.f32.gmra.mrb[20].mxu1 %vm90_vm0, %v10789_v0 }
  0xbd   :  { %8422 = vmatprep.mubr.msk.f32.mxu0 %vm90_vm0, %v10795_v4  ;;  %8582 = vmatprep.mubr.msk.f32.mxu1 %vm90_vm0, %v10800_v6 }
  0xbe   :  { %9579 = vmatpush3.bf16.msra.mxu0 %v10592_v2  ;;  %9643 = vmatpush3.bf16.msra.mxu1 %v10592_v2  ;;  %v7013_v2 = vld [vmem:[%s13222_s3 + $0x48] sm:$0xff] }
  0xbf   :  { %9581 = vmatprep.subr.bf16.mxu0 %v10613_v7  ;;  %9645 = vmatprep.subr.bf16.mxu1 %v10613_v7 }
  0xc0   :  { %8423 = vmatmul.mubr.msk.f32.gmra.mrb[22].mxu0 %vm90_vm0, %v10818_v9  ;;  %8583 = vmatmul.mubr.msk.f32.gmra.mrb[22].mxu1 %vm90_vm0, %v10823_v18 }
  0xc1   :  { %8425 = vmatprep.mubr.msk.f32.mxu0 %vm90_vm0, %v10828_v19  ;;  %8585 = vmatprep.mubr.msk.f32.mxu1 %vm90_vm0, %v10833_v26 }
  0xc2   :  { %9583 = vmatpush3.bf16.msra.mxu0 %v10613_v7  ;;  %9647 = vmatpush3.bf16.msra.mxu1 %v10613_v7 }
  0xc3   :  { %9585 = vmatprep.subr.bf16.mxu0 %v10638_v12  ;;  %9649 = vmatprep.subr.bf16.mxu1 %v10638_v12 }
  0xc4   :  { %8426 = vmatmul.mubr.msk.f32.gmra.mrb[24].mxu0 %vm90_vm0, %v10850_v27  ;;  %8586 = vmatmul.mubr.msk.f32.gmra.mrb[24].mxu1 %vm90_vm0, %v10855_v60 }
  0xc5   :  { %8428 = vmatprep.mubr.msk.f32.mxu0 %vm90_vm0, %v10860_v61  ;;  %8588 = vmatprep.mubr.msk.f32.mxu1 %vm90_vm0, %v10865_v58  ;;  %v6883_v58 = vld [vmem:[%s13221_s0 + $0xb8] sm:$0xff] }
  0xc8   :  { %8429 = vmatmul.mubr.msk.f32.gmra.mrb[26].mxu0 %vm90_vm0, %v10882_v50  ;;  %8589 = vmatmul.mubr.msk.f32.gmra.mrb[26].mxu1 %vm90_vm0, %v10887_v41  ;;  %v13268_v41 = vld [vmem:[#allocation8_spill] sm:$0xff]  ;;  %v6880_v50 = vld [vmem:[%s13221_s0 + $0xa0] sm:$0xff] }
  0xc9   :  { %8431 = vmatprep.mubr.msk.f32.mxu0 %vm90_vm0, %v10892_v57  ;;  %8591 = vmatprep.mubr.msk.f32.mxu1 %vm90_vm0, %v10897_v56  ;;  %v6882_v56 = vld [vmem:[%s13221_s0 + $0xb0] sm:$0xff]  ;;  %v6914_v57 = vld [vmem:[%s13221_s0 + $0x178] sm:$0xff] }
  0xcc   :  { %8432 = vmatmul.mubr.msk.f32.gmra.mrb[28].mxu0 %vm90_vm0, %v10911_v55  ;;  %8592 = vmatmul.mubr.msk.f32.gmra.mrb[28].mxu1 %vm90_vm0, %v10916_v54  ;;  %v6881_v54 = vld [vmem:[%s13221_s0 + $0xa8] sm:$0xff]  ;;  %v6913_v55 = vld [vmem:[%s13221_s0 + $0x170] sm:$0xff] }
  0xcd   :  { %8434 = vmatprep.mubr.msk.f32.mxu0 %vm90_vm0, %v10921_v53  ;;  %8594 = vmatprep.mubr.msk.f32.mxu1 %vm90_vm0, %v10926_v52  ;;  %v13271_v52 = vld [vmem:[#allocation11_spill] sm:$0xff]  ;;  %v13272_v53 = vld [vmem:[#allocation12_spill] sm:$0xff] }
  0xd0   :  { %8435 = vmatmul.mubr.msk.f32.gmra.mrb[30].mxu0 %vm90_vm0, %v10939_v51  ;;  %8595 = vmatmul.mubr.msk.f32.gmra.mrb[30].mxu1 %vm90_vm0, %v10944_v14  ;;  %v6912_v51 = vld [vmem:[%s13221_s0 + $0x168] sm:$0xff] }
  0xd1   :  { %8453 = vmatprep.mubr.msk.f32.mxu0 %vm90_vm0, %v10589_v1  ;;  %8613 = vmatprep.mubr.msk.f32.mxu1 %vm90_vm0, %v10356_v28  ;;  %v7012_v1 = vld [vmem:[%s13222_s3 + $0x40] sm:$0xff] }
  0xd2   :  { %v9665_v7 = vpack.c.bf16 %v7013_v2, %v7012_v1  ;;  %v3245_v1 = vld [vmem:[%s13222_s3 + $0x10] sm:$0xff]  ;;  %v3246_v2 = vld [vmem:[%s13222_s3 + $0x18] sm:$0xff] }
  0xd4   :  { %8454 = vmatmul.mubr.msk.f32.vlgmr.msra.gmra.mrb[16].mxu0 %vm90_vm0, %v10361_v29  ;;  %8614 = vmatmul.mubr.msk.f32.vlgmr.msra.gmra.mrb[16].mxu1 %vm90_vm0, %v10383_v33 }
  0xd5   :  { %8456 = vmatprep.mubr.msk.f32.mxu0 %vm90_vm0, %v10388_v34  ;;  %8616 = vmatprep.mubr.msk.f32.mxu1 %vm90_vm0, %v10394_v35 }
  0xd6   :  { %9587 = vmatpush3.bf16.msra.mxu0 %v10638_v12  ;;  %9651 = vmatpush3.bf16.msra.mxu1 %v10638_v12  ;;  %v7015_v12 = vld [vmem:[%s13222_s3 + $0x58] sm:$0xff] }
  0xd7   :  { %9589 = vmatprep.subr.bf16.mxu0 %v10721_v24  ;;  %9653 = vmatprep.subr.bf16.mxu1 %v10721_v24 }
  0xd8   :  { %8457 = vmatmul.mubr.msk.f32.gmra.mrb[18].mxu0 %vm90_vm0, %v10399_v36  ;;  %8617 = vmatmul.mubr.msk.f32.gmra.mrb[18].mxu1 %vm90_vm0, %v10423_v40 }
  0xd9   :  { %8459 = vmatprep.mubr.msk.f32.mxu0 %vm90_vm0, %v10632_v11  ;;  %8619 = vmatprep.mubr.msk.f32.mxu1 %vm90_vm0, %v10433_v42  ;;  %v7014_v11 = vld [vmem:[%s13222_s3 + $0x50] sm:$0xff] }
  0xda   :  { %9591 = vmatpush3.bf16.msra.mxu0 %v10721_v24  ;;  %9655 = vmatpush3.bf16.msra.mxu1 %v10721_v24  ;;  %v7037_v24 = vld [vmem:[%s13222_s3 + $0x118] sm:$0xff] }
  0xdb   :  { %9593 = vmatprep.subr.bf16.mxu0 %v10764_v59  ;;  %9657 = vmatprep.subr.bf16.mxu1 %v10764_v59  ;;  %v9680_v38 = vpack.c.bf16 %v7037_v24, %v7036_v23  ;;  %v7061_v23 = vld [vmem:[%s13222_s3 + $0x28] sm:$0xff] }
  0xdc   :  { %8460 = vmatmul.mubr.msk.f32.gmra.mrb[20].mxu0 %vm90_vm0, %v10438_v43  ;;  %8620 = vmatmul.mubr.msk.f32.gmra.mrb[20].mxu1 %vm90_vm0, %v10457_v45 }
  0xdd   :  { %8462 = vmatprep.mubr.msk.f32.mxu0 %vm90_vm0, %v10462_v46  ;;  %8622 = vmatprep.mubr.msk.f32.mxu1 %vm90_vm0, %v10467_v47 }
  0xde   :  { %9595 = vmatpush3.bf16.msra.mxu0 %v10764_v59  ;;  %9659 = vmatpush3.bf16.msra.mxu1 %v10764_v59 }
  0xdf   :  { %9597 = vmatprep.subr.bf16.mxu0 %v10805_v8  ;;  %9661 = vmatprep.subr.bf16.mxu1 %v10805_v8 }
  0xe0   :  { %8463 = vmatmul.mubr.msk.f32.gmra.mrb[22].mxu0 %vm90_vm0, %v10472_v48  ;;  %8623 = vmatmul.mubr.msk.f32.gmra.mrb[22].mxu1 %vm90_vm0, %v13264_v13 }
  0xe1   :  { %8465 = vmatprep.mubr.msk.f32.mxu0 %vm90_vm0, %v13265_v16  ;;  %8625 = vmatprep.mubr.msk.f32.mxu1 %vm90_vm0, %v13266_v22 }
  0xe2   :  { %9599 = vmatpush3.bf16.msra.mxu0 %v10805_v8  ;;  %9663 = vmatpush3.bf16.msra.mxu1 %v10805_v8 }
  0xe3   :  { %9964 = vmatprep.subr.bf16.mxu1 %v10166_v30  ;;  %9664 = vmatprep.subr.bf16.mxu0 %v10166_v30 }
  0xe4   :  { %8466 = vmatmul.mubr.msk.f32.gmra.mrb[24].mxu0 %vm90_vm0, %v13267_v37  ;;  %8626 = vmatmul.mubr.msk.f32.gmra.mrb[24].mxu1 %vm90_vm0, %v13268_v41 }
  0xe5   :  { %8468 = vmatprep.mubr.msk.f32.mxu0 %vm90_vm0, %v13269_v44  ;;  %8628 = vmatprep.mubr.msk.f32.mxu1 %vm90_vm0, %v13270_v49 }
  0xe8   :  { %8469 = vmatmul.mubr.msk.f32.gmra.mrb[26].mxu0 %vm90_vm0, %v13271_v52  ;;  %8629 = vmatmul.mubr.msk.f32.gmra.mrb[26].mxu1 %vm90_vm0, %v13272_v53 }
  0xe9   :  { %8471 = vmatprep.mubr.msk.f32.mxu0 %vm90_vm0, %v6880_v50  ;;  %8631 = vmatprep.mubr.msk.f32.mxu1 %vm90_vm0, %v6912_v51 }
  0xec   :  { %8472 = vmatmul.mubr.msk.f32.gmra.mrb[28].mxu0 %vm90_vm0, %v6881_v54  ;;  %8632 = vmatmul.mubr.msk.f32.gmra.mrb[28].mxu1 %vm90_vm0, %v6913_v55 }
  0xed   :  { %8474 = vmatprep.mubr.msk.f32.mxu0 %vm90_vm0, %v6882_v56  ;;  %8634 = vmatprep.mubr.msk.f32.mxu1 %vm90_vm0, %v6914_v57 }
  0xf0   :  { %8475 = vmatmul.mubr.msk.f32.gmra.mrb[30].mxu0 %vm90_vm0, %v6883_v58  ;;  %8635 = vmatmul.mubr.msk.f32.gmra.mrb[30].mxu1 %vm90_vm0, %v6915_v62 }
  0xf1   :  { %8493 = vmatprep.mubr.msk.f32.mxu0 %vm90_vm0, %v10356_v28  ;;  %8653 = vmatprep.mubr.msk.f32.mxu1 %vm90_vm0, %v10361_v29  ;;  %v9668_v28 = vpack.c.bf16 %v7015_v12, %v7014_v11  ;;  %v13273_v29 = vld [vmem:[#allocation3_spill] sm:$0xff]  ;;  %v9674_v12 = vpack.c.bf16 %v3246_v2, %v3245_v1  ;;  %v7075_v1 = vld [vmem:[%s13222_s3 + $0x70] sm:$0xff]  ;;  %v7076_v2 = vld [vmem:[%s13222_s3 + $0x78] sm:$0xff] }
  0xf4   :  { %8494 = vmatmul.mubr.msk.f32.vlgmr.msra.gmra.mrb[16].mxu0 %vm90_vm0, %v10383_v33  ;;  %8654 = vmatmul.mubr.msk.f32.vlgmr.msra.gmra.mrb[16].mxu1 %vm90_vm0, %v10388_v34  ;;  %v13274_v33 = vld [vmem:[#allocation5_spill] sm:$0xff] }
  0xf5   :  { %8496 = vmatprep.mubr.msk.f32.mxu0 %vm90_vm0, %v10394_v35  ;;  %8656 = vmatprep.mubr.msk.f32.mxu1 %vm90_vm0, %v10399_v36  ;;  %v13275_v34 = vld [vmem:[#allocation13_spill] sm:$0xff]  ;;  %v6995_v35 = vld [vmem:[%s13221_s0 + $0xc0] sm:$0xff]  ;;  %v10168_v36 = vmov 0.0  }
  0xf6   :  { %9966 = vmatpush3.bf16.msra.mxu1 %v9665_v7  ;;  %9666 = vmatpush3.bf16.msra.mxu0 %v9665_v7 }
  0xf7   :  { %9667 = vmatprep.subr.bf16.mxu0 %v10166_v30  ;;  %9965 = vmatprep.subr.bf16.mxu1 %v10166_v30 }
  0xf8   :  { %8497 = vmatmul.mubr.msk.f32.gmra.mrb[18].mxu0 %vm90_vm0, %v10423_v40  ;;  %8657 = vmatmul.mubr.msk.f32.gmra.mrb[18].mxu1 %vm90_vm0, %v13273_v29  ;;  %v11372_v40 = vld [vmem:[%s13223_s2] ss:$0 sm:$0xff] }
  0xf9   :  { %8499 = vmatprep.mubr.msk.f32.mxu0 %vm90_vm0, %v10433_v42  ;;  %8659 = vmatprep.mubr.msk.f32.mxu1 %vm90_vm0, %v10438_v43  ;;  %v7034_v42 = vld [vmem:[%s13222_s3 + $0x100] sm:$0xff]  ;;  %v7035_v43 = vld [vmem:[%s13222_s3 + $0x108] sm:$0xff] }
  0xfa   :  { %9669 = vmatpush3.bf16.msra.mxu0 %v9668_v28  ;;  %9967 = vmatpush3.bf16.msra.mxu1 %v9668_v28  ;;  %v9677_v15 = vpack.c.bf16 %v7035_v43, %v7034_v42  ;;  %v7047_v43 = vld [vmem:[%s13222_s3 + $0x140] sm:$0xff] }
  0xfb   :  { %9670 = vmatprep.subr.bf16.mxu1 %v10166_v30  ;;  %9676 = vmatprep.subr.bf16.mxu0 %v10166_v30 }
  0xfc   :  { %8500 = vmatmul.mubr.msk.f32.gmra.mrb[20].mxu0 %vm90_vm0, %v10457_v45  ;;  %8660 = vmatmul.mubr.msk.f32.gmra.mrb[20].mxu1 %vm90_vm0, %v10462_v46 }
  0xfd   :  { %8502 = vmatprep.mubr.msk.f32.mxu0 %vm90_vm0, %v10467_v47  ;;  %8662 = vmatprep.mubr.msk.f32.mxu1 %vm90_vm0, %v10472_v48 }
 0x100   :  { %8503 = vmatmul.mubr.msk.f32.gmra.mrb[22].mxu0 %vm90_vm0, %v13264_v13  ;;  %8663 = vmatmul.mubr.msk.f32.gmra.mrb[22].mxu1 %vm90_vm0, %v13274_v33 }
 0x101   :  { %8505 = vmatprep.mubr.msk.f32.mxu0 %vm90_vm0, %v13266_v22  ;;  %8665 = vmatprep.mubr.msk.f32.mxu1 %vm90_vm0, %v13267_v37 }
 0x104   :  { %8506 = vmatmul.mubr.msk.f32.gmra.mrb[24].mxu0 %vm90_vm0, %v13268_v41  ;;  %8666 = vmatmul.mubr.msk.f32.gmra.mrb[24].mxu1 %vm90_vm0, %v13269_v44  ;;  %v3243_v44 = vld [vmem:[%s13222_s3] sm:$0xff] }
 0x105   :  { %8508 = vmatprep.mubr.msk.f32.mxu0 %vm90_vm0, %v13270_v49  ;;  %8668 = vmatprep.mubr.msk.f32.mxu1 %vm90_vm0, %v13271_v52  ;;  %v3244_v49 = vld [vmem:[%s13222_s3 + $0x8] sm:$0xff] }
 0x108   :  { %8509 = vmatmul.mubr.msk.f32.gmra.mrb[26].mxu0 %vm90_vm0, %v13272_v53  ;;  %8669 = vmatmul.mubr.msk.f32.gmra.mrb[26].mxu1 %vm90_vm0, %v13275_v34  ;;  %v9671_v53 = vpack.c.bf16 %v3244_v49, %v3243_v44  ;;  %v7073_v49 = vld [vmem:[%s13222_s3 + $0x60] sm:$0xff] }
 0x109   :  { %8511 = vmatprep.mubr.msk.f32.mxu0 %vm90_vm0, %v6912_v51  ;;  %8671 = vmatprep.mubr.msk.f32.mxu1 %vm90_vm0, %v6881_v54 }
 0x10c   :  { %8512 = vmatmul.mubr.msk.f32.gmra.mrb[28].mxu0 %vm90_vm0, %v6913_v55  ;;  %8672 = vmatmul.mubr.msk.f32.gmra.mrb[28].mxu1 %vm90_vm0, %v6882_v56 }
 0x10d   :  { %8514 = vmatprep.mubr.msk.f32.mxu0 %vm90_vm0, %v6914_v57  ;;  %8674 = vmatprep.mubr.msk.f32.mxu1 %vm90_vm0, %v6883_v58 }
 0x110   :  { %8515 = vmatmul.mubr.msk.f32.gmra.mrb[30].mxu0 %vm90_vm0, %v6915_v62  ;;  %8675 = vmatmul.mubr.msk.f32.gmra.mrb[30].mxu1 %vm90_vm0, %v6995_v35 }
 0x111   :  { %8685 = vmatprep.mubr.msk.f32.mxu0 %vm10167_vm1, %v10168_v36  ;;  %8706 = vmatprep.mubr.msk.f32.mxu1 %vm10167_vm1, %v10168_v36 }
 0x147   :  { %v8175_v45 = vpop.f32.mrb[0].mxu0  ;;  %v11380_v46 = vpop.f32.mrb[0].mxu1 }
 0x148   :  { %v11383_v47 = vadd.f32 %v8175_v45, %v11372_v40  ;;  %v11385_v48 = vpop.f32.mrb[1].mxu0  ;;  %v11387_v14 = vpop.f32.mrb[1].mxu1  ;;  %v7048_v45 = vld [vmem:[%s13222_s3 + $0x148] sm:$0xff] }
 0x149   :  { %v954_v28 = vadd.f32 %v11372_v40, %v11385_v48  ;;  %v9683_v24 = vpack.c.bf16 %v7048_v45, %v7047_v43 }
 0x14a   :  { %v971_v17 = vmax.f32 %v11383_v47, 0.0 }
 0x14b   :  { %v8178_v20 = vpop.f32.mrb[2].mxu0  ;;  %v11390_v21 = vpop.f32.mrb[2].mxu1 }
 0x14c   :  { %v862_v25 = vpop.f32.mrb[3].mxu0  ;;  %v11398_v31 = vpop.f32.mrb[3].mxu1  ;;  %8686 = vmatmul.mubr.msk.f32.vlgmr.msra.gmra.mrb[32].mxu0 %vm3252_vm2, %v971_v17  ;;  %v957_v39 = vadd.f32 %v8178_v20, %v11372_v40  ;;  %v7060_v20 = vld [vmem:[%s13222_s3 + $0x20] sm:$0xff] }
 0x14d   :  { %v11404_v32 = vadd.f32 %v11372_v40, %v862_v25  ;;  %8688 = vmatprep.mubr.msk.f32.mxu0 %vm10167_vm1, %v10168_v36  ;;  %9678 = vmatpush3.bf16.msra.mxu0 %v9677_v15  ;;  %v970_v25 = vmax.f32 %v954_v28, 0.0 }
 0x14e   :  { %9679 = vmatprep.subr.bf16.mxu0 %v10166_v30  ;;  %v973_v8 = vmax.f32 %v957_v39, 0.0  ;;  %v7049_v39 = vld [vmem:[%s13222_s3 + $0x150] sm:$0xff] }
 0x14f   :  { %v972_v59 = vmax.f32 %v11404_v32, 0.0  ;;  %v8181_v63 = vpop.f32.mrb[4].mxu0  ;;  %v11411_v0 = vpop.f32.mrb[4].mxu1 }
 0x150   :  { %v872_v4 = vpop.f32.mrb[5].mxu0  ;;  %v11413_v6 = vpop.f32.mrb[5].mxu1  ;;  %v959_v9 = vadd.f32 %v8181_v63, %v11372_v40  ;;  %v7050_v63 = vld [vmem:[%s13222_s3 + $0x158] sm:$0xff] }
 0x151   :  { %8689 = vmatmul.mubr.msk.f32.gmra.mrb[34].mxu0 %vm3252_vm2, %v972_v59  ;;  %v958_v29 = vadd.f32 %v11372_v40, %v872_v4  ;;  %v9689_v4 = vpack.c.bf16 %v7061_v23, %v7060_v20  ;;  %v1732_v45 = vadd.f32 %v11372_v40, %v11413_v6  ;;  %v1733_v6 = vadd.f32 %v11411_v0, %v11372_v40  ;;  %v7112_v20 = vld [vmem:[%s13222_s3 + $0x80] sm:$0xff]  ;;  %v7113_v23 = vld [vmem:[%s13222_s3 + $0x88] sm:$0xff] }
 0x152   :  { %8691 = vmatprep.mubr.msk.f32.mxu0 %vm10167_vm1, %v10168_v36  ;;  %9681 = vmatpush3.bf16.msra.mxu0 %v9680_v38  ;;  %v11429_v60 = vmax.f32 %v959_v9, 0.0  ;;  %v7063_v9 = vld [vmem:[%s13222_s3 + $0x38] sm:$0xff] }
 0x153   :  { %v8184_v18 = vpop.f32.mrb[6].mxu0  ;;  %v11421_v19 = vpop.f32.mrb[6].mxu1  ;;  %9688 = vmatprep.subr.bf16.mxu0 %v10166_v30  ;;  %v974_v38 = vmax.f32 %v958_v29, 0.0  ;;  %v11664_v29 = vadd.f32 %v11372_v40, %v11398_v31 }
 0x154   :  { %v882_v26 = vpop.f32.mrb[7].mxu0  ;;  %v11424_v27 = vpop.f32.mrb[7].mxu1  ;;  %v11443_v16 = vadd.f32 %v8184_v18, %v11372_v40  ;;  %v9686_v18 = vpack.c.bf16 %v7050_v63, %v7049_v39  ;;  %v9713_v39 = vpack.c.bf16 %v7113_v23, %v7112_v20  ;;  %v7114_v63 = vld [vmem:[%s13222_s3 + $0x90] sm:$0xff] }
 0x155   :  { %8692 = vmatmul.mubr.msk.f32.gmra.mrb[36].mxu0 %vm3252_vm2, %v973_v8  ;;  %v960_v61 = vadd.f32 %v11372_v40, %v882_v26  ;;  %v7062_v8 = vld [vmem:[%s13222_s3 + $0x30] sm:$0xff]  ;;  %v1746_v31 = vmax.f32 %v11664_v29, 0.0 }
 0x156   :  { %8694 = vmatprep.mubr.msk.f32.mxu0 %vm10167_vm1, %v10168_v36  ;;  %v977_v54 = vmax.f32 %v11443_v16, 0.0  ;;  %v9692_v26 = vpack.c.bf16 %v7063_v9, %v7062_v8  ;;  %v11703_v16 = vmax.f32 %v1733_v6, 0.0  ;;  %v1731_v8 = vadd.f32 %v11390_v21, %v11372_v40 }
 0x157   :  { %v8187_v3 = vpop.f32.mrb[8].mxu0  ;;  %v11432_v5 = vpop.f32.mrb[8].mxu1  ;;  %v11445_v22 = vmax.f32 %v960_v61, 0.0 }
 0x158   :  { %v11434_v10 = vpop.f32.mrb[9].mxu0  ;;  %v11436_v13 = vpop.f32.mrb[9].mxu1  ;;  %v963_v55 = vadd.f32 %v8187_v3, %v11372_v40  ;;  %v1747_v21 = vmax.f32 %v1731_v8, 0.0 }
 0x159   :  { %8695 = vmatmul.mubr.msk.f32.gmra.mrb[38].mxu0 %vm3252_vm2, %v11429_v60  ;;  %v962_v61 = vadd.f32 %v11372_v40, %v11434_v10 }
 0x15a   :  { %8697 = vmatprep.mubr.msk.f32.mxu0 %vm10167_vm1, %v10168_v36  ;;  %v11493_v33 = vmax.f32 %v963_v55, 0.0  ;;  %v11642_v55 = vadd.f32 %v11380_v46, %v11372_v40  ;;  %v7088_v46 = vld [vmem:[%s13222_s3 + $0x130] sm:$0xff] }
 0x15b   :  { %v8190_v37 = vpop.f32.mrb[10].mxu0  ;;  %v11447_v41 = vpop.f32.mrb[10].mxu1  ;;  %v978_v47 = vmax.f32 %v962_v61, 0.0 }
 0x15c   :  { %v902_v50 = vpop.f32.mrb[11].mxu0  ;;  %v11455_v51 = vpop.f32.mrb[11].mxu1  ;;  %v11465_v56 = vadd.f32 %v8190_v37, %v11372_v40  ;;  %v1728_v37 = vadd.f32 %v11372_v40, %v11387_v14  ;;  %v7086_v14 = vld [vmem:[%s13222_s3 + $0x120] sm:$0xff]  ;;  %v1745_v28 = vmax.f32 %v11642_v55, 0.0 }
 0x15d   :  { %v964_v52 = vadd.f32 %v11372_v40, %v902_v50  ;;  %8698 = vmatmul.mubr.msk.f32.gmra.mrb[40].mxu0 %vm3252_vm2, %v11445_v22  ;;  %v7074_v50 = vld [vmem:[%s13222_s3 + $0x68] sm:$0xff] }
 0x15e   :  { %8700 = vmatprep.mubr.msk.f32.mxu0 %vm10167_vm1, %v10168_v36  ;;  %v981_v34 = vmax.f32 %v11465_v56, 0.0  ;;  %v1738_v56 = vadd.f32 %v11372_v40, %v11455_v51  ;;  %v7099_v51 = vld [vmem:[%s13222_s3 + $0x160] sm:$0xff] }
 0x15f   :  { %v11467_v57 = vmax.f32 %v964_v52, 0.0  ;;  %v11469_v58 = vpop.f32.mrb[12].mxu0  ;;  %v11471_v62 = vpop.f32.mrb[12].mxu1  ;;  %v7087_v52 = vld [vmem:[%s13222_s3 + $0x128] sm:$0xff] }
 0x160   :  { %v11479_v7 = vpop.f32.mrb[13].mxu0  ;;  %v11481_v11 = vpop.f32.mrb[13].mxu1  ;;  %v11595_v32 = vadd.f32 %v11469_v58, %v11372_v40  ;;  %v1744_v58 = vmax.f32 %v1728_v37, 0.0 }
 0x161   :  { %8701 = vmatmul.mubr.msk.f32.gmra.mrb[42].mxu0 %vm3252_vm2, %v977_v54  ;;  %8707 = vmatmul.mubr.msk.f32.vlgmr.msra.gmra.mrb[32].mxu1 %vm3252_vm2, %v11467_v57 }
 0x162   :  { %9672 = vmatpush3.bf16.msra.mxu1 %v9671_v53  ;;  %8703 = vmatprep.mubr.msk.f32.mxu0 %vm10167_vm1, %v10168_v36  ;;  %v983_v3 = vmax.f32 %v11595_v32, 0.0  ;;  %v9695_v53 = vpack.c.bf16 %v7074_v50, %v7073_v49 }
 0x163   :  { %v11496_v35 = vpop.f32.mrb[14].mxu0  ;;  %v11498_v42 = vpop.f32.mrb[14].mxu1  ;;  %8709 = vmatprep.mubr.msk.f32.mxu1 %vm10167_vm1, %v10168_v36  ;;  %9673 = vmatprep.subr.bf16.mxu1 %v10166_v30 }
 0x164   :  { %v922_v48 = vpop.f32.mrb[15].mxu0  ;;  %v11509_v15 = vpop.f32.mrb[15].mxu1 }
 0x165   :  { %8704 = vmatmul.mubr.msk.f32.gmra.mrb[44].mxu0 %vm3252_vm2, %v11493_v33  ;;  %8710 = vmatmul.mubr.msk.f32.gmra.mrb[34].mxu1 %vm3252_vm2, %v981_v34  ;;  %v11605_v10 = vadd.f32 %v11372_v40, %v922_v48  ;;  %v11869_v37 = vadd.f32 %v11372_v40, %v11509_v15 }
 0x166   :  { %9675 = vmatpush3.bf16.msra.mxu1 %v9674_v12  ;;  %8720 = vmatprep.mubr.msk.f32.mxu1 %vm10167_vm1, %v10168_v36  ;;  %v7089_v12 = vld [vmem:[%s13222_s3 + $0x138] sm:$0xff] }
 0x167   :  { %8755 = vmatprep.mubr.msk.f32.mxu0 %vm10167_vm1, %v10168_v36  ;;  %9682 = vmatprep.subr.bf16.mxu1 %v10166_v30  ;;  %v984_v44 = vmax.f32 %v11605_v10, 0.0  ;;  %v9704_v43 = vpack.c.bf16 %v7089_v12, %v7088_v46  ;;  %v1758_v15 = vmax.f32 %v11869_v37, 0.0  ;;  %v7138_v46 = vld [vmem:[%s13222_s3 + $0x180] sm:$0xff]  ;;  %v7139_v12 = vld [vmem:[%s13222_s3 + $0x188] sm:$0xff] }
 0x168   :  { %v7152_v37 = vld [vmem:[%s13222_s3 + $0x1c8] sm:$0xff] }
 0x169   :  { %8721 = vmatmul.mubr.msk.f32.vlgmr.msra.gmra.mrb[36].mxu1 %vm3252_vm2, %v970_v25  ;;  %8756 = vmatmul.mubr.msk.f32.vlgmr.msra.gmra.mrb[46].mxu0 %vm3252_vm2, %v974_v38  ;;  %v7101_v25 = vld [vmem:[%s13222_s3 + $0x170] sm:$0xff] }
 0x16a   :  { %9684 = vmatpush3.bf16.msra.mxu1 %v9683_v24  ;;  %8723 = vmatprep.mubr.msk.f32.mxu1 %vm10167_vm1, %v10168_v36 }
 0x16b   :  { %8758 = vmatprep.mubr.msk.f32.mxu0 %vm10167_vm1, %v10168_v36  ;;  %9685 = vmatprep.subr.bf16.mxu1 %v10166_v30 }
 0x16c   :  { %9690 = vmatpush3.bf16.msra.mxu0 %v9689_v4  ;;  %v7115_v4 = vld [vmem:[%s13222_s3 + $0x98] sm:$0xff] }
 0x16d   :  { %8724 = vmatmul.mubr.msk.f32.gmra.mrb[38].mxu1 %vm3252_vm2, %v971_v17  ;;  %8759 = vmatmul.mubr.msk.f32.gmra.mrb[48].mxu0 %vm3252_vm2, %v11429_v60  ;;  %v966_v17 = vadd.f32 %v11372_v40, %v11479_v7  ;;  %v9701_v7 = vpack.c.bf16 %v7087_v52, %v7086_v14 }
 0x16e   :  { %8726 = vmatprep.mubr.msk.f32.mxu1 %vm10167_vm1, %v10168_v36  ;;  %8761 = vmatprep.mubr.msk.f32.mxu0 %vm10167_vm1, %v10168_v36 }
 0x16f   :  { %9687 = vmatpush3.bf16.msra.mxu1 %v9686_v18  ;;  %9691 = vmatprep.subr.bf16.mxu0 %v10166_v30  ;;  %v9716_v18 = vpack.c.bf16 %v7115_v4, %v7114_v63 }
 0x170   :  { %9693 = vmatpush3.bf16.msra.mxu0 %v9692_v26  ;;  %9694 = vmatprep.subr.bf16.mxu1 %v10166_v30  ;;  %v11825_v26 = vadd.f32 %v11421_v19, %v11372_v40  ;;  %v11849_v19 = vadd.f32 %v11471_v62, %v11372_v40  ;;  %v11864_v62 = vadd.f32 %v11447_v41, %v11372_v40 }
 0x171   :  { %8727 = vmatmul.mubr.msk.f32.gmra.mrb[40].mxu1 %vm3252_vm2, %v972_v59  ;;  %8762 = vmatmul.mubr.msk.f32.gmra.mrb[50].mxu0 %vm3252_vm2, %v11445_v22  ;;  %v982_v59 = vmax.f32 %v966_v17, 0.0 }
 0x172   :  { %8729 = vmatprep.mubr.msk.f32.mxu1 %vm10167_vm1, %v10168_v36  ;;  %8764 = vmatprep.mubr.msk.f32.mxu0 %vm10167_vm1, %v10168_v36  ;;  %v1751_v61 = vmax.f32 %v11825_v26, 0.0  ;;  %v1757_v10 = vmax.f32 %v11849_v19, 0.0  ;;  %v1755_v41 = vmax.f32 %v11864_v62, 0.0  ;;  %v1743_v62 = vadd.f32 %v11498_v42, %v11372_v40  ;;  %v7151_v42 = vld [vmem:[%s13222_s3 + $0x1c0] sm:$0xff] }
 0x173   :  { %9700 = vmatprep.subr.bf16.mxu0 %v10166_v30 }
 0x174   :  { %v1759_v19 = vmax.f32 %v1743_v62, 0.0 }
 0x175   :  { %8730 = vmatmul.mubr.msk.f32.gmra.mrb[42].mxu1 %vm3252_vm2, %v974_v38  ;;  %8765 = vmatmul.mubr.msk.f32.gmra.mrb[52].mxu0 %vm3252_vm2, %v978_v47  ;;  %v7102_v38 = vld [vmem:[%s13222_s3 + $0x178] sm:$0xff] }
 0x176   :  { %8732 = vmatprep.mubr.msk.f32.mxu1 %vm10167_vm1, %v10168_v36  ;;  %8767 = vmatprep.mubr.msk.f32.mxu0 %vm10167_vm1, %v10168_v36  ;;  %v9710_v9 = vpack.c.bf16 %v7102_v38, %v7101_v25 }
 0x179   :  { %8733 = vmatmul.mubr.msk.f32.gmra.mrb[44].mxu1 %vm3252_vm2, %v11429_v60  ;;  %8768 = vmatmul.mubr.msk.f32.gmra.mrb[54].mxu0 %vm3252_vm2, %v11493_v33 }
 0x17a   :  { %8735 = vmatprep.mubr.msk.f32.mxu1 %vm10167_vm1, %v10168_v36  ;;  %8770 = vmatprep.mubr.msk.f32.mxu0 %vm10167_vm1, %v10168_v36 }
 0x17d   :  { %8736 = vmatmul.mubr.msk.f32.gmra.mrb[46].mxu1 %vm3252_vm2, %v11445_v22  ;;  %8771 = vmatmul.mubr.msk.f32.gmra.mrb[56].mxu0 %vm3252_vm2, %v11467_v57 }
 0x17e   :  { %8738 = vmatprep.mubr.msk.f32.mxu1 %vm10167_vm1, %v10168_v36  ;;  %8773 = vmatprep.mubr.msk.f32.mxu0 %vm10167_vm1, %v10168_v36 }
 0x181   :  { %8739 = vmatmul.mubr.msk.f32.gmra.mrb[48].mxu1 %vm3252_vm2, %v978_v47  ;;  %8774 = vmatmul.mubr.msk.f32.gmra.mrb[58].mxu0 %vm3252_vm2, %v982_v59  ;;  %v1740_v47 = vadd.f32 %v11372_v40, %v11481_v11 }
 0x182   :  { %8741 = vmatprep.mubr.msk.f32.mxu1 %vm10167_vm1, %v10168_v36  ;;  %8776 = vmatprep.mubr.msk.f32.mxu0 %vm10167_vm1, %v10168_v36 }
 0x183   :  { %v1756_v17 = vmax.f32 %v1740_v47, 0.0 }
 0x185   :  { %8742 = vmatmul.mubr.msk.f32.gmra.mrb[50].mxu1 %vm3252_vm2, %v11493_v33  ;;  %8777 = vmatmul.mubr.msk.f32.gmra.mrb[60].mxu0 %vm3252_vm2, %v983_v3 }
 0x186   :  { %8744 = vmatprep.mubr.msk.f32.mxu1 %vm10167_vm1, %v10168_v36  ;;  %8779 = vmatprep.mubr.msk.f32.mxu0 %vm10167_vm1, %v10168_v36 }
 0x189   :  { %8745 = vmatmul.mubr.msk.f32.gmra.mrb[52].mxu1 %vm3252_vm2, %v11467_v57  ;;  %8780 = vmatmul.mubr.msk.f32.gmra.mrb[62].mxu0 %vm3252_vm2, %v984_v44 }
 0x18a   :  { %8790 = vmatprep.mubr.msk.f32.mxu1 %vm10167_vm1, %v10168_v36  ;;  %8825 = vmatprep.mubr.msk.f32.mxu0 %vm10167_vm1, %v10168_v36 }
 0x18d   :  { %8791 = vmatmul.mubr.msk.f32.vlgmr.msra.gmra.mrb[54].mxu1 %vm3252_vm2, %v11429_v60  ;;  %8826 = vmatmul.mubr.msk.f32.vlgmr.msra.gmra.mrb[64].mxu0 %vm3252_vm2, %v1744_v58  ;;  %v9698_v60 = vpack.c.bf16 %v7076_v2, %v7075_v1  ;;  %v7125_v58 = vld [vmem:[%s13222_s3 + $0xc0] sm:$0xff]  ;;  %v7126_v1 = vld [vmem:[%s13222_s3 + $0xc8] sm:$0xff] }
 0x18e   :  { %9696 = vmatpush3.bf16.msra.mxu1 %v9695_v53  ;;  %8793 = vmatprep.mubr.msk.f32.mxu1 %vm10167_vm1, %v10168_v36 }
 0x18f   :  { %8828 = vmatprep.mubr.msk.f32.mxu0 %vm10167_vm1, %v10168_v36  ;;  %9697 = vmatprep.subr.bf16.mxu1 %v10166_v30 }
 0x190   :  { %9702 = vmatpush3.bf16.msra.mxu0 %v9701_v7 }
 0x191   :  { %8794 = vmatmul.mubr.msk.f32.gmra.mrb[56].mxu1 %vm3252_vm2, %v11445_v22  ;;  %8829 = vmatmul.mubr.msk.f32.gmra.mrb[66].mxu0 %vm3252_vm2, %v1745_v28  ;;  %v1748_v22 = vmax.f32 %v1732_v45, 0.0 }
 0x192   :  { %8796 = vmatprep.mubr.msk.f32.mxu1 %vm10167_vm1, %v10168_v36  ;;  %8831 = vmatprep.mubr.msk.f32.mxu0 %vm10167_vm1, %v10168_v36 }
 0x193   :  { %9699 = vmatpush3.bf16.msra.mxu1 %v9698_v60  ;;  %9703 = vmatprep.subr.bf16.mxu0 %v10166_v30 }
 0x194   :  { %9705 = vmatpush3.bf16.msra.mxu0 %v9704_v43  ;;  %9706 = vmatprep.subr.bf16.mxu1 %v10166_v30 }
 0x195   :  { %8797 = vmatmul.mubr.msk.f32.gmra.mrb[58].mxu1 %vm3252_vm2, %v977_v54  ;;  %8832 = vmatmul.mubr.msk.f32.gmra.mrb[68].mxu0 %vm3252_vm2, %v1746_v31  ;;  %v1734_v54 = vadd.f32 %v11372_v40, %v11424_v27  ;;  %v1737_v27 = vadd.f32 %v11432_v5, %v11372_v40  ;;  %v969_v5 = vadd.f32 %v11496_v35, %v11372_v40  ;;  %v7100_v35 = vld [vmem:[%s13222_s3 + $0x168] sm:$0xff] }
 0x196   :  { %8799 = vmatprep.mubr.msk.f32.mxu1 %vm10167_vm1, %v10168_v36  ;;  %8834 = vmatprep.mubr.msk.f32.mxu0 %vm10167_vm1, %v10168_v36  ;;  %v9707_v24 = vpack.c.bf16 %v7100_v35, %v7099_v51 }
 0x197   :  { %9712 = vmatprep.subr.bf16.mxu0 %v10166_v30  ;;  %v11715_v0 = vmax.f32 %v1734_v54, 0.0  ;;  %v985_v48 = vmax.f32 %v969_v5, 0.0  ;;  %v7128_v54 = vld [vmem:[%s13222_s3 + $0xd8] sm:$0xff] }
 0x199   :  { %8800 = vmatmul.mubr.msk.f32.gmra.mrb[60].mxu1 %vm3252_vm2, %v11493_v33  ;;  %8835 = vmatmul.mubr.msk.f32.gmra.mrb[70].mxu0 %vm3252_vm2, %v1748_v22  ;;  %v1736_v33 = vadd.f32 %v11372_v40, %v11436_v13  ;;  %v11738_v13 = vmax.f32 %v1737_v27, 0.0  ;;  %v7140_v27 = vld [vmem:[%s13222_s3 + $0x190] sm:$0xff] }
 0x19a   :  { %8802 = vmatprep.mubr.msk.f32.mxu1 %vm10167_vm1, %v10168_v36  ;;  %8837 = vmatprep.mubr.msk.f32.mxu0 %vm10167_vm1, %v10168_v36 }
 0x19d   :  { %8803 = vmatmul.mubr.msk.f32.gmra.mrb[62].mxu1 %vm3252_vm2, %v11467_v57  ;;  %8838 = vmatmul.mubr.msk.f32.gmra.mrb[72].mxu0 %vm3252_vm2, %v11703_v16  ;;  %v1752_v57 = vmax.f32 %v1736_v33, 0.0  ;;  %v9725_v33 = vpack.c.bf16 %v7139_v12, %v7138_v46  ;;  %v7153_v46 = vld [vmem:[%s13222_s3 + $0x1d0] sm:$0xff]  ;;  %v7154_v12 = vld [vmem:[%s13222_s3 + $0x1d8] sm:$0xff] }
 0x19e   :  { %8805 = vmatprep.mubr.msk.f32.mxu1 %vm10167_vm1, %v10168_v36  ;;  %8840 = vmatprep.mubr.msk.f32.mxu0 %vm10167_vm1, %v10168_v36 }
 0x1a1   :  { %8806 = vmatmul.mubr.msk.f32.gmra.mrb[64].mxu1 %vm3252_vm2, %v981_v34  ;;  %8841 = vmatmul.mubr.msk.f32.gmra.mrb[74].mxu0 %vm3252_vm2, %v11715_v0  ;;  %v11753_v34 = vmax.f32 %v1738_v56, 0.0 }
 0x1a2   :  { %8808 = vmatprep.mubr.msk.f32.mxu1 %vm10167_vm1, %v10168_v36  ;;  %8843 = vmatprep.mubr.msk.f32.mxu0 %vm10167_vm1, %v10168_v36 }
 0x1a5   :  { %8809 = vmatmul.mubr.msk.f32.gmra.mrb[66].mxu1 %vm3252_vm2, %v983_v3  ;;  %8844 = vmatmul.mubr.msk.f32.gmra.mrb[76].mxu0 %vm3252_vm2, %v1752_v57 }
 0x1a6   :  { %8811 = vmatprep.mubr.msk.f32.mxu1 %vm10167_vm1, %v10168_v36  ;;  %8846 = vmatprep.mubr.msk.f32.mxu0 %vm10167_vm1, %v10168_v36 }
 0x1a9   :  { %8812 = vmatmul.mubr.msk.f32.gmra.mrb[68].mxu1 %vm3252_vm2, %v984_v44  ;;  %8847 = vmatmul.mubr.msk.f32.gmra.mrb[78].mxu0 %vm3252_vm2, %v11738_v13 }
 0x1aa   :  { %8814 = vmatprep.mubr.msk.f32.mxu1 %vm10167_vm1, %v10168_v36  ;;  %8849 = vmatprep.mubr.msk.f32.mxu0 %vm10167_vm1, %v10168_v36 }
 0x1ad   :  { %8815 = vmatmul.mubr.msk.f32.gmra.mrb[70].mxu1 %vm3252_vm2, %v985_v48  ;;  %8850 = vmatmul.mubr.msk.f32.gmra.mrb[80].mxu0 %vm3252_vm2, %v11753_v34 }
 0x1ae   :  { %8860 = vmatprep.mubr.msk.f32.mxu1 %vm10167_vm1, %v10168_v36  ;;  %8895 = vmatprep.mubr.msk.f32.mxu0 %vm10167_vm1, %v10168_v36 }
 0x1b1   :  { %8861 = vmatmul.mubr.msk.f32.vlgmr.msra.gmra.mrb[72].mxu1 %vm3252_vm2, %v1745_v28  ;;  %8896 = vmatmul.mubr.msk.f32.vlgmr.msra.gmra.mrb[82].mxu0 %vm3252_vm2, %v1748_v22  ;;  %v9719_v28 = vpack.c.bf16 %v7126_v1, %v7125_v58  ;;  %v7127_v22 = vld [vmem:[%s13222_s3 + $0xd0] sm:$0xff]  ;;  %v7165_v1 = vld [vmem:[%s13222_s3 + $0xa8] sm:$0xff] }
 0x1b2   :  { %9708 = vmatpush3.bf16.msra.mxu1 %v9707_v24  ;;  %8863 = vmatprep.mubr.msk.f32.mxu1 %vm10167_vm1, %v10168_v36  ;;  %v9722_v51 = vpack.c.bf16 %v7128_v54, %v7127_v22 }
 0x1b3   :  { %8898 = vmatprep.mubr.msk.f32.mxu0 %vm10167_vm1, %v10168_v36  ;;  %9709 = vmatprep.subr.bf16.mxu1 %v10166_v30 }
 0x1b4   :  { %9714 = vmatpush3.bf16.msra.mxu0 %v9713_v39 }
 0x1b5   :  { %8864 = vmatmul.mubr.msk.f32.gmra.mrb[74].mxu1 %vm3252_vm2, %v1746_v31  ;;  %8899 = vmatmul.mubr.msk.f32.gmra.mrb[84].mxu0 %vm3252_vm2, %v11703_v16 }
 0x1b6   :  { %8866 = vmatprep.mubr.msk.f32.mxu1 %vm10167_vm1, %v10168_v36  ;;  %8901 = vmatprep.mubr.msk.f32.mxu0 %vm10167_vm1, %v10168_v36 }
 0x1b7   :  { %9711 = vmatpush3.bf16.msra.mxu1 %v9710_v9  ;;  %9715 = vmatprep.subr.bf16.mxu0 %v10166_v30 }
 0x1b8   :  { %9717 = vmatpush3.bf16.msra.mxu0 %v9716_v18  ;;  %9718 = vmatprep.subr.bf16.mxu1 %v10166_v30 }
 0x1b9   :  { %8867 = vmatmul.mubr.msk.f32.gmra.mrb[76].mxu1 %vm3252_vm2, %v1747_v21  ;;  %8902 = vmatmul.mubr.msk.f32.gmra.mrb[86].mxu0 %vm3252_vm2, %v11715_v0 }
 0x1ba   :  { %8869 = vmatprep.mubr.msk.f32.mxu1 %vm10167_vm1, %v10168_v36  ;;  %8904 = vmatprep.mubr.msk.f32.mxu0 %vm10167_vm1, %v10168_v36 }
 0x1bb   :  { %9724 = vmatprep.subr.bf16.mxu0 %v10166_v30 }
 0x1bd   :  { %8870 = vmatmul.mubr.msk.f32.gmra.mrb[78].mxu1 %vm3252_vm2, %v11703_v16  ;;  %8905 = vmatmul.mubr.msk.f32.gmra.mrb[88].mxu0 %vm3252_vm2, %v1752_v57  ;;  %v7141_v57 = vld [vmem:[%s13222_s3 + $0x198] sm:$0xff] }
 0x1be   :  { %8872 = vmatprep.mubr.msk.f32.mxu1 %vm10167_vm1, %v10168_v36  ;;  %8907 = vmatprep.mubr.msk.f32.mxu0 %vm10167_vm1, %v10168_v36  ;;  %v9728_v23 = vpack.c.bf16 %v7141_v57, %v7140_v27 }
 0x1c1   :  { %8873 = vmatmul.mubr.msk.f32.gmra.mrb[80].mxu1 %vm3252_vm2, %v11715_v0  ;;  %8908 = vmatmul.mubr.msk.f32.gmra.mrb[90].mxu0 %vm3252_vm2, %v11738_v13 }
 0x1c2   :  { %8875 = vmatprep.mubr.msk.f32.mxu1 %vm10167_vm1, %v10168_v36  ;;  %8910 = vmatprep.mubr.msk.f32.mxu0 %vm10167_vm1, %v10168_v36 }
 0x1c5   :  { %8876 = vmatmul.mubr.msk.f32.gmra.mrb[82].mxu1 %vm3252_vm2, %v1751_v61  ;;  %8911 = vmatmul.mubr.msk.f32.gmra.mrb[92].mxu0 %vm3252_vm2, %v11753_v34 }
 0x1c6   :  { %8878 = vmatprep.mubr.msk.f32.mxu1 %vm10167_vm1, %v10168_v36  ;;  %8913 = vmatprep.mubr.msk.f32.mxu0 %vm10167_vm1, %v10168_v36 }
 0x1c7   :  { %v8495_v32 = vpop.f32.mrb[16].mxu0  ;;  %v11851_v11 = vpop.f32.mrb[16].mxu1 }
 0x1c8   :  { %v2407_v59 = vpop.f32.mrb[17].mxu0  ;;  %v11853_v3 = vpop.f32.mrb[17].mxu1  ;;  %v11916_v29 = vadd.f32 %v8495_v32, %v11372_v40 }
 0x1c9   :  { %8879 = vmatmul.mubr.msk.f32.gmra.mrb[84].mxu1 %vm3252_vm2, %v11738_v13  ;;  %8914 = vmatmul.mubr.msk.f32.gmra.mrb[94].mxu0 %vm3252_vm2, %v1756_v17  ;;  %v2502_v52 = vadd.f32 %v11372_v40, %v2407_v59 }
 0x1ca   :  { %8881 = vmatprep.mubr.msk.f32.mxu1 %vm10167_vm1, %v10168_v36  ;;  %8916 = vmatprep.mubr.msk.f32.mxu0 %vm10167_vm1, %v10168_v36  ;;  %v2519_v56 = vmax.f32 %v11916_v29, 0.0  ;;  %v9734_v29 = vpack.c.bf16 %v7154_v12, %v7153_v46 }
 0x1cb   :  { %v11871_v44 = vpop.f32.mrb[18].mxu0  ;;  %v11873_v49 = vpop.f32.mrb[18].mxu1  ;;  %v2518_v60 = vmax.f32 %v2502_v52, 0.0 }
 0x1cc   :  { %v2417_v50 = vpop.f32.mrb[19].mxu0  ;;  %v11875_v14 = vpop.f32.mrb[19].mxu1  ;;  %v2505_v22 = vadd.f32 %v11871_v44, %v11372_v40 }
 0x1cd   :  { %8882 = vmatmul.mubr.msk.f32.gmra.mrb[86].mxu1 %vm3252_vm2, %v11753_v34  ;;  %8917 = vmatmul.mubr.msk.f32.gmra.mrb[96].mxu0 %vm3252_vm2, %v1757_v10  ;;  %v11943_v5 = vadd.f32 %v11372_v40, %v2417_v50 }
 0x1ce   :  { %8884 = vmatprep.mubr.msk.f32.mxu1 %vm10167_vm1, %v10168_v36  ;;  %8919 = vmatprep.mubr.msk.f32.mxu0 %vm10167_vm1, %v10168_v36  ;;  %v2521_v44 = vmax.f32 %v2505_v22, 0.0 }
 0x1cf   :  { %v8501_v53 = vpop.f32.mrb[20].mxu0  ;;  %v11889_v55 = vpop.f32.mrb[20].mxu1  ;;  %v2520_v24 = vmax.f32 %v11943_v5, 0.0 }
 0x1d0   :  { %v2427_v2 = vpop.f32.mrb[21].mxu0  ;;  %v11897_v7 = vpop.f32.mrb[21].mxu1  ;;  %v2507_v4 = vadd.f32 %v8501_v53, %v11372_v40 }
 0x1d1   :  { %8885 = vmatmul.mubr.msk.f32.gmra.mrb[88].mxu1 %vm3252_vm2, %v1755_v41  ;;  %8920 = vmatmul.mubr.msk.f32.gmra.mrb[98].mxu0 %vm3252_vm2, %v1758_v15  ;;  %v11963_v25 = vadd.f32 %v11372_v40, %v2427_v2  ;;  %v9731_v2 = vpack.c.bf16 %v7152_v37, %v7151_v42  ;;  %v12247_v42 = vadd.f32 %v11372_v40, %v11897_v7 }
 0x1d2   :  { %8930 = vmatprep.mubr.msk.f32.mxu1 %vm10167_vm1, %v10168_v36  ;;  %8965 = vmatprep.mubr.msk.f32.mxu0 %vm10167_vm1, %v10168_v36 }
 0x1d3   :  { %v11918_v43 = vpop.f32.mrb[22].mxu0  ;;  %v11920_v31 = vpop.f32.mrb[22].mxu1  ;;  %v2522_v8 = vmax.f32 %v11963_v25, 0.0  ;;  %v7177_v25 = vld [vmem:[%s13222_s3 + $0xe0] sm:$0xff] }
 0x1d4   :  { %v2437_v45 = vpop.f32.mrb[23].mxu0  ;;  %v11922_v6 = vpop.f32.mrb[23].mxu1 }
 0x1d5   :  { %8931 = vmatmul.mubr.msk.f32.vlgmr.msra.gmra.mrb[90].mxu1 %vm3252_vm2, %v11703_v16  ;;  %8966 = vmatmul.mubr.msk.f32.vlgmr.msra.gmra.mrb[100].mxu0 %vm3252_vm2, %v2518_v60  ;;  %v2508_v47 = vadd.f32 %v11372_v40, %v2437_v45  ;;  %v7166_v60 = vld [vmem:[%s13222_s3 + $0xb0] sm:$0xff]  ;;  %v7167_v45 = vld [vmem:[%s13222_s3 + $0xb8] sm:$0xff] }
 0x1d6   :  { %9720 = vmatpush3.bf16.msra.mxu1 %v9719_v28  ;;  %8933 = vmatprep.mubr.msk.f32.mxu1 %vm10167_vm1, %v10168_v36  ;;  %v9740_v54 = vpack.c.bf16 %v7167_v45, %v7166_v60 }
 0x1d7   :  { %v8507_v16 = vpop.f32.mrb[24].mxu0  ;;  %v11945_v48 = vpop.f32.mrb[24].mxu1  ;;  %8968 = vmatprep.mubr.msk.f32.mxu0 %vm10167_vm1, %v10168_v36  ;;  %9721 = vmatprep.subr.bf16.mxu1 %v10166_v30 }
 0x1d8   :  { %v2447_v35 = vpop.f32.mrb[25].mxu0  ;;  %v11950_v20 = vpop.f32.mrb[25].mxu1  ;;  %9726 = vmatpush3.bf16.msra.mxu0 %v9725_v33  ;;  %v12127_v33 = vadd.f32 %v11918_v43, %v11372_v40 }
 0x1d9   :  { %8934 = vmatmul.mubr.msk.f32.gmra.mrb[92].mxu1 %vm3252_vm2, %v11715_v0  ;;  %8969 = vmatmul.mubr.msk.f32.gmra.mrb[102].mxu0 %vm3252_vm2, %v2519_v56  ;;  %v2510_v52 = vadd.f32 %v11372_v40, %v2447_v35  ;;  %v3211_v35 = vadd.f32 %v11372_v40, %v11853_v3  ;;  %v7190_v3 = vld [vmem:[%s13222_s3 + $0x1a0] sm:$0xff] }
 0x1da   :  { %8936 = vmatprep.mubr.msk.f32.mxu1 %vm10167_vm1, %v10168_v36  ;;  %8971 = vmatprep.mubr.msk.f32.mxu0 %vm10167_vm1, %v10168_v36  ;;  %v2525_v27 = vmax.f32 %v12127_v33, 0.0 }
 0x1db   :  { %v11965_v38 = vpop.f32.mrb[26].mxu0  ;;  %v11967_v39 = vpop.f32.mrb[26].mxu1  ;;  %9723 = vmatpush3.bf16.msra.mxu1 %v9722_v51  ;;  %9727 = vmatprep.subr.bf16.mxu0 %v10166_v30  ;;  %v2526_v53 = vmax.f32 %v2510_v52, 0.0  ;;  %v7193_v52 = vld [vmem:[%s13222_s3 + $0x1b8] sm:$0xff] }
 0x1dc   :  { %v2457_v0 = vpop.f32.mrb[27].mxu0  ;;  %v11970_v63 = vpop.f32.mrb[27].mxu1  ;;  %9729 = vmatpush3.bf16.msra.mxu0 %v9728_v23  ;;  %9730 = vmatprep.subr.bf16.mxu1 %v10166_v30  ;;  %v12162_v5 = vadd.f32 %v11965_v38, %v11372_v40  ;;  %v7178_v38 = vld [vmem:[%s13222_s3 + $0xe8] sm:$0xff] }
 0x1dd   :  { %8937 = vmatmul.mubr.msk.f32.gmra.mrb[94].mxu1 %vm3252_vm2, %v1751_v61  ;;  %8972 = vmatmul.mubr.msk.f32.gmra.mrb[104].mxu0 %vm3252_vm2, %v2520_v24  ;;  %v12001_v61 = vmax.f32 %v2507_v4, 0.0  ;;  %v2512_v58 = vadd.f32 %v11372_v40, %v2457_v0  ;;  %v7191_v0 = vld [vmem:[%s13222_s3 + $0x1a8] sm:$0xff]  ;;  %v9743_v4 = vpack.c.bf16 %v7178_v38, %v7177_v25 }
 0x1de   :  { %8939 = vmatprep.mubr.msk.f32.mxu1 %vm10167_vm1, %v10168_v36  ;;  %8974 = vmatprep.mubr.msk.f32.mxu0 %vm10167_vm1, %v10168_v36  ;;  %v2529_v23 = vmax.f32 %v12162_v5, 0.0 }
 0x1df   :  { %v11985_v9 = vpop.f32.mrb[28].mxu0  ;;  %v11987_v18 = vpop.f32.mrb[28].mxu1  ;;  %9736 = vmatprep.subr.bf16.mxu0 %v10166_v30 }
 0x1e0   :  { %v11990_v21 = vpop.f32.mrb[29].mxu0  ;;  %v11992_v26 = vpop.f32.mrb[29].mxu1  ;;  %v12151_v43 = vadd.f32 %v11985_v9, %v11372_v40  ;;  %v3227_v9 = vmax.f32 %v3211_v35, 0.0 }
 0x1e1   :  { %8940 = vmatmul.mubr.msk.f32.gmra.mrb[96].mxu1 %vm3252_vm2, %v11738_v13  ;;  %8975 = vmatmul.mubr.msk.f32.gmra.mrb[106].mxu0 %vm3252_vm2, %v2522_v8  ;;  %v12020_v13 = vmax.f32 %v2508_v47, 0.0  ;;  %v2514_v57 = vadd.f32 %v11372_v40, %v11990_v21  ;;  %v7179_v21 = vld [vmem:[%s13222_s3 + $0xf0] sm:$0xff]  ;;  %v7180_v47 = vld [vmem:[%s13222_s3 + $0xf8] sm:$0xff] }
 0x1e2   :  { %8942 = vmatprep.mubr.msk.f32.mxu1 %vm10167_vm1, %v10168_v36  ;;  %8977 = vmatprep.mubr.msk.f32.mxu0 %vm10167_vm1, %v10168_v36  ;;  %v9746_v62 = vpack.c.bf16 %v7180_v47, %v7179_v21  ;;  %v7205_v21 = vld [vmem:[%s13222_s3 + $0x1f0] sm:$0xff]  ;;  %v7206_v47 = vld [vmem:[%s13222_s3 + $0x1f8] sm:$0xff] }
 0x1e3   :  { %v12004_v17 = vpop.f32.mrb[30].mxu0  ;;  %v12006_v32 = vpop.f32.mrb[30].mxu1 }
 0x1e4   :  { %v12008_v59 = vpop.f32.mrb[31].mxu0  ;;  %v12010_v50 = vpop.f32.mrb[31].mxu1 }
 0x1e5   :  { %8943 = vmatmul.mubr.msk.f32.gmra.mrb[98].mxu1 %vm3252_vm2, %v11753_v34  ;;  %8978 = vmatmul.mubr.msk.f32.gmra.mrb[108].mxu0 %vm3252_vm2, %v12001_v61  ;;  %v2511_v34 = vadd.f32 %v8507_v16, %v11372_v40  ;;  %v2531_v16 = vmax.f32 %v12151_v43, 0.0  ;;  %v12167_v51 = vadd.f32 %v11372_v40, %v12008_v59  ;;  %v9749_v59 = vpack.c.bf16 %v7191_v0, %v7190_v3 }
 0x1e6   :  { %8945 = vmatprep.mubr.msk.f32.mxu1 %vm10167_vm1, %v10168_v36  ;;  %8980 = vmatprep.mubr.msk.f32.mxu0 %vm10167_vm1, %v10168_v36 }
 0x1e9   :  { %8946 = vmatmul.mubr.msk.f32.gmra.mrb[100].mxu1 %vm3252_vm2, %v1755_v41  ;;  %8981 = vmatmul.mubr.msk.f32.gmra.mrb[110].mxu0 %vm3252_vm2, %v12020_v13  ;;  %v12043_v41 = vmax.f32 %v2511_v34, 0.0 }
 0x1ea   :  { %8948 = vmatprep.mubr.msk.f32.mxu1 %vm10167_vm1, %v10168_v36  ;;  %8983 = vmatprep.mubr.msk.f32.mxu0 %vm10167_vm1, %v10168_v36 }
 0x1ed   :  { %8949 = vmatmul.mubr.msk.f32.gmra.mrb[102].mxu1 %vm3252_vm2, %v1757_v10  ;;  %8984 = vmatmul.mubr.msk.f32.gmra.mrb[112].mxu0 %vm3252_vm2, %v2526_v53  ;;  %v12055_v10 = vmax.f32 %v2512_v58, 0.0 }
 0x1ee   :  { %8951 = vmatprep.mubr.msk.f32.mxu1 %vm10167_vm1, %v10168_v36  ;;  %8986 = vmatprep.mubr.msk.f32.mxu0 %vm10167_vm1, %v10168_v36 }
 0x1f1   :  { %8952 = vmatmul.mubr.msk.f32.gmra.mrb[104].mxu1 %vm3252_vm2, %v1758_v15  ;;  %8987 = vmatmul.mubr.msk.f32.gmra.mrb[114].mxu0 %vm3252_vm2, %v12043_v41  ;;  %v7164_v15 = vld [vmem:[%s13222_s3 + $0xa0] sm:$0xff] }
 0x1f2   :  { %8954 = vmatprep.mubr.msk.f32.mxu1 %vm10167_vm1, %v10168_v36  ;;  %8989 = vmatprep.mubr.msk.f32.mxu0 %vm10167_vm1, %v10168_v36  ;;  %v9737_v28 = vpack.c.bf16 %v7165_v1, %v7164_v15  ;;  %v3231_v15 = vmax.f32 %v12247_v42, 0.0 }
 0x1f5   :  { %8955 = vmatmul.mubr.msk.f32.gmra.mrb[106].mxu1 %vm3252_vm2, %v1759_v19  ;;  %8990 = vmatmul.mubr.msk.f32.gmra.mrb[116].mxu0 %vm3252_vm2, %v12055_v10 }
 0x1f6   :  { %9000 = vmatprep.mubr.msk.f32.mxu1 %vm10167_vm1, %v10168_v36  ;;  %9035 = vmatprep.mubr.msk.f32.mxu0 %vm10167_vm1, %v10168_v36 }
 0x1f9   :  { %9001 = vmatmul.mubr.msk.f32.vlgmr.msra.gmra.mrb[108].mxu1 %vm3252_vm2, %v2519_v56  ;;  %9036 = vmatmul.mubr.msk.f32.vlgmr.msra.gmra.mrb[118].mxu0 %vm3252_vm2, %v2522_v8  ;;  %v2530_v56 = vmax.f32 %v2514_v57, 0.0  ;;  %v12206_v8 = vadd.f32 %v11851_v11, %v11372_v40  ;;  %v7192_v11 = vld [vmem:[%s13222_s3 + $0x1b0] sm:$0xff] }
 0x1fa   :  { %9732 = vmatpush3.bf16.msra.mxu1 %v9731_v2  ;;  %9003 = vmatprep.mubr.msk.f32.mxu1 %vm10167_vm1, %v10168_v36  ;;  %v9752_v19 = vpack.c.bf16 %v7193_v52, %v7192_v11 }
 0x1fb   :  { %9038 = vmatprep.mubr.msk.f32.mxu0 %vm10167_vm1, %v10168_v36  ;;  %9733 = vmatprep.subr.bf16.mxu1 %v10166_v30  ;;  %v3228_v34 = vmax.f32 %v12206_v8, 0.0  ;;  %v9758_v8 = vpack.c.bf16 %v7206_v47, %v7205_v21 }
 0x1fc   :  { %9738 = vmatpush3.bf16.msra.mxu0 %v9737_v28 }
 0x1fd   :  { %9004 = vmatmul.mubr.msk.f32.gmra.mrb[110].mxu1 %vm3252_vm2, %v2520_v24  ;;  %9039 = vmatmul.mubr.msk.f32.gmra.mrb[120].mxu0 %vm3252_vm2, %v12001_v61  ;;  %v2532_v24 = vmax.f32 %v12167_v51, 0.0  ;;  %v7204_v51 = vld [vmem:[%s13222_s3 + $0x1e8] sm:$0xff] }
 0x1fe   :  { %9006 = vmatprep.mubr.msk.f32.mxu1 %vm10167_vm1, %v10168_v36  ;;  %9041 = vmatprep.mubr.msk.f32.mxu0 %vm10167_vm1, %v10168_v36 }
 0x1ff   :  { %9735 = vmatpush3.bf16.msra.mxu1 %v9734_v29  ;;  %9739 = vmatprep.subr.bf16.mxu0 %v10166_v30 }
 0x200   :  { %9741 = vmatpush3.bf16.msra.mxu0 %v9740_v54  ;;  %9742 = vmatprep.subr.bf16.mxu1 %v10166_v30 }
 0x201   :  { %9007 = vmatmul.mubr.msk.f32.gmra.mrb[112].mxu1 %vm3252_vm2, %v2521_v44  ;;  %9042 = vmatmul.mubr.msk.f32.gmra.mrb[122].mxu0 %vm3252_vm2, %v12020_v13 }
 0x202   :  { %9009 = vmatprep.mubr.msk.f32.mxu1 %vm10167_vm1, %v10168_v36  ;;  %9044 = vmatprep.mubr.msk.f32.mxu0 %vm10167_vm1, %v10168_v36 }
 0x203   :  { %9748 = vmatprep.subr.bf16.mxu0 %v10166_v30 }
 0x205   :  { %9010 = vmatmul.mubr.msk.f32.gmra.mrb[114].mxu1 %vm3252_vm2, %v12001_v61  ;;  %9045 = vmatmul.mubr.msk.f32.gmra.mrb[124].mxu0 %vm3252_vm2, %v2526_v53  ;;  %v12228_v53 = vadd.f32 %v11372_v40, %v11875_v14  ;;  %v12266_v40 = vld [vmem:[%s13223_s2] ss:$0 sm:$0xff] }
 0x206   :  { %9012 = vmatprep.mubr.msk.f32.mxu1 %vm10167_vm1, %v10168_v36  ;;  %9047 = vmatprep.mubr.msk.f32.mxu0 %vm10167_vm1, %v10168_v36  ;;  %v3216_v7 = vadd.f32 %v12266_v40, %v11889_v55  ;;  %v3217_v46 = vadd.f32 %v12266_v40, %v11922_v6  ;;  %v12301_v6 = vadd.f32 %v12266_v40, %v11950_v20 }
 0x207   :  { %v3229_v14 = vmax.f32 %v12228_v53, 0.0  ;;  %v3220_v20 = vadd.f32 %v12266_v40, %v11945_v48  ;;  %v3221_v33 = vadd.f32 %v12266_v40, %v11970_v63 }
 0x208   :  { %v12283_v55 = vmax.f32 %v3216_v7, 0.0 }
 0x209   :  { %9013 = vmatmul.mubr.msk.f32.gmra.mrb[116].mxu1 %vm3252_vm2, %v12020_v13  ;;  %9048 = vmatmul.mubr.msk.f32.gmra.mrb[126].mxu0 %vm3252_vm2, %v12043_v41  ;;  %v12331_v48 = vmax.f32 %v3220_v20, 0.0  ;;  %v12350_v63 = vmax.f32 %v3221_v33, 0.0 }
 0x20a   :  { %9015 = vmatprep.mubr.msk.f32.mxu1 %vm10167_vm1, %v10168_v36  ;;  %9050 = vmatprep.mubr.msk.f32.mxu0 %vm10167_vm1, %v10168_v36 }
 0x20d   :  { %9016 = vmatmul.mubr.msk.f32.gmra.mrb[118].mxu1 %vm3252_vm2, %v2525_v27  ;;  %9051 = vmatmul.mubr.msk.f32.gmra.mrb[128].mxu0 %vm3252_vm2, %v12055_v10 }
 0x20e   :  { %9018 = vmatprep.mubr.msk.f32.mxu1 %vm10167_vm1, %v10168_v36  ;;  %9053 = vmatprep.mubr.msk.f32.mxu0 %vm10167_vm1, %v10168_v36 }
 0x211   :  { %9019 = vmatmul.mubr.msk.f32.gmra.mrb[120].mxu1 %vm3252_vm2, %v12043_v41  ;;  %9054 = vmatmul.mubr.msk.f32.gmra.mrb[130].mxu0 %vm3252_vm2, %v2530_v56 }
 0x212   :  { %9021 = vmatprep.mubr.msk.f32.mxu1 %vm10167_vm1, %v10168_v36  ;;  %9056 = vmatprep.mubr.msk.f32.mxu0 %vm10167_vm1, %v10168_v36 }
 0x215   :  { %9022 = vmatmul.mubr.msk.f32.gmra.mrb[122].mxu1 %vm3252_vm2, %v12055_v10  ;;  %9057 = vmatmul.mubr.msk.f32.gmra.mrb[132].mxu0 %vm3252_vm2, %v2531_v16 }
 0x216   :  { %9024 = vmatprep.mubr.msk.f32.mxu1 %vm10167_vm1, %v10168_v36  ;;  %9059 = vmatprep.mubr.msk.f32.mxu0 %vm10167_vm1, %v10168_v36 }
 0x219   :  { %9025 = vmatmul.mubr.msk.f32.gmra.mrb[124].mxu1 %vm3252_vm2, %v2529_v23  ;;  %9060 = vmatmul.mubr.msk.f32.gmra.mrb[134].mxu0 %vm3252_vm2, %v2532_v24 }
 0x21a   :  { %9070 = vmatprep.mubr.msk.f32.mxu1 %vm10167_vm1, %v10168_v36  ;;  %9105 = vmatprep.mubr.msk.f32.mxu0 %vm10167_vm1, %v10168_v36 }
 0x21d   :  { %9071 = vmatmul.mubr.msk.f32.vlgmr.msra.gmra.mrb[126].mxu1 %vm3252_vm2, %v12001_v61  ;;  %9106 = vmatmul.mubr.msk.f32.vlgmr.msra.gmra.mrb[136].mxu0 %vm3252_vm2, %v3227_v9 }
 0x21e   :  { %9744 = vmatpush3.bf16.msra.mxu1 %v9743_v4  ;;  %9073 = vmatprep.mubr.msk.f32.mxu1 %vm10167_vm1, %v10168_v36 }
 0x21f   :  { %v12230_v61 = vpop.f32.mrb[32].mxu0  ;;  %9108 = vmatprep.mubr.msk.f32.mxu0 %vm10167_vm1, %v10168_v36  ;;  %9745 = vmatprep.subr.bf16.mxu1 %v10166_v30 }
 0x220   :  { %v8687_v58 = vpop.f32.mrb[33].mxu0  ;;  %9750 = vmatpush3.bf16.msra.mxu0 %v9749_v59 }
 0x221   :  { %9074 = vmatmul.mubr.msk.f32.gmra.mrb[128].mxu1 %vm3252_vm2, %v12020_v13  ;;  %9109 = vmatmul.mubr.msk.f32.gmra.mrb[138].mxu0 %vm3252_vm2, %v3228_v34 }
 0x222   :  { %9076 = vmatprep.mubr.msk.f32.mxu1 %vm10167_vm1, %v10168_v36  ;;  %9111 = vmatprep.mubr.msk.f32.mxu0 %vm10167_vm1, %v10168_v36 }
 0x223   :  { %9747 = vmatpush3.bf16.msra.mxu1 %v9746_v62  ;;  %9751 = vmatprep.subr.bf16.mxu0 %v10166_v30 }
 0x224   :  { %v12250_v13 = vpop.f32.mrb[34].mxu0  ;;  %9753 = vmatpush3.bf16.msra.mxu0 %v9752_v19  ;;  %9754 = vmatprep.subr.bf16.mxu1 %v10166_v30 }
 0x225   :  { %v8690_v37 = vpop.f32.mrb[35].mxu0  ;;  %9077 = vmatmul.mubr.msk.f32.gmra.mrb[130].mxu1 %vm3252_vm2, %v2525_v27  ;;  %9112 = vmatmul.mubr.msk.f32.gmra.mrb[140].mxu0 %vm3252_vm2, %v3229_v14  ;;  %v2517_v27 = vadd.f32 %v12266_v40, %v12004_v17 }
 0x226   :  { %9079 = vmatprep.mubr.msk.f32.mxu1 %vm10167_vm1, %v10168_v36  ;;  %9114 = vmatprep.mubr.msk.f32.mxu0 %vm10167_vm1, %v10168_v36 }
 0x227   :  { %9760 = vmatprep.subr.bf16.mxu0 %v10166_v30  ;;  %v2533_v17 = vmax.f32 %v2517_v27, 0.0 }
 0x228   :  { %v12272_v1 = vpop.f32.mrb[36].mxu0 }
 0x229   :  { %v8693_v2 = vpop.f32.mrb[37].mxu0  ;;  %9080 = vmatmul.mubr.msk.f32.gmra.mrb[132].mxu1 %vm3252_vm2, %v12043_v41  ;;  %9115 = vmatmul.mubr.msk.f32.gmra.mrb[142].mxu0 %vm3252_vm2, %v3231_v15  ;;  %v12297_v41 = vmax.f32 %v3217_v46, 0.0 }
 0x22a   :  { %9082 = vmatprep.mubr.msk.f32.mxu1 %vm10167_vm1, %v10168_v36  ;;  %9117 = vmatprep.mubr.msk.f32.mxu0 %vm10167_vm1, %v10168_v36 }
 0x22c   :  { %v12287_v12 = vpop.f32.mrb[38].mxu0 }
 0x22d   :  { %v8696_v28 = vpop.f32.mrb[39].mxu0  ;;  %9083 = vmatmul.mubr.msk.f32.gmra.mrb[134].mxu1 %vm3252_vm2, %v12055_v10  ;;  %9118 = vmatmul.mubr.msk.f32.gmra.mrb[144].mxu0 %vm3252_vm2, %v12283_v55  ;;  %v3235_v10 = vmax.f32 %v12301_v6, 0.0 }
 0x22e   :  { %9085 = vmatprep.mubr.msk.f32.mxu1 %vm10167_vm1, %v10168_v36  ;;  %9120 = vmatprep.mubr.msk.f32.mxu0 %vm10167_vm1, %v10168_v36 }
 0x230   :  { %v12303_v60 = vpop.f32.mrb[40].mxu0 }
 0x231   :  { %v8699_v45 = vpop.f32.mrb[41].mxu0  ;;  %9086 = vmatmul.mubr.msk.f32.gmra.mrb[136].mxu1 %vm3252_vm2, %v2529_v23  ;;  %9121 = vmatmul.mubr.msk.f32.gmra.mrb[146].mxu0 %vm3252_vm2, %v12297_v41 }
 0x232   :  { %9088 = vmatprep.mubr.msk.f32.mxu1 %vm10167_vm1, %v10168_v36  ;;  %9123 = vmatprep.mubr.msk.f32.mxu0 %vm10167_vm1, %v10168_v36 }
 0x234   :  { %v12317_v22 = vpop.f32.mrb[42].mxu0  ;;  %v12319_v29 = vpop.f32.mrb[32].mxu1 }
 0x235   :  { %v8702_v54 = vpop.f32.mrb[43].mxu0  ;;  %v8708_v44 = vpop.f32.mrb[33].mxu1  ;;  %9089 = vmatmul.mubr.msk.f32.gmra.mrb[138].mxu1 %vm3252_vm2, %v2531_v16  ;;  %9124 = vmatmul.mubr.msk.f32.gmra.mrb[148].mxu0 %vm3252_vm2, %v3235_v10  ;;  %v7203_v16 = vld [vmem:[%s13222_s3 + $0x1e0] sm:$0xff] }
 0x236   :  { %9091 = vmatprep.mubr.msk.f32.mxu1 %vm10167_vm1, %v10168_v36  ;;  %9126 = vmatprep.mubr.msk.f32.mxu0 %vm10167_vm1, %v10168_v36  ;;  %v9755_v3 = vpack.c.bf16 %v7204_v51, %v7203_v16  ;;  %v12425_v54 = vadd.f32 %v12266_v40, %v11920_v31 }
 0x238   :  { %v12337_v57 = vpop.f32.mrb[44].mxu0  ;;  %v12339_v43 = vpop.f32.mrb[34].mxu1  ;;  %v3234_v31 = vmax.f32 %v12425_v54, 0.0 }
 0x239   :  { %v8705_v56 = vpop.f32.mrb[45].mxu0  ;;  %v8711_v5 = vpop.f32.mrb[35].mxu1  ;;  %9092 = vmatmul.mubr.msk.f32.gmra.mrb[140].mxu1 %vm3252_vm2, %v2532_v24  ;;  %9127 = vmatmul.mubr.msk.f32.gmra.mrb[150].mxu0 %vm3252_vm2, %v12331_v48 }
 0x23a   :  { %9094 = vmatprep.mubr.msk.f32.mxu1 %vm10167_vm1, %v10168_v36  ;;  %9129 = vmatprep.mubr.msk.f32.mxu0 %vm10167_vm1, %v10168_v36 }
 0x23c   :  { %v3465_v35 = vpop.f32.mrb[36].mxu1  ;;  %v3589_v23 = vpop.f32.mrb[46].mxu0 }
 0x23d   :  { %v3466_v24 = vadd.f32 %v3465_v35, %v12230_v61  ;;  %v8722_v25 = vpop.f32.mrb[37].mxu1  ;;  %v8757_v38 = vpop.f32.mrb[47].mxu0  ;;  %9095 = vmatmul.mubr.msk.f32.gmra.mrb[142].mxu1 %vm3252_vm2, %v2533_v17  ;;  %9130 = vmatmul.mubr.msk.f32.gmra.mrb[152].mxu0 %vm3252_vm2, %v12350_v63  ;;  %v3214_v61 = vadd.f32 %v12266_v40, %v11873_v49 }
 0x23e   :  { %9140 = vmatprep.mubr.msk.f32.mxu1 %vm10167_vm1, %v10168_v36  ;;  %9175 = vmatprep.mubr.msk.f32.mxu0 %vm10167_vm1, %v10168_v36 }
 0x23f   :  { %v12366_v0 = vadd.f32 %v3589_v23, %v3466_v24  ;;  %v3230_v49 = vmax.f32 %v3214_v61, 0.0 }
 0x240   :  { %v3470_v4 = vpop.f32.mrb[38].mxu1  ;;  %v3594_v9 = vpop.f32.mrb[48].mxu0 }
 0x241   :  { %v3471_v59 = vadd.f32 %v3470_v4, %v12250_v13  ;;  %v8725_v11 = vpop.f32.mrb[39].mxu1  ;;  %v8760_v52 = vpop.f32.mrb[49].mxu0  ;;  %9141 = vmatmul.mubr.msk.f32.vlgmr.msra.gmra.mrb[144].mxu1 %vm3252_vm2, %v3228_v34  ;;  %9176 = vmatmul.mubr.msk.f32.vlgmr.msra.gmra.mrb[154].mxu0 %vm3252_vm2, %v3231_v15 }
 0x242   :  { %9756 = vmatpush3.bf16.msra.mxu1 %v9755_v3  ;;  %9143 = vmatprep.mubr.msk.f32.mxu1 %vm10167_vm1, %v10168_v36 }
 0x243   :  { %v12385_v62 = vadd.f32 %v3594_v9, %v3471_v59  ;;  %9178 = vmatprep.mubr.msk.f32.mxu0 %vm10167_vm1, %v10168_v36  ;;  %9757 = vmatprep.subr.bf16.mxu1 %v10166_v30 }
 0x244   :  { %v3475_v34 = vpop.f32.mrb[40].mxu1  ;;  %v3599_v58 = vpop.f32.mrb[50].mxu0 }
 0x245   :  { %v3476_v19 = vadd.f32 %v3475_v34, %v12272_v1  ;;  %v8728_v42 = vpop.f32.mrb[41].mxu1  ;;  %v8763_v13 = vpop.f32.mrb[51].mxu0  ;;  %9144 = vmatmul.mubr.msk.f32.gmra.mrb[146].mxu1 %vm3252_vm2, %v3229_v14  ;;  %9179 = vmatmul.mubr.msk.f32.gmra.mrb[156].mxu0 %vm3252_vm2, %v12283_v55 }
 0x246   :  { %9146 = vmatprep.mubr.msk.f32.mxu1 %vm10167_vm1, %v10168_v36  ;;  %9181 = vmatprep.mubr.msk.f32.mxu0 %vm10167_vm1, %v10168_v36 }
 0x247   :  { %v12400_v37 = vadd.f32 %v3599_v58, %v3476_v19  ;;  %9759 = vmatpush3.bf16.msra.mxu1 %v9758_v8 }
 0x248   :  { %v3480_v7 = vpop.f32.mrb[42].mxu1  ;;  %v3604_v15 = vpop.f32.mrb[52].mxu0  ;;  %9772 = vmatprep.subr.bf16.mxu1 %v10166_v30 }
 0x249   :  { %v3481_v53 = vadd.f32 %v3480_v7, %v12287_v12  ;;  %v8731_v14 = vpop.f32.mrb[43].mxu1  ;;  %v8766_v1 = vpop.f32.mrb[53].mxu0  ;;  %9147 = vmatmul.mubr.msk.f32.gmra.mrb[148].mxu1 %vm3252_vm2, %v3230_v49  ;;  %9182 = vmatmul.mubr.msk.f32.gmra.mrb[158].mxu0 %vm3252_vm2, %v12297_v41 }
 0x24a   :  { %9149 = vmatprep.mubr.msk.f32.mxu1 %vm10167_vm1, %v10168_v36  ;;  %9184 = vmatprep.mubr.msk.f32.mxu0 %vm10167_vm1, %v10168_v36 }
 0x24b   :  { %v12411_v2 = vadd.f32 %v3604_v15, %v3481_v53 }
 0x24c   :  { %v3485_v46 = vpop.f32.mrb[44].mxu1  ;;  %v3609_v28 = vpop.f32.mrb[54].mxu0 }
 0x24d   :  { %v3486_v45 = vadd.f32 %v3485_v46, %v12303_v60  ;;  %v8734_v12 = vpop.f32.mrb[45].mxu1  ;;  %v8769_v20 = vpop.f32.mrb[55].mxu0  ;;  %9150 = vmatmul.mubr.msk.f32.gmra.mrb[150].mxu1 %vm3252_vm2, %v12283_v55  ;;  %9185 = vmatmul.mubr.msk.f32.gmra.mrb[160].mxu0 %vm3252_vm2, %v3235_v10  ;;  %v3223_v10 = vadd.f32 %v12266_v40, %v11992_v26  ;;  %v12455_v26 = vadd.f32 %v12266_v40, %v11987_v18 }
 0x24e   :  { %9152 = vmatprep.mubr.msk.f32.mxu1 %vm10167_vm1, %v10168_v36  ;;  %9187 = vmatprep.mubr.msk.f32.mxu0 %vm10167_vm1, %v10168_v36  ;;  %v12469_v18 = vadd.f32 %v12266_v40, %v11967_v39 }
 0x24f   :  { %v12427_v60 = vadd.f32 %v3609_v28, %v3486_v45  ;;  %v3240_v9 = vmax.f32 %v12455_v26, 0.0 }
 0x250   :  { %v3490_v44 = vpop.f32.mrb[46].mxu1  ;;  %v3614_v33 = vpop.f32.mrb[56].mxu0  ;;  %v3238_v39 = vmax.f32 %v12469_v18, 0.0 }
 0x251   :  { %v3491_v27 = vadd.f32 %v3490_v44, %v12317_v22  ;;  %v8737_v56 = vpop.f32.mrb[47].mxu1  ;;  %v8772_v6 = vpop.f32.mrb[57].mxu0  ;;  %9153 = vmatmul.mubr.msk.f32.gmra.mrb[152].mxu1 %vm3252_vm2, %v12297_v41  ;;  %9188 = vmatmul.mubr.msk.f32.gmra.mrb[162].mxu0 %vm3252_vm2, %v12331_v48 }
 0x252   :  { %9155 = vmatprep.mubr.msk.f32.mxu1 %vm10167_vm1, %v10168_v36  ;;  %9190 = vmatprep.mubr.msk.f32.mxu0 %vm10167_vm1, %v10168_v36 }
 0x253   :  { %v12441_v22 = vadd.f32 %v3614_v33, %v3491_v27 }
 0x254   :  { %v3495_v5 = vpop.f32.mrb[48].mxu1  ;;  %v3619_v17 = vpop.f32.mrb[58].mxu0 }
 0x255   :  { %v3496_v16 = vadd.f32 %v3495_v5, %v12337_v57  ;;  %v8740_v51 = vpop.f32.mrb[49].mxu1  ;;  %v8775_v35 = vpop.f32.mrb[59].mxu0  ;;  %9156 = vmatmul.mubr.msk.f32.gmra.mrb[154].mxu1 %vm3252_vm2, %v3234_v31  ;;  %9191 = vmatmul.mubr.msk.f32.gmra.mrb[164].mxu0 %vm3252_vm2, %v12350_v63  ;;  %v3239_v57 = vmax.f32 %v3223_v10, 0.0 }
 0x256   :  { %9158 = vmatprep.mubr.msk.f32.mxu1 %vm10167_vm1, %v10168_v36  ;;  %9193 = vmatprep.mubr.msk.f32.mxu0 %vm10167_vm1, %v10168_v36 }
 0x257   :  { %v12457_v23 = vadd.f32 %v3619_v17, %v3496_v16 }
 0x258   :  { %v3500_v24 = vpop.f32.mrb[50].mxu1  ;;  %v3624_v25 = vpop.f32.mrb[60].mxu0 }
 0x259   :  { %v3501_v38 = vadd.f32 %v3500_v24, %v12319_v29  ;;  %v8743_v3 = vpop.f32.mrb[51].mxu1  ;;  %v8778_v4 = vpop.f32.mrb[61].mxu0  ;;  %9159 = vmatmul.mubr.msk.f32.gmra.mrb[156].mxu1 %vm3252_vm2, %v12331_v48  ;;  %9194 = vmatmul.mubr.msk.f32.gmra.mrb[166].mxu0 %vm3252_vm2, %v3239_v57  ;;  %v12474_v29 = vadd.f32 %v12266_v40, %v12010_v50 }
 0x25a   :  { %9161 = vmatprep.mubr.msk.f32.mxu1 %vm10167_vm1, %v10168_v36  ;;  %9196 = vmatprep.mubr.msk.f32.mxu0 %vm10167_vm1, %v10168_v36 }
 0x25b   :  { %v12476_v21 = vadd.f32 %v3624_v25, %v3501_v38  ;;  %v3241_v50 = vmax.f32 %v12474_v29, 0.0 }
 0x25c   :  { %v3505_v47 = vpop.f32.mrb[52].mxu1  ;;  %v3629_v59 = vpop.f32.mrb[62].mxu0 }
 0x25d   :  { %v3506_v11 = vadd.f32 %v3505_v47, %v12339_v43  ;;  %v8746_v52 = vpop.f32.mrb[53].mxu1  ;;  %v8781_v61 = vpop.f32.mrb[63].mxu0  ;;  %9162 = vmatmul.mubr.msk.f32.gmra.mrb[158].mxu1 %vm3252_vm2, %v12350_v63  ;;  %9197 = vmatmul.mubr.msk.f32.gmra.mrb[168].mxu0 %vm3252_vm2, %v3240_v9 }
 0x25e   :  { %9164 = vmatprep.mubr.msk.f32.mxu1 %vm10167_vm1, %v10168_v36  ;;  %9199 = vmatprep.mubr.msk.f32.mxu0 %vm10167_vm1, %v10168_v36 }
 0x25f   :  { %v12490_v43 = vadd.f32 %v3629_v59, %v3506_v11 }
 0x260   :  { %v3716_v8 = vpop.f32.mrb[54].mxu1  ;;  %v3867_v34 = vpop.f32.mrb[64].mxu0 }
 0x261   :  { %v3760_v58 = vadd.f32 %v3716_v8, %v12366_v0  ;;  %v8792_v19 = vpop.f32.mrb[55].mxu1  ;;  %v8827_v42 = vpop.f32.mrb[65].mxu0  ;;  %9165 = vmatmul.mubr.msk.f32.gmra.mrb[160].mxu1 %vm3252_vm2, %v3238_v39  ;;  %9200 = vmatmul.mubr.msk.f32.gmra.mrb[170].mxu0 %vm3252_vm2, %v3241_v50 }
 0x262   :  { %9210 = vmatprep.mubr.msk.f32.mxu1 %vm10167_vm1, %v10168_v36  ;;  %9253 = vmatprep.mubr.msk.f32.mxu0 %vm10167_vm1, %v10168_v36 }
 0x263   :  { %v12501_v13 = vadd.f32 %v3867_v34, %v3760_v58 }
 0x264   :  { %v3721_v49 = vpop.f32.mrb[56].mxu1  ;;  %v3872_v7 = vpop.f32.mrb[66].mxu0 }
 0x265   :  { %v3761_v0 = vadd.f32 %v3721_v49, %v12385_v62  ;;  %v8795_v15 = vpop.f32.mrb[57].mxu1  ;;  %v8830_v53 = vpop.f32.mrb[67].mxu0  ;;  %9211 = vmatmul.mubr.msk.f32.vlgmr.msra.gmra.mrb[162].mxu1 %vm3252_vm2, %v12283_v55 }
 0x266   :  { %9213 = vmatprep.mubr.msk.f32.mxu1 %vm10167_vm1, %v10168_v36 }
 0x267   :  { %v12508_v14 = vadd.f32 %v3872_v7, %v3761_v0 }
 0x268   :  { %v3726_v1 = vpop.f32.mrb[58].mxu1  ;;  %v3877_v46 = vpop.f32.mrb[68].mxu0 }
 0x269   :  { %v3762_v28 = vadd.f32 %v3726_v1, %v12400_v37  ;;  %v8798_v45 = vpop.f32.mrb[59].mxu1  ;;  %v8833_v12 = vpop.f32.mrb[69].mxu0  ;;  %9214 = vmatmul.mubr.msk.f32.gmra.mrb[164].mxu1 %vm3252_vm2, %v12297_v41 }
 0x26a   :  { %9216 = vmatprep.mubr.msk.f32.mxu1 %vm10167_vm1, %v10168_v36 }
 0x26b   :  { %v12515_v62 = vadd.f32 %v3877_v46, %v3762_v28 }
 0x26c   :  { %v3731_v55 = vpop.f32.mrb[60].mxu1  ;;  %v3882_v20 = vpop.f32.mrb[70].mxu0 }
 0x26d   :  { %v3763_v44 = vadd.f32 %v3731_v55, %v12411_v2  ;;  %v8801_v33 = vpop.f32.mrb[61].mxu1  ;;  %v8836_v27 = vpop.f32.mrb[71].mxu0  ;;  %9217 = vmatmul.mubr.msk.f32.gmra.mrb[166].mxu1 %vm3252_vm2, %v3234_v31 }
 0x26e   :  { %9219 = vmatprep.mubr.msk.f32.mxu1 %vm10167_vm1, %v10168_v36 }
 0x26f   :  { %v12523_v37 = vadd.f32 %v3882_v20, %v3763_v44 }
 0x270   :  { %v3736_v41 = vpop.f32.mrb[62].mxu1  ;;  %v3887_v56 = vpop.f32.mrb[72].mxu0 }
 0x271   :  { %v3764_v6 = vadd.f32 %v3736_v41, %v12427_v60  ;;  %v8804_v10 = vpop.f32.mrb[63].mxu1  ;;  %v8839_v5 = vpop.f32.mrb[73].mxu0  ;;  %9220 = vmatmul.mubr.msk.f32.gmra.mrb[168].mxu1 %vm3252_vm2, %v12331_v48 }
 0x272   :  { %9222 = vmatprep.mubr.msk.f32.mxu1 %vm10167_vm1, %v10168_v36 }
 0x273   :  { %v12530_v2 = vadd.f32 %v3887_v56, %v3764_v6 }
 0x274   :  { %v3741_v54 = vpop.f32.mrb[64].mxu1  ;;  %v3892_v31 = vpop.f32.mrb[74].mxu0 }
 0x275   :  { %v3765_v17 = vadd.f32 %v3741_v54, %v12441_v22  ;;  %v8807_v16 = vpop.f32.mrb[65].mxu1  ;;  %v8842_v51 = vpop.f32.mrb[75].mxu0  ;;  %9223 = vmatmul.mubr.msk.f32.gmra.mrb[170].mxu1 %vm3252_vm2, %v12350_v63 }
 0x276   :  { %9225 = vmatprep.mubr.msk.f32.mxu1 %vm10167_vm1, %v10168_v36 }
 0x277   :  { %v3916_v60 = vadd.f32 %v3892_v31, %v3765_v17 }
 0x278   :  { %v3746_v35 = vpop.f32.mrb[66].mxu1  ;;  %v3897_v48 = vpop.f32.mrb[76].mxu0 }
 0x279   :  { %v3766_v57 = vadd.f32 %v3746_v35, %v12457_v23  ;;  %v8810_v24 = vpop.f32.mrb[67].mxu1  ;;  %v8845_v25 = vpop.f32.mrb[77].mxu0  ;;  %9226 = vmatmul.mubr.msk.f32.gmra.mrb[172].mxu1 %vm3252_vm2, %v3238_v39  ;;  %v3226_v23 = vadd.f32 %v12266_v40, %v12006_v32 }
 0x27a   :  { %9228 = vmatprep.mubr.msk.f32.mxu1 %vm10167_vm1, %v10168_v36 }
 0x27b   :  { %v3917_v22 = vadd.f32 %v3897_v48, %v3766_v57  ;;  %v3242_v26 = vmax.f32 %v3226_v23, 0.0 }
 0x27c   :  { %v3751_v38 = vpop.f32.mrb[68].mxu1  ;;  %v3902_v3 = vpop.f32.mrb[78].mxu0 }
 0x27d   :  { %v3767_v63 = vadd.f32 %v3751_v38, %v12476_v21  ;;  %v8813_v4 = vpop.f32.mrb[69].mxu1  ;;  %v8848_v18 = vpop.f32.mrb[79].mxu0  ;;  %9229 = vmatmul.mubr.msk.f32.gmra.mrb[174].mxu1 %vm3252_vm2, %v3240_v9 }
 0x27e   :  { %9231 = vmatprep.mubr.msk.f32.mxu1 %vm10167_vm1, %v10168_v36  ;;  %v7217_v4 = vld [vmem:[%s13224_s5 + $0x40] sm:$0xff] }
 0x27f   :  { %v3918_v47 = vadd.f32 %v3902_v3, %v3767_v63 }
 0x280   :  { %v3756_v59 = vpop.f32.mrb[70].mxu1  ;;  %v3907_v11 = vpop.f32.mrb[80].mxu0 }
 0x281   :  { %v3768_v52 = vadd.f32 %v3756_v59, %v12490_v43  ;;  %v8816_v61 = vpop.f32.mrb[71].mxu1  ;;  %v8851_v39 = vpop.f32.mrb[81].mxu0  ;;  %9232 = vmatmul.mubr.msk.f32.gmra.mrb[176].mxu1 %vm3252_vm2, %v3241_v50 }
 0x282   :  { %9234 = vmatprep.mubr.msk.f32.mxu1 %vm10167_vm1, %v10168_v36 }
 0x283   :  { %v3919_v9 = vadd.f32 %v3907_v11, %v3768_v52 }
 0x284   :  { %v4000_v21 = vpop.f32.mrb[72].mxu1  ;;  %v4133_v8 = vpop.f32.mrb[82].mxu0 }
 0x285   :  { %v4044_v32 = vadd.f32 %v4000_v21, %v12501_v13  ;;  %v8862_v40 = vpop.f32.mrb[73].mxu1  ;;  %v8897_v34 = vpop.f32.mrb[83].mxu0  ;;  %9235 = vmatmul.mubr.msk.f32.gmra.mrb[178].mxu1 %vm3252_vm2, %v3242_v26 }
 0x286   :  { %9272 = vmatprep.mubr.msk.f32.mxu1 %vm10167_vm1, %v10168_v36 }
 0x287   :  { %v4177_v43 = vadd.f32 %v4133_v8, %v4044_v32  ;;  %v7219_v32 = vld [vmem:[%s13224_s5 + $0x50] sm:$0xff] }
 0x288   :  { %v4005_v29 = vpop.f32.mrb[74].mxu1  ;;  %v4138_v58 = vpop.f32.mrb[84].mxu0 }
 0x289   :  { %v4045_v50 = vadd.f32 %v4005_v29, %v12508_v14  ;;  %v8865_v19 = vpop.f32.mrb[75].mxu1  ;;  %v8900_v42 = vpop.f32.mrb[85].mxu0 }
 0x28b   :  { %v4178_v49 = vadd.f32 %v4138_v58, %v4045_v50  ;;  %v5426_v58 = vld [vmem:[%s13224_s5] sm:$0xff] }
 0x28c   :  { %v4010_v7 = vpop.f32.mrb[76].mxu1  ;;  %v4143_v0 = vpop.f32.mrb[86].mxu0 }
 0x28d   :  { %v4046_v15 = vadd.f32 %v4010_v7, %v12515_v62  ;;  %v8868_v13 = vpop.f32.mrb[77].mxu1  ;;  %v8903_v53 = vpop.f32.mrb[87].mxu0 }
 0x28e   :  { %v5428_v53 = vld [vmem:[%s13224_s5 + $0x10] sm:$0xff] }
 0x28f   :  { %v12561_v1 = vadd.f32 %v4143_v0, %v4046_v15 }
 0x290   :  { %v4015_v46 = vpop.f32.mrb[78].mxu1  ;;  %v4148_v28 = vpop.f32.mrb[88].mxu0 }
 0x291   :  { %v4047_v45 = vadd.f32 %v4015_v46, %v12523_v37  ;;  %v8871_v12 = vpop.f32.mrb[79].mxu1  ;;  %v8906_v55 = vpop.f32.mrb[89].mxu0 }
 0x293   :  { %v12564_v20 = vadd.f32 %v4148_v28, %v4047_v45 }
 0x294   :  { %v4020_v14 = vpop.f32.mrb[80].mxu1  ;;  %v4153_v44 = vpop.f32.mrb[90].mxu0 }
 0x295   :  { %v4048_v33 = vadd.f32 %v4020_v14, %v12530_v2  ;;  %v8874_v27 = vpop.f32.mrb[81].mxu1  ;;  %v8909_v41 = vpop.f32.mrb[91].mxu0  ;;  %v7221_v14 = vld [vmem:[%s13224_s5 + $0x60] sm:$0xff] }
 0x297   :  { %v12567_v56 = vadd.f32 %v4153_v44, %v4048_v33  ;;  %v7222_v44 = vld [vmem:[%s13224_s5 + $0x68] sm:$0xff] }
 0x298   :  { %v4025_v62 = vpop.f32.mrb[82].mxu1  ;;  %v4158_v6 = vpop.f32.mrb[92].mxu0  ;;  %v9767_v41 = vpack.c.bf16 %v7222_v44, %v7221_v14 }
 0x299   :  { %v4049_v10 = vadd.f32 %v4025_v62, %v3916_v60  ;;  %v8877_v5 = vpop.f32.mrb[83].mxu1  ;;  %v8912_v54 = vpop.f32.mrb[93].mxu0  ;;  %v5431_v62 = vld [vmem:[%s13224_s5 + $0x28] sm:$0xff] }
 0x29b   :  { %v12569_v31 = vadd.f32 %v4158_v6, %v4049_v10 }
 0x29c   :  { %v4030_v37 = vpop.f32.mrb[84].mxu1  ;;  %v4163_v17 = vpop.f32.mrb[94].mxu0 }
 0x29d   :  { %v4050_v16 = vadd.f32 %v4030_v37, %v3917_v22  ;;  %v8880_v51 = vpop.f32.mrb[85].mxu1  ;;  %v8915_v35 = vpop.f32.mrb[95].mxu0  ;;  %v7218_v22 = vld [vmem:[%s13224_s5 + $0x48] sm:$0xff] }
 0x29e   :  { %v9761_v11 = vpack.c.bf16 %v7218_v22, %v7217_v4  ;;  %v5432_v51 = vld [vmem:[%s13224_s5 + $0x30] sm:$0xff]  ;;  %v7224_v4 = vld [vmem:[%s13224_s5 + $0x78] sm:$0xff] }
 0x29f   :  { %v12571_v48 = vadd.f32 %v4163_v17, %v4050_v16 }
 0x2a0   :  { %v4035_v57 = vpop.f32.mrb[86].mxu1  ;;  %v4168_v2 = vpop.f32.mrb[96].mxu0  ;;  %9762 = vmatpush3.bf16.msra.mxu0 %v9761_v11 }
 0x2a1   :  { %v4051_v24 = vadd.f32 %v4035_v57, %v3918_v47  ;;  %v8883_v25 = vpop.f32.mrb[87].mxu1  ;;  %v8918_v38 = vpop.f32.mrb[97].mxu0  ;;  %9763 = vmatprep.subr.bf16.mxu0 %v10166_v30 }
 0x2a3   :  { %v12573_v3 = vadd.f32 %v4168_v2, %v4051_v24 }
 0x2a4   :  { %v4040_v63 = vpop.f32.mrb[88].mxu1  ;;  %v4173_v60 = vpop.f32.mrb[98].mxu0 }
 0x2a5   :  { %v4052_v18 = vadd.f32 %v4040_v63, %v3919_v9  ;;  %v8886_v23 = vpop.f32.mrb[89].mxu1  ;;  %v8921_v59 = vpop.f32.mrb[99].mxu0  ;;  %v7220_v9 = vld [vmem:[%s13224_s5 + $0x58] sm:$0xff] }
 0x2a6   :  { %v9764_v29 = vpack.c.bf16 %v7220_v9, %v7219_v32 }
 0x2a7   :  { %v12581_v52 = vadd.f32 %v4173_v60, %v4052_v18  ;;  %v7223_v60 = vld [vmem:[%s13224_s5 + $0x70] sm:$0xff] }
 0x2a8   :  { %v4260_v47 = vpop.f32.mrb[90].mxu1  ;;  %v4411_v61 = vpop.f32.mrb[100].mxu0  ;;  %9765 = vmatpush3.bf16.msra.mxu0 %v9764_v29  ;;  %v9770_v23 = vpack.c.bf16 %v7224_v4, %v7223_v60 }
 0x2a9   :  { %v4304_v39 = vadd.f32 %v4260_v47, %v4177_v43  ;;  %v8932_v26 = vpop.f32.mrb[91].mxu1  ;;  %v8967_v21 = vpop.f32.mrb[101].mxu0  ;;  %v5427_v43 = vld [vmem:[%s13224_s5 + $0x8] sm:$0xff]  ;;  %9766 = vmatprep.subr.bf16.mxu0 %v10166_v30 }
 0x2aa   :  { %v9773_v7 = vpack.c.bf16 %v5427_v43, %v5426_v58 }
 0x2ab   :  { %v12584_v8 = vadd.f32 %v4411_v61, %v4304_v39 }
 0x2ac   :  { %v4265_v40 = vpop.f32.mrb[92].mxu1  ;;  %v4416_v34 = vpop.f32.mrb[102].mxu0  ;;  %9774 = vmatpush3.bf16.msra.mxu1 %v9773_v7  ;;  %9768 = vmatpush3.bf16.msra.mxu0 %v9767_v41 }
 0x2ad   :  { %v4305_v50 = vadd.f32 %v4265_v40, %v4178_v49  ;;  %v8935_v19 = vpop.f32.mrb[93].mxu1  ;;  %v8970_v42 = vpop.f32.mrb[103].mxu0  ;;  %9775 = vmatprep.subr.bf16.mxu1 %v10166_v30  ;;  %v5429_v49 = vld [vmem:[%s13224_s5 + $0x18] sm:$0xff]  ;;  %9769 = vmatprep.subr.bf16.mxu0 %v10166_v30 }
 0x2ae   :  { %v9776_v12 = vpack.c.bf16 %v5429_v49, %v5428_v53 }
 0x2af   :  { %v12598_v0 = vadd.f32 %v4416_v34, %v4305_v50 }
 0x2b0   :  { %v4270_v15 = vpop.f32.mrb[94].mxu1  ;;  %v4421_v13 = vpop.f32.mrb[104].mxu0  ;;  %9777 = vmatpush3.bf16.msra.mxu1 %v9776_v12  ;;  %9771 = vmatpush3.bf16.msra.mxu0 %v9770_v23 }
 0x2b1   :  { %v4306_v46 = vadd.f32 %v4270_v15, %v12561_v1  ;;  %v8938_v28 = vpop.f32.mrb[95].mxu1  ;;  %v8973_v45 = vpop.f32.mrb[105].mxu0  ;;  %9778 = vmatprep.subr.bf16.mxu1 %v10166_v30  ;;  %v5430_v1 = vld [vmem:[%s13224_s5 + $0x20] sm:$0xff]  ;;  %9784 = vmatprep.subr.bf16.mxu0 %v10166_v30 }
 0x2b2   :  { %v9779_v54 = vpack.c.bf16 %v5431_v62, %v5430_v1 }
 0x2b3   :  { %v12609_v55 = vadd.f32 %v4421_v13, %v4306_v46 }
 0x2b4   :  { %v4275_v33 = vpop.f32.mrb[96].mxu1  ;;  %v4426_v27 = vpop.f32.mrb[106].mxu0  ;;  %9780 = vmatpush3.bf16.msra.mxu1 %v9779_v54 }
 0x2b5   :  { %v4307_v6 = vadd.f32 %v4275_v33, %v12564_v20  ;;  %v8941_v10 = vpop.f32.mrb[97].mxu1  ;;  %v8976_v5 = vpop.f32.mrb[107].mxu0  ;;  %9781 = vmatprep.subr.bf16.mxu1 %v10166_v30  ;;  %v5433_v20 = vld [vmem:[%s13224_s5 + $0x38] sm:$0xff] }
 0x2b6   :  { %v9782_v24 = vpack.c.bf16 %v5433_v20, %v5432_v51 }
 0x2b7   :  { %v12625_v37 = vadd.f32 %v4426_v27, %v4307_v6 }
 0x2b8   :  { %v4280_v17 = vpop.f32.mrb[98].mxu1  ;;  %v4431_v16 = vpop.f32.mrb[108].mxu0  ;;  %9783 = vmatpush3.bf16.msra.mxu1 %v9782_v24 }
 0x2b9   :  { %v4308_v35 = vadd.f32 %v4280_v17, %v12567_v56  ;;  %v8944_v57 = vpop.f32.mrb[99].mxu1  ;;  %v8979_v2 = vpop.f32.mrb[109].mxu0  ;;  %9796 = vmatprep.subr.bf16.mxu1 %v10166_v30 }
 0x2bb   :  { %v4459_v25 = vadd.f32 %v4431_v16, %v4308_v35 }
 0x2bc   :  { %v4285_v38 = vpop.f32.mrb[100].mxu1  ;;  %v4436_v63 = vpop.f32.mrb[110].mxu0 }
 0x2bd   :  { %v4309_v22 = vadd.f32 %v4285_v38, %v12569_v31  ;;  %v8947_v56 = vpop.f32.mrb[101].mxu1  ;;  %v8982_v18 = vpop.f32.mrb[111].mxu0 }
 0x2bf   :  { %v4460_v59 = vadd.f32 %v4436_v63, %v4309_v22 }
 0x2c0   :  { %v4290_v11 = vpop.f32.mrb[102].mxu1  ;;  %v4441_v47 = vpop.f32.mrb[112].mxu0 }
 0x2c1   :  { %v4310_v61 = vadd.f32 %v4290_v11, %v12571_v48  ;;  %v8950_v39 = vpop.f32.mrb[103].mxu1  ;;  %v8985_v26 = vpop.f32.mrb[113].mxu0 }
 0x2c3   :  { %v4461_v21 = vadd.f32 %v4441_v47, %v4310_v61 }
 0x2c4   :  { %v4295_v32 = vpop.f32.mrb[104].mxu1  ;;  %v4446_v9 = vpop.f32.mrb[114].mxu0 }
 0x2c5   :  { %v4311_v40 = vadd.f32 %v4295_v32, %v12573_v3  ;;  %v8953_v34 = vpop.f32.mrb[105].mxu1  ;;  %v8988_v31 = vpop.f32.mrb[115].mxu0 }
 0x2c7   :  { %v4462_v29 = vadd.f32 %v4446_v9, %v4311_v40 }
 0x2c8   :  { %v4300_v58 = vpop.f32.mrb[106].mxu1  ;;  %v4451_v43 = vpop.f32.mrb[116].mxu0 }
 0x2c9   :  { %v4312_v50 = vadd.f32 %v4300_v58, %v12581_v52  ;;  %v8956_v19 = vpop.f32.mrb[107].mxu1  ;;  %v8991_v42 = vpop.f32.mrb[117].mxu0 }
 0x2cb   :  { %v4463_v7 = vadd.f32 %v4451_v43, %v4312_v50 }
 0x2cc   :  { %v4544_v15 = vpop.f32.mrb[108].mxu1  ;;  %v4677_v13 = vpop.f32.mrb[118].mxu0 }
 0x2cd   :  { %v4588_v48 = vadd.f32 %v4544_v15, %v12584_v8  ;;  %v9002_v53 = vpop.f32.mrb[109].mxu1  ;;  %v9037_v49 = vpop.f32.mrb[119].mxu0 }
 0x2cf   :  { %v4721_v46 = vadd.f32 %v4677_v13, %v4588_v48 }
 0x2d0   :  { %v4549_v28 = vpop.f32.mrb[110].mxu1  ;;  %v4682_v45 = vpop.f32.mrb[120].mxu0 }
 0x2d1   :  { %v4589_v3 = vadd.f32 %v4549_v28, %v12598_v0  ;;  %v9005_v12 = vpop.f32.mrb[111].mxu1  ;;  %v9040_v14 = vpop.f32.mrb[121].mxu0 }
 0x2d3   :  { %v4722_v44 = vadd.f32 %v4682_v45, %v4589_v3 }
 0x2d4   :  { %v4554_v33 = vpop.f32.mrb[112].mxu1  ;;  %v4687_v27 = vpop.f32.mrb[122].mxu0 }
 0x2d5   :  { %v4590_v52 = vadd.f32 %v4554_v33, %v12609_v55  ;;  %v9008_v41 = vpop.f32.mrb[113].mxu1  ;;  %v9043_v1 = vpop.f32.mrb[123].mxu0 }
 0x2d7   :  { %v4723_v62 = vadd.f32 %v4687_v27, %v4590_v52 }
 0x2d8   :  { %v4559_v6 = vpop.f32.mrb[114].mxu1  ;;  %v4692_v10 = vpop.f32.mrb[124].mxu0 }
 0x2d9   :  { %v4591_v8 = vadd.f32 %v4559_v6, %v12625_v37  ;;  %v9011_v5 = vpop.f32.mrb[115].mxu1  ;;  %v9046_v54 = vpop.f32.mrb[125].mxu0 }
 0x2db   :  { %v4724_v17 = vadd.f32 %v4692_v10, %v4591_v8 }
 0x2dc   :  { %v4564_v16 = vpop.f32.mrb[116].mxu1  ;;  %v4697_v51 = vpop.f32.mrb[126].mxu0 }
 0x2dd   :  { %v4592_v0 = vadd.f32 %v4564_v16, %v4459_v25  ;;  %v9014_v20 = vpop.f32.mrb[117].mxu1  ;;  %v9049_v35 = vpop.f32.mrb[127].mxu0 }
 0x2df   :  { %v4725_v57 = vadd.f32 %v4697_v51, %v4592_v0 }
 0x2e0   :  { %v4569_v2 = vpop.f32.mrb[118].mxu1  ;;  %v4702_v24 = vpop.f32.mrb[128].mxu0 }
 0x2e1   :  { %v4593_v38 = vadd.f32 %v4569_v2, %v4460_v59  ;;  %v9017_v55 = vpop.f32.mrb[119].mxu1  ;;  %v9052_v63 = vpop.f32.mrb[129].mxu0 }
 0x2e3   :  { %v4726_v60 = vadd.f32 %v4702_v24, %v4593_v38 }
 0x2e4   :  { %v4574_v4 = vpop.f32.mrb[120].mxu1  ;;  %v4707_v22 = vpop.f32.mrb[130].mxu0 }
 0x2e5   :  { %v4594_v56 = vadd.f32 %v4574_v4, %v4461_v21  ;;  %v9020_v18 = vpop.f32.mrb[121].mxu1  ;;  %v9055_v37 = vpop.f32.mrb[131].mxu0 }
 0x2e7   :  { %v4727_v23 = vadd.f32 %v4707_v22, %v4594_v56 }
 0x2e8   :  { %v4579_v11 = vpop.f32.mrb[122].mxu1  ;;  %v4712_v47 = vpop.f32.mrb[132].mxu0 }
 0x2e9   :  { %v4595_v61 = vadd.f32 %v4579_v11, %v4462_v29  ;;  %v9023_v39 = vpop.f32.mrb[123].mxu1  ;;  %v9058_v25 = vpop.f32.mrb[133].mxu0 }
 0x2eb   :  { %v4728_v26 = vadd.f32 %v4712_v47, %v4595_v61 }
 0x2ec   :  { %v4584_v32 = vpop.f32.mrb[124].mxu1  ;;  %v4717_v9 = vpop.f32.mrb[134].mxu0 }
 0x2ed   :  { %v4596_v40 = vadd.f32 %v4584_v32, %v4463_v7  ;;  %v9026_v34 = vpop.f32.mrb[125].mxu1  ;;  %v9061_v59 = vpop.f32.mrb[135].mxu0 }
 0x2ef   :  { %v4729_v31 = vadd.f32 %v4717_v9, %v4596_v40 }
 0x2f0   :  { %v4804_v58 = vpop.f32.mrb[126].mxu1  ;;  %v4955_v43 = vpop.f32.mrb[136].mxu0 }
 0x2f1   :  { %v4848_v50 = vadd.f32 %v4804_v58, %v4721_v46  ;;  %v9072_v19 = vpop.f32.mrb[127].mxu1  ;;  %v9107_v21 = vpop.f32.mrb[137].mxu0 }
 0x2f3   :  { %v4999_v42 = vadd.f32 %v4955_v43, %v4848_v50 }
 0x2f4   :  { %v4809_v15 = vpop.f32.mrb[128].mxu1  ;;  %v4960_v13 = vpop.f32.mrb[138].mxu0 }
 0x2f5   :  { %v4849_v48 = vadd.f32 %v4809_v15, %v4722_v44  ;;  %v9075_v53 = vpop.f32.mrb[129].mxu1  ;;  %v9110_v29 = vpop.f32.mrb[139].mxu0 }
 0x2f7   :  { %v5000_v49 = vadd.f32 %v4960_v13, %v4849_v48 }
 0x2f8   :  { %v4814_v28 = vpop.f32.mrb[130].mxu1  ;;  %v4965_v45 = vpop.f32.mrb[140].mxu0 }
 0x2f9   :  { %v4850_v3 = vadd.f32 %v4814_v28, %v4723_v62  ;;  %v9078_v12 = vpop.f32.mrb[131].mxu1  ;;  %v9113_v7 = vpop.f32.mrb[141].mxu0 }
 0x2fb   :  { %v5001_v14 = vadd.f32 %v4965_v45, %v4850_v3 }
 0x2fc   :  { %v4819_v33 = vpop.f32.mrb[132].mxu1  ;;  %v4970_v27 = vpop.f32.mrb[142].mxu0 }
 0x2fd   :  { %v4851_v52 = vadd.f32 %v4819_v33, %v4724_v17  ;;  %v9081_v41 = vpop.f32.mrb[133].mxu1  ;;  %v9116_v46 = vpop.f32.mrb[143].mxu0 }
 0x2ff   :  { %v5002_v1 = vadd.f32 %v4970_v27, %v4851_v52 }
 0x300   :  { %v4824_v6 = vpop.f32.mrb[134].mxu1  ;;  %v4975_v10 = vpop.f32.mrb[144].mxu0 }
 0x301   :  { %v4852_v8 = vadd.f32 %v4824_v6, %v4725_v57  ;;  %v9084_v5 = vpop.f32.mrb[135].mxu1  ;;  %v9119_v44 = vpop.f32.mrb[145].mxu0 }
 0x303   :  { %v5003_v54 = vadd.f32 %v4975_v10, %v4852_v8 }
 0x304   :  { %v4829_v16 = vpop.f32.mrb[136].mxu1  ;;  %v4980_v51 = vpop.f32.mrb[146].mxu0 }
 0x305   :  { %v4853_v0 = vadd.f32 %v4829_v16, %v4726_v60  ;;  %v9087_v20 = vpop.f32.mrb[137].mxu1  ;;  %v9122_v62 = vpop.f32.mrb[147].mxu0 }
 0x307   :  { %v5004_v35 = vadd.f32 %v4980_v51, %v4853_v0 }
 0x308   :  { %v4834_v2 = vpop.f32.mrb[138].mxu1  ;;  %v4985_v24 = vpop.f32.mrb[148].mxu0 }
 0x309   :  { %v4854_v38 = vadd.f32 %v4834_v2, %v4727_v23  ;;  %v9090_v55 = vpop.f32.mrb[139].mxu1  ;;  %v9125_v17 = vpop.f32.mrb[149].mxu0 }
 0x30b   :  { %v5005_v63 = vadd.f32 %v4985_v24, %v4854_v38 }
 0x30c   :  { %v4839_v4 = vpop.f32.mrb[140].mxu1  ;;  %v4990_v22 = vpop.f32.mrb[150].mxu0 }
 0x30d   :  { %v4855_v56 = vadd.f32 %v4839_v4, %v4728_v26  ;;  %v9093_v18 = vpop.f32.mrb[141].mxu1  ;;  %v9128_v57 = vpop.f32.mrb[151].mxu0 }
 0x30f   :  { %v5006_v37 = vadd.f32 %v4990_v22, %v4855_v56 }
 0x310   :  { %v4844_v11 = vpop.f32.mrb[142].mxu1  ;;  %v4995_v47 = vpop.f32.mrb[152].mxu0 }
 0x311   :  { %v4856_v61 = vadd.f32 %v4844_v11, %v4729_v31  ;;  %v9096_v39 = vpop.f32.mrb[143].mxu1  ;;  %v9131_v60 = vpop.f32.mrb[153].mxu0 }
 0x312   :  { %v7237_v39 = vld [vmem:[%s13224_s5 + $0xc8] sm:$0xff] }
 0x313   :  { %v5007_v25 = vadd.f32 %v4995_v47, %v4856_v61 }
 0x314   :  { %v5088_v32 = vpop.f32.mrb[144].mxu1  ;;  %v5221_v9 = vpop.f32.mrb[154].mxu0 }
 0x315   :  { %v5132_v40 = vadd.f32 %v5088_v32, %v4999_v42  ;;  %v9142_v34 = vpop.f32.mrb[145].mxu1  ;;  %v9177_v23 = vpop.f32.mrb[155].mxu0 }
 0x317   :  { %v5265_v59 = vadd.f32 %v5221_v9, %v5132_v40  ;;  %v7227_v9 = vld [vmem:[%s13224_s5 + $0x80] sm:$0xff] }
 0x318   :  { %v5093_v58 = vpop.f32.mrb[146].mxu1  ;;  %v5226_v43 = vpop.f32.mrb[156].mxu0 }
 0x319   :  { %v5133_v50 = vadd.f32 %v5093_v58, %v5000_v49  ;;  %v9145_v19 = vpop.f32.mrb[147].mxu1  ;;  %v9180_v26 = vpop.f32.mrb[157].mxu0  ;;  %v7238_v58 = vld [vmem:[%s13224_s5 + $0xd0] sm:$0xff] }
 0x31b   :  { %v5266_v21 = vadd.f32 %v5226_v43, %v5133_v50  ;;  %v7239_v43 = vld [vmem:[%s13224_s5 + $0xd8] sm:$0xff] }
 0x31c   :  { %v5098_v15 = vpop.f32.mrb[148].mxu1  ;;  %v5231_v13 = vpop.f32.mrb[158].mxu0 }
 0x31d   :  { %v5134_v48 = vadd.f32 %v5098_v15, %v5001_v14  ;;  %v9148_v53 = vpop.f32.mrb[149].mxu1  ;;  %v9183_v31 = vpop.f32.mrb[159].mxu0  ;;  %v7229_v15 = vld [vmem:[%s13224_s5 + $0x90] sm:$0xff] }
 0x31e   :  { %v7230_v31 = vld [vmem:[%s13224_s5 + $0x98] sm:$0xff] }
 0x31f   :  { %v12652_v29 = vadd.f32 %v5231_v13, %v5134_v48 }
 0x320   :  { %v5103_v28 = vpop.f32.mrb[150].mxu1  ;;  %v5236_v45 = vpop.f32.mrb[160].mxu0 }
 0x321   :  { %v5135_v3 = vadd.f32 %v5103_v28, %v5002_v1  ;;  %v9151_v42 = vpop.f32.mrb[151].mxu1  ;;  %v9186_v12 = vpop.f32.mrb[161].mxu0  ;;  %v7240_v28 = vld [vmem:[%s13224_s5 + $0xe0] sm:$0xff] }
 0x322   :  { %v7231_v12 = vld [vmem:[%s13224_s5 + $0xa0] sm:$0xff] }
 0x323   :  { %v12654_v7 = vadd.f32 %v5236_v45, %v5135_v3  ;;  %v7241_v45 = vld [vmem:[%s13224_s5 + $0xe8] sm:$0xff]  ;;  %v9788_v3 = vpack.c.bf16 %v7230_v31, %v7229_v15  ;;  %v7272_v31 = vld [vmem:[%s13224_s5 + $0x1c0] sm:$0xff] }
 0x324   :  { %v5108_v33 = vpop.f32.mrb[152].mxu1  ;;  %v5241_v27 = vpop.f32.mrb[162].mxu0  ;;  %v9803_v42 = vpack.c.bf16 %v7241_v45, %v7240_v28  ;;  %v7273_v28 = vld [vmem:[%s13224_s5 + $0x1c8] sm:$0xff] }
 0x325   :  { %v5136_v49 = vadd.f32 %v5108_v33, %v5003_v54  ;;  %v9154_v52 = vpop.f32.mrb[153].mxu1  ;;  %v9189_v41 = vpop.f32.mrb[163].mxu0 }
 0x326   :  { %v7242_v52 = vld [vmem:[%s13224_s5 + $0xf0] sm:$0xff]  ;;  %v7243_v41 = vld [vmem:[%s13224_s5 + $0xf8] sm:$0xff] }
 0x327   :  { %v12656_v46 = vadd.f32 %v5241_v27, %v5136_v49  ;;  %v7232_v49 = vld [vmem:[%s13224_s5 + $0xa8] sm:$0xff] }
 0x328   :  { %v5113_v6 = vpop.f32.mrb[154].mxu1  ;;  %v5246_v14 = vpop.f32.mrb[164].mxu0 }
 0x329   :  { %v5137_v10 = vadd.f32 %v5113_v6, %v5004_v35  ;;  %v9157_v8 = vpop.f32.mrb[155].mxu1  ;;  %v9192_v5 = vpop.f32.mrb[165].mxu0  ;;  %v9791_v6 = vpack.c.bf16 %v7232_v49, %v7231_v12  ;;  %v7275_v49 = vld [vmem:[%s13224_s5 + $0x1d8] sm:$0xff] }
 0x32b   :  { %v12658_v44 = vadd.f32 %v5246_v14, %v5137_v10  ;;  %v9806_v14 = vpack.c.bf16 %v7243_v41, %v7242_v52  ;;  %v7233_v10 = vld [vmem:[%s13224_s5 + $0xb0] sm:$0xff] }
 0x32c   :  { %v5118_v16 = vpop.f32.mrb[156].mxu1  ;;  %v5251_v1 = vpop.f32.mrb[166].mxu0 }
 0x32d   :  { %v5138_v51 = vadd.f32 %v5118_v16, %v5005_v63  ;;  %v9160_v0 = vpop.f32.mrb[157].mxu1  ;;  %v9195_v20 = vpop.f32.mrb[167].mxu0  ;;  %v12669_v63 = vld [vmem:[%s13225_s4] ss:$0 sm:$0xff] }
 0x32e   :  { %v7255_v0 = vld [vmem:[%s13224_s5 + $0x148] sm:$0xff] }
 0x32f   :  { %v12660_v62 = vadd.f32 %v5251_v1, %v5138_v51  ;;  %v7234_v1 = vld [vmem:[%s13224_s5 + $0xb8] sm:$0xff]  ;;  %v7254_v51 = vld [vmem:[%s13224_s5 + $0x140] sm:$0xff] }
 0x330   :  { %v5123_v2 = vpop.f32.mrb[158].mxu1  ;;  %v5256_v54 = vpop.f32.mrb[168].mxu0  ;;  %v9794_v20 = vpack.c.bf16 %v7234_v1, %v7233_v10  ;;  %v7276_v10 = vld [vmem:[%s13224_s5 + $0x1e0] sm:$0xff] }
 0x331   :  { %v5139_v24 = vadd.f32 %v5123_v2, %v5006_v37  ;;  %v9163_v38 = vpop.f32.mrb[159].mxu1  ;;  %v9198_v55 = vpop.f32.mrb[169].mxu0  ;;  %v7236_v37 = vld [vmem:[%s13224_s5 + $0xc0] sm:$0xff]  ;;  %v9821_v2 = vpack.c.bf16 %v7255_v0, %v7254_v51  ;;  %v7268_v51 = vld [vmem:[%s13224_s5 + $0x1a8] sm:$0xff]  ;;  %v7278_v0 = vld [vmem:[%s13224_s5 + $0x1f0] sm:$0xff] }
 0x332   :  { %v9797_v32 = vpack.c.bf16 %v7237_v39, %v7236_v37  ;;  %v7267_v1 = vld [vmem:[%s13224_s5 + $0x1a0] sm:$0xff] }
 0x333   :  { %v12662_v17 = vadd.f32 %v5256_v54, %v5139_v24  ;;  %v7245_v54 = vld [vmem:[%s13224_s5 + $0x100] sm:$0xff] }
 0x334   :  { %v5128_v4 = vpop.f32.mrb[160].mxu1  ;;  %v5261_v35 = vpop.f32.mrb[170].mxu0 }
 0x335   :  { %v5140_v22 = vadd.f32 %v5128_v4, %v5007_v25  ;;  %v9166_v56 = vpop.f32.mrb[161].mxu1  ;;  %v9201_v18 = vpop.f32.mrb[171].mxu0 }
 0x336   :  { %v7257_v56 = vld [vmem:[%s13224_s5 + $0x158] sm:$0xff] }
 0x337   :  { %v12664_v57 = vadd.f32 %v5261_v35, %v5140_v22  ;;  %v7246_v35 = vld [vmem:[%s13224_s5 + $0x108] sm:$0xff]  ;;  %v7256_v22 = vld [vmem:[%s13224_s5 + $0x150] sm:$0xff] }
 0x338   :  { %v5348_v11 = vpop.f32.mrb[162].mxu1  ;;  %v9809_v18 = vpack.c.bf16 %v7246_v35, %v7245_v54 }
 0x339   :  { %v5392_v47 = vadd.f32 %v5348_v11, %v5265_v59  ;;  %v9212_v61 = vpop.f32.mrb[163].mxu1  ;;  %v7228_v59 = vld [vmem:[%s13224_s5 + $0x88] sm:$0xff]  ;;  %v9824_v11 = vpack.c.bf16 %v7257_v56, %v7256_v22  ;;  %v7281_v22 = vld [vmem:[%s13224_s5 + $0x200] sm:$0xff] }
 0x33a   :  { %v9785_v26 = vpack.c.bf16 %v7228_v59, %v7227_v9  ;;  %v7282_v56 = vld [vmem:[%s13224_s5 + $0x208] sm:$0xff] }
 0x33b   :  { %v5408_v60 = vadd.f32 %v12669_v63, %v5392_v47  ;;  %v7247_v47 = vld [vmem:[%s13224_s5 + $0x110] sm:$0xff] }
 0x33c   :  { %v5353_v25 = vpop.f32.mrb[164].mxu1 }
 0x33d   :  { %v5417_v40 = vmax.f32 %v5408_v60, 0.0  ;;  %v5393_v34 = vadd.f32 %v5353_v25, %v5266_v21  ;;  %v9215_v23 = vpop.f32.mrb[165].mxu1  ;;  %v9800_v21 = vpack.c.bf16 %v7239_v43, %v7238_v58  ;;  %v7248_v60 = vld [vmem:[%s13224_s5 + $0x118] sm:$0xff]  ;;  %v7258_v25 = vld [vmem:[%s13224_s5 + $0x160] sm:$0xff]  ;;  %v7250_v58 = vld [vmem:[%s13224_s5 + $0x128] sm:$0xff] }
 0x33e   :  { %v9812_v9 = vpack.c.bf16 %v7248_v60, %v7247_v47  ;;  %v7260_v43 = vld [vmem:[%s13224_s5 + $0x170] sm:$0xff] }
 0x33f   :  { %v5409_v50 = vadd.f32 %v12669_v63, %v5393_v34  ;;  %9273 = vmatmul.mubr.msk.f32.vlgmr.msra.gmra.mrb[180].mxu1 %vm90_vm0, %v5417_v40  ;;  %v7249_v34 = vld [vmem:[%s13224_s5 + $0x120] sm:$0xff]  ;;  %v7287_v60 = vld [vmem:[%s13224_s5 + $0x230] sm:$0xff] }
 0x340   :  { %9798 = vmatpush3.bf16.msra.mxu1 %v9797_v32  ;;  %v5358_v19 = vpop.f32.mrb[166].mxu1  ;;  %9310 = vmatprep.mubr.msk.f32.mxu1 %vm10167_vm1, %v10168_v36  ;;  %v7259_v32 = vld [vmem:[%s13224_s5 + $0x168] sm:$0xff] }
 0x341   :  { %v5418_v13 = vmax.f32 %v5409_v50, 0.0  ;;  %v5394_v48 = vadd.f32 %v5358_v19, %v12652_v29  ;;  %v9218_v53 = vpop.f32.mrb[167].mxu1  ;;  %9799 = vmatprep.subr.bf16.mxu1 %v10166_v30  ;;  %v9827_v40 = vpack.c.bf16 %v7259_v32, %v7258_v25  ;;  %v7261_v50 = vld [vmem:[%s13224_s5 + $0x178] sm:$0xff]  ;;  %v9815_v19 = vpack.c.bf16 %v7250_v58, %v7249_v34 }
 0x342   :  { %v7252_v53 = vld [vmem:[%s13224_s5 + $0x138] sm:$0xff] }
 0x343   :  { %9254 = vmatmul.mubr.msk.f32.vlgmr.msra.gmra.mrb[172].mxu0 %vm90_vm0, %v5418_v13  ;;  %v5410_v24 = vadd.f32 %v12669_v63, %v5394_v48  ;;  %v7288_v25 = vld [vmem:[%s13224_s5 + $0x238] sm:$0xff] }
 0x344   :  { %9786 = vmatpush3.bf16.msra.mxu0 %v9785_v26  ;;  %9801 = vmatpush3.bf16.msra.mxu1 %v9800_v21  ;;  %v5363_v29 = vpop.f32.mrb[168].mxu1  ;;  %v9830_v26 = vpack.c.bf16 %v7261_v50, %v7260_v43  ;;  %v7251_v21 = vld [vmem:[%s13224_s5 + $0x130] sm:$0xff]  ;;  %v9866_v32 = vpack.c.bf16 %v7288_v25, %v7287_v60  ;;  %v6182_v34 = vld [vmem:[%s13226_s7 + $0x18] sm:$0xff] }
 0x345   :  { %v5395_v33 = vadd.f32 %v5363_v29, %v12654_v7  ;;  %v9221_v27 = vpop.f32.mrb[169].mxu1  ;;  %9787 = vmatprep.subr.bf16.mxu0 %v10166_v30  ;;  %9802 = vmatprep.subr.bf16.mxu1 %v10166_v30  ;;  %v5419_v61 = vmax.f32 %v5410_v24, 0.0  ;;  %v9845_v29 = vpack.c.bf16 %v7273_v28, %v7272_v31  ;;  %v7269_v24 = vld [vmem:[%s13224_s5 + $0x1b0] sm:$0xff]  ;;  %v6187_v31 = vld [vmem:[%s13226_s7 + $0x40] sm:$0xff] }
 0x346   :  { %9291 = vmatprep.mubr.msk.f32.mxu0 %vm10167_vm1, %v10168_v36  ;;  %v7274_v27 = vld [vmem:[%s13224_s5 + $0x1d0] sm:$0xff]  ;;  %v6191_v28 = vld [vmem:[%s13226_s7 + $0x60] sm:$0xff] }
 0x347   :  { %v5411_v8 = vadd.f32 %v12669_v63, %v5395_v33  ;;  %v7264_v33 = vld [vmem:[%s13224_s5 + $0x188] sm:$0xff]  ;;  %v9848_v41 = vpack.c.bf16 %v7275_v49, %v7274_v27  ;;  %v6181_v50 = vld [vmem:[%s13226_s7 + $0x10] sm:$0xff]  ;;  %v6198_v27 = vld [vmem:[%s13226_s7 + $0x98] sm:$0xff] }
 0x348   :  { %9789 = vmatpush3.bf16.msra.mxu0 %v9788_v3  ;;  %9804 = vmatpush3.bf16.msra.mxu1 %v9803_v42  ;;  %v5368_v7 = vpop.f32.mrb[170].mxu1  ;;  %v7263_v3 = vld [vmem:[%s13224_s5 + $0x180] sm:$0xff]  ;;  %v6202_v49 = vld [vmem:[%s13226_s7 + $0xb8] sm:$0xff] }
 0x349   :  { %v12731_v5 = vadd.f32 %v5368_v7, %v12656_v46  ;;  %v9224_v16 = vpop.f32.mrb[171].mxu1  ;;  %9790 = vmatprep.subr.bf16.mxu0 %v10166_v30  ;;  %9805 = vmatprep.subr.bf16.mxu1 %v10166_v30  ;;  %v5420_v38 = vmax.f32 %v5411_v8, 0.0  ;;  %v9833_v52 = vpack.c.bf16 %v7264_v33, %v7263_v3  ;;  %v7265_v7 = vld [vmem:[%s13224_s5 + $0x190] sm:$0xff]  ;;  %v7277_v8 = vld [vmem:[%s13224_s5 + $0x1e8] sm:$0xff] }
 0x34a   :  { %v9851_v16 = vpack.c.bf16 %v7277_v8, %v7276_v10  ;;  %v6196_v3 = vld [vmem:[%s13226_s7 + $0x88] sm:$0xff]  ;;  %v6201_v10 = vld [vmem:[%s13226_s7 + $0xb0] sm:$0xff] }
 0x34b   :  { %v5412_v42 = vadd.f32 %v12669_v63, %v12731_v5 }
 0x34c   :  { %9792 = vmatpush3.bf16.msra.mxu0 %v9791_v6  ;;  %9807 = vmatpush3.bf16.msra.mxu1 %v9806_v14  ;;  %v5373_v46 = vpop.f32.mrb[172].mxu1  ;;  %v7266_v14 = vld [vmem:[%s13224_s5 + $0x198] sm:$0xff] }
 0x34d   :  { %v5397_v55 = vadd.f32 %v5373_v46, %v12658_v44  ;;  %v9227_v4 = vpop.f32.mrb[173].mxu1  ;;  %9793 = vmatprep.subr.bf16.mxu0 %v10166_v30  ;;  %9820 = vmatprep.subr.bf16.mxu1 %v10166_v30  ;;  %v5421_v6 = vmax.f32 %v5412_v42, 0.0  ;;  %v9836_v5 = vpack.c.bf16 %v7266_v14, %v7265_v7  ;;  %v7279_v46 = vld [vmem:[%s13224_s5 + $0x1f8] sm:$0xff]  ;;  %v6200_v42 = vld [vmem:[%s13226_s7 + $0xa8] sm:$0xff]  ;;  %v6199_v7 = vld [vmem:[%s13226_s7 + $0xa0] sm:$0xff] }
 0x34e   :  { %v9876_v33 = vpack.c.bf16 %v6200_v42, %v6196_v3  ;;  %v6432_v3 = vld [vmem:[%s13227_s9 + $0x190] sm:$0xff]  ;;  %v6433_v42 = vld [vmem:[%s13227_s9 + $0x198] sm:$0xff] }
 0x34f   :  { %9311 = vmatmul.mubr.msk.f32.vlgmr.msra.gmra.mrb[182].mxu1 %vm90_vm0, %v5420_v38  ;;  %v5413_v15 = vadd.f32 %v12669_v63, %v5397_v55  ;;  %v7270_v38 = vld [vmem:[%s13224_s5 + $0x1b8] sm:$0xff] }
 0x350   :  { %9795 = vmatpush3.bf16.msra.mxu0 %v9794_v20  ;;  %9822 = vmatpush3.bf16.msra.mxu1 %v9821_v2  ;;  %v5378_v44 = vpop.f32.mrb[174].mxu1  ;;  %v9839_v20 = vpack.c.bf16 %v7268_v51, %v7267_v1  ;;  %v9854_v2 = vpack.c.bf16 %v7279_v46, %v7278_v0  ;;  %v9842_v55 = vpack.c.bf16 %v7270_v38, %v7269_v24  ;;  %v6206_v1 = vld [vmem:[%s13226_s7 + $0xd8] sm:$0xff]  ;;  %v6203_v46 = vld [vmem:[%s13226_s7 + $0xc0] sm:$0xff]  ;;  %v6209_v24 = vld [vmem:[%s13226_s7 + $0xf0] sm:$0xff] }
 0x351   :  { %v12765_v37 = vadd.f32 %v5378_v44, %v12660_v62  ;;  %v9230_v39 = vpop.f32.mrb[175].mxu1  ;;  %9808 = vmatprep.subr.bf16.mxu0 %v10166_v30  ;;  %9823 = vmatprep.subr.bf16.mxu1 %v10166_v30  ;;  %v5422_v12 = vmax.f32 %v5413_v15, 0.0  ;;  %v9857_v44 = vpack.c.bf16 %v7282_v56, %v7281_v22  ;;  %v6190_v15 = vld [vmem:[%s13226_s7 + $0x58] sm:$0xff]  ;;  %v6430_v22 = vld [vmem:[%s13227_s9 + $0x180] sm:$0xff] }
 0x352   :  { %9348 = vmatprep.mubr.msk.f32.mxu1 %vm10167_vm1, %v10168_v36  ;;  %v6210_v0 = vld [vmem:[%s13226_s7 + $0xf8] sm:$0xff] }
 0x353   :  { %9292 = vmatmul.mubr.msk.f32.vlgmr.msra.gmra.mrb[174].mxu0 %vm90_vm0, %v5419_v61  ;;  %v5414_v4 = vadd.f32 %v12669_v63, %v12765_v37  ;;  %v7285_v61 = vld [vmem:[%s13224_s5 + $0x220] sm:$0xff]  ;;  %v7286_v37 = vld [vmem:[%s13224_s5 + $0x228] sm:$0xff] }
 0x354   :  { %9810 = vmatpush3.bf16.msra.mxu0 %v9809_v18  ;;  %9825 = vmatpush3.bf16.msra.mxu1 %v9824_v11  ;;  %v5383_v62 = vpop.f32.mrb[176].mxu1  ;;  %v7284_v11 = vld [vmem:[%s13224_s5 + $0x218] sm:$0xff]  ;;  %v9863_v39 = vpack.c.bf16 %v7286_v37, %v7285_v61 }
 0x355   :  { %v12785_v23 = vadd.f32 %v5383_v62, %v12662_v17  ;;  %v9233_v59 = vpop.f32.mrb[177].mxu1  ;;  %9811 = vmatprep.subr.bf16.mxu0 %v10166_v30  ;;  %9826 = vmatprep.subr.bf16.mxu1 %v10166_v30  ;;  %v5423_v18 = vmax.f32 %v5414_v4, 0.0  ;;  %v6398_v4 = vld [vmem:[%s13227_s9 + $0x80] sm:$0xff] }
 0x356   :  { %9329 = vmatprep.mubr.msk.f32.mxu0 %vm10167_vm1, %v10168_v36  ;;  %v6183_v59 = vld [vmem:[%s13226_s7 + $0x20] sm:$0xff] }
 0x357   :  { %v5415_v54 = vadd.f32 %v12669_v63, %v12785_v23  ;;  %v6186_v23 = vld [vmem:[%s13226_s7 + $0x38] sm:$0xff] }
 0x358   :  { %9813 = vmatpush3.bf16.msra.mxu0 %v9812_v9  ;;  %9828 = vmatpush3.bf16.msra.mxu1 %v9827_v40  ;;  %v5388_v17 = vpop.f32.mrb[178].mxu1  ;;  %v6180_v9 = vld [vmem:[%s13226_s7 + $0x8] sm:$0xff]  ;;  %v9884_v58 = vpack.c.bf16 %v6186_v23, %v6182_v34 }
 0x359   :  { %v5400_v13 = vadd.f32 %v5388_v17, %v12664_v57  ;;  %v9236_v48 = vpop.f32.mrb[179].mxu1  ;;  %9814 = vmatprep.subr.bf16.mxu0 %v10166_v30  ;;  %9829 = vmatprep.subr.bf16.mxu1 %v10166_v30  ;;  %v9818_v57 = vpack.c.bf16 %v7252_v53, %v7251_v21  ;;  %v5424_v35 = vmax.f32 %v5415_v54, 0.0  ;;  %v6184_v40 = vld [vmem:[%s13226_s7 + $0x28] sm:$0xff]  ;;  %v6185_v17 = vld [vmem:[%s13226_s7 + $0x30] sm:$0xff] }
 0x35a   :  { %v6192_v21 = vld [vmem:[%s13226_s7 + $0x68] sm:$0xff]  ;;  %v6205_v54 = vld [vmem:[%s13226_s7 + $0xd0] sm:$0xff] }
 0x35b   :  { %v12817_v45 = vadd.f32 %v12669_v63, %v5400_v13  ;;  %v7283_v63 = vld [vmem:[%s13224_s5 + $0x210] sm:$0xff]  ;;  %v6194_v13 = vld [vmem:[%s13226_s7 + $0x78] sm:$0xff] }
 0x35c   :  { %9816 = vmatpush3.bf16.msra.mxu0 %v9815_v19  ;;  %9831 = vmatpush3.bf16.msra.mxu1 %v9830_v26  ;;  %v9860_v47 = vpack.c.bf16 %v7284_v11, %v7283_v63  ;;  %v6188_v19 = vld [vmem:[%s13226_s7 + $0x48] sm:$0xff]  ;;  %v9886_v26 = vpack.c.bf16 %v6185_v17, %v6181_v50  ;;  %v9888_v53 = vpack.c.bf16 %v6194_v13, %v6190_v15  ;;  %v7290_v15 = vld [vmem:[%s13228_s6] ss:$0 sm:$0xff] }
 0x35d   :  { %9817 = vmatprep.subr.bf16.mxu0 %v10166_v30  ;;  %9844 = vmatprep.subr.bf16.mxu1 %v10166_v30  ;;  %v5425_v62 = vmax.f32 %v12817_v45, 0.0  ;;  %v9872_v48 = vpack.c.bf16 %v6192_v21, %v6188_v19  ;;  %v6189_v45 = vld [vmem:[%s13226_s7 + $0x50] sm:$0xff]  ;;  %v6382_v13 = vld [vmem:[%s13227_s9] sm:$0xff] }
 0x35f   :  { %9349 = vmatmul.mubr.msk.f32.vlgmr.msra.gmra.mrb[184].mxu1 %vm90_vm0, %v5422_v12 }
 0x360   :  { %9819 = vmatpush3.bf16.msra.mxu0 %v9818_v57  ;;  %9846 = vmatpush3.bf16.msra.mxu1 %v9845_v29  ;;  %v9874_v57 = vpack.c.bf16 %v6191_v28, %v6187_v31  ;;  %v6193_v29 = vld [vmem:[%s13226_s7 + $0x70] sm:$0xff]  ;;  %v6414_v28 = vld [vmem:[%s13227_s9 + $0x100] sm:$0xff] }
 0x361   :  { %9832 = vmatprep.subr.bf16.mxu0 %v10166_v30  ;;  %9847 = vmatprep.subr.bf16.mxu1 %v10166_v30  ;;  %v9890_v12 = vpack.c.bf16 %v6193_v29, %v6189_v45  ;;  %v6415_v45 = vld [vmem:[%s13227_s9 + $0x108] sm:$0xff]  ;;  %v6401_v29 = vld [vmem:[%s13227_s9 + $0x98] sm:$0xff] }
 0x362   :  { %9386 = vmatprep.mubr.msk.f32.mxu1 %vm10167_vm1, %v10168_v36 }
 0x363   :  { %9330 = vmatmul.mubr.msk.f32.vlgmr.msra.gmra.mrb[176].mxu0 %vm90_vm0, %v5421_v6  ;;  %v6197_v6 = vld [vmem:[%s13226_s7 + $0x90] sm:$0xff] }
 0x364   :  { %9834 = vmatpush3.bf16.msra.mxu0 %v9833_v52  ;;  %9849 = vmatpush3.bf16.msra.mxu1 %v9848_v41  ;;  %v9892_v52 = vpack.c.bf16 %v6202_v49, %v6198_v27  ;;  %v6195_v41 = vld [vmem:[%s13226_s7 + $0x80] sm:$0xff]  ;;  %v9894_v8 = vpack.c.bf16 %v6201_v10, %v6197_v6  ;;  %v9934_v27 = vpack.c.bf16 %v6415_v45, %v6414_v28  ;;  %v6384_v49 = vld [vmem:[%s13227_s9 + $0x10] sm:$0xff]  ;;  %v6417_v10 = vld [vmem:[%s13227_s9 + $0x118] sm:$0xff] }
 0x365   :  { %9835 = vmatprep.subr.bf16.mxu0 %v10166_v30  ;;  %9850 = vmatprep.subr.bf16.mxu1 %v10166_v30  ;;  %v9878_v14 = vpack.c.bf16 %v6199_v7, %v6195_v41  ;;  %v9936_v6 = vpack.c.bf16 %v6433_v42, %v6432_v3  ;;  %v6410_v28 = vld [vmem:[%s13227_s9 + $0xe0] sm:$0xff]  ;;  %v6411_v45 = vld [vmem:[%s13227_s9 + $0xe8] sm:$0xff] }
 0x366   :  { %9367 = vmatprep.mubr.msk.f32.mxu0 %vm10167_vm1, %v10168_v36 }
 0x368   :  { %9837 = vmatpush3.bf16.msra.mxu0 %v9836_v5  ;;  %9852 = vmatpush3.bf16.msra.mxu1 %v9851_v16  ;;  %v6204_v5 = vld [vmem:[%s13226_s7 + $0xc8] sm:$0xff] }
 0x369   :  { %9838 = vmatprep.subr.bf16.mxu0 %v10166_v30  ;;  %9853 = vmatprep.subr.bf16.mxu1 %v10166_v30  ;;  %v6208_v16 = vld [vmem:[%s13226_s7 + $0xe8] sm:$0xff] }
 0x36a   :  { %v9880_v51 = vpack.c.bf16 %v6208_v16, %v6204_v5  ;;  %v6403_v5 = vld [vmem:[%s13227_s9 + $0xa8] sm:$0xff]  ;;  %v6434_v16 = vld [vmem:[%s13227_s9 + $0x1a0] sm:$0xff] }
 0x36c   :  { %9840 = vmatpush3.bf16.msra.mxu0 %v9839_v20  ;;  %9855 = vmatpush3.bf16.msra.mxu1 %v9854_v2  ;;  %v9896_v20 = vpack.c.bf16 %v6210_v0, %v6206_v1  ;;  %v6207_v2 = vld [vmem:[%s13226_s7 + $0xe0] sm:$0xff]  ;;  %v6435_v1 = vld [vmem:[%s13227_s9 + $0x1a8] sm:$0xff] }
 0x36d   :  { %9841 = vmatprep.subr.bf16.mxu0 %v10166_v30  ;;  %v9882_v38 = vpack.c.bf16 %v6207_v2, %v6203_v46  ;;  %v6386_v46 = vld [vmem:[%s13227_s9 + $0x20] sm:$0xff] }
 0x36f   :  { %9387 = vmatmul.mubr.msk.f32.vlgmr.msra.gmra.mrb[186].mxu1 %vm90_vm0, %v5424_v35  ;;  %v6399_v35 = vld [vmem:[%s13227_s9 + $0x88] sm:$0xff] }
 0x370   :  { %9843 = vmatpush3.bf16.msra.mxu0 %v9842_v55  ;;  %6300 = vmatprep.mubr.f32.mxu1 %v10168_v36  ;;  %v9898_v55 = vpack.c.bf16 %v6209_v24, %v6205_v54  ;;  %v9900_v56 = vpack.c.bf16 %v6399_v35, %v6398_v4  ;;  %v9940_v54 = vpack.c.bf16 %v6435_v1, %v6434_v16  ;;  %v6418_v24 = vld [vmem:[%s13227_s9 + $0x120] sm:$0xff]  ;;  %v6405_v4 = vld [vmem:[%s13227_s9 + $0xb8] sm:$0xff]  ;;  %v6436_v35 = vld [vmem:[%s13227_s9 + $0x1b0] sm:$0xff] }
 0x371   :  { %9856 = vmatprep.subr.bf16.mxu0 %v10166_v30  ;;  %v6445_v16 = vld [vmem:[%s13227_s9 + $0x1f8] sm:$0xff]  ;;  %v6396_v1 = vld [vmem:[%s13227_s9 + $0x70] sm:$0xff] }
 0x373   :  { %9368 = vmatmul.mubr.msk.f32.vlgmr.msra.gmra.mrb[178].mxu0 %vm90_vm0, %v5423_v18 }
 0x374   :  { %9858 = vmatpush3.bf16.msra.mxu0 %v9857_v44  ;;  %9405 = vmatprep.mubr.msk.f32.mxu0 %vm10167_vm1, %v10168_v36  ;;  %v6431_v44 = vld [vmem:[%s13227_s9 + $0x188] sm:$0xff] }
 0x375   :  { %9859 = vmatprep.subr.bf16.mxu0 %v10166_v30  ;;  %v9932_v18 = vpack.c.bf16 %v6431_v44, %v6430_v22  ;;  %v6437_v22 = vld [vmem:[%s13227_s9 + $0x1b8] sm:$0xff] }
 0x378   :  { %9861 = vmatpush3.bf16.msra.mxu0 %v9860_v47 }
 0x379   :  { %9862 = vmatprep.subr.bf16.mxu0 %v10166_v30 }
 0x37c   :  { %9864 = vmatpush3.bf16.msra.mxu0 %v9863_v39 }
 0x37d   :  { %9865 = vmatprep.subr.bf16.mxu0 %v10166_v30  ;;  %v9868_v30 = vpack.c.bf16 %v6184_v40, %v6180_v9 }
 0x37f   :  { %9869 = vmatprep.subr.bf16.mxu1 %v9868_v30 }
 0x380   :  { %9867 = vmatpush3.bf16.msra.mxu0 %v9866_v32 }
 0x381   :  { %9885 = vmatprep.subr.bf16.mxu0 %v9884_v58 }
 0x383   :  { %9406 = vmatmul.mubr.msk.f32.vlgmr.msra.gmra.mrb[180].mxu0 %vm90_vm0, %v5425_v62 }
 0x384   :  { %6371 = vmatprep.mubr.f32.mxu0 %v10168_v36  ;;  %v6179_v36 = vld [vmem:[%s13226_s7] sm:$0xff]  ;;  %9887 = vmatpush1.bf16.msra.mxu0 %v9886_v26 }
 0x385   :  { %v9870_v43 = vpack.c.bf16 %v6183_v59, %v6179_v36  ;;  %9889 = vmatprep.subr.bf16.mxu0 %v9888_v53 }
 0x387   :  { %9871 = vmatpush1.bf16.msra.mxu1 %v9870_v43 }
 0x388   :  { %9873 = vmatprep.subr.bf16.mxu1 %v9872_v48  ;;  %9891 = vmatpush1.bf16.msra.mxu0 %v9890_v12  ;;  %v6383_v48 = vld [vmem:[%s13227_s9 + $0x8] sm:$0xff] }
 0x389   :  { %9893 = vmatprep.subr.bf16.mxu0 %v9892_v52  ;;  %v6385_v52 = vld [vmem:[%s13227_s9 + $0x18] sm:$0xff] }
 0x38b   :  { %9875 = vmatpush1.bf16.msra.mxu1 %v9874_v57  ;;  %v6400_v57 = vld [vmem:[%s13227_s9 + $0x90] sm:$0xff] }
 0x38c   :  { %9877 = vmatprep.subr.bf16.mxu1 %v9876_v33  ;;  %9895 = vmatpush1.bf16.msra.mxu0 %v9894_v8  ;;  %v9902_v33 = vpack.c.bf16 %v6383_v48, %v6382_v13  ;;  %v9904_v7 = vpack.c.bf16 %v6401_v29, %v6400_v57  ;;  %v6402_v8 = vld [vmem:[%s13227_s9 + $0xa0] sm:$0xff]  ;;  %v6443_v29 = vld [vmem:[%s13227_s9 + $0x1e8] sm:$0xff] }
 0x38d   :  { %9897 = vmatprep.subr.bf16.mxu0 %v9896_v20  ;;  %v6387_v20 = vld [vmem:[%s13227_s9 + $0x28] sm:$0xff]  ;;  %v9908_v2 = vpack.c.bf16 %v6403_v5, %v6402_v8  ;;  %v6442_v57 = vld [vmem:[%s13227_s9 + $0x1e0] sm:$0xff]  ;;  %v6444_v8 = vld [vmem:[%s13227_s9 + $0x1f0] sm:$0xff] }
 0x38f   :  { %9879 = vmatpush1.bf16.msra.mxu1 %v9878_v14  ;;  %v6416_v14 = vld [vmem:[%s13227_s9 + $0x110] sm:$0xff] }
 0x390   :  { %9881 = vmatprep.subr.bf16.mxu1 %v9880_v51  ;;  %9899 = vmatpush1.bf16.msra.mxu0 %v9898_v55  ;;  %v9906_v51 = vpack.c.bf16 %v6385_v52, %v6384_v49  ;;  %v9938_v0 = vpack.c.bf16 %v6417_v10, %v6416_v14  ;;  %v6404_v55 = vld [vmem:[%s13227_s9 + $0xb0] sm:$0xff]  ;;  %v6395_v49 = vld [vmem:[%s13227_s9 + $0x68] sm:$0xff]  ;;  %v6426_v52 = vld [vmem:[%s13227_s9 + $0x160] sm:$0xff] }
 0x391   :  { %9933 = vmatprep.subr.bf16.mxu0 %v9932_v18  ;;  %v6388_v18 = vld [vmem:[%s13227_s9 + $0x30] sm:$0xff]  ;;  %v6413_v10 = vld [vmem:[%s13227_s9 + $0xf8] sm:$0xff] }
 0x392   :  { %v6412_v14 = vld [vmem:[%s13227_s9 + $0xf0] sm:$0xff] }
 0x393   :  { %9883 = vmatpush1.bf16.msra.mxu1 %v9882_v38  ;;  %v6419_v38 = vld [vmem:[%s13227_s9 + $0x128] sm:$0xff]  ;;  %v9928_v5 = vpack.c.bf16 %v6413_v10, %v6412_v14 }
 0x394   :  { %9901 = vmatprep.subr.bf16.mxu1 %v9900_v56  ;;  %v9910_v56 = vpack.c.bf16 %v6387_v20, %v6386_v46  ;;  %v9942_v44 = vpack.c.bf16 %v6419_v38, %v6418_v24  ;;  %v6428_v20 = vld [vmem:[%s13227_s9 + $0x170] sm:$0xff]  ;;  %v6213_v24 = vlaneseq }
 0x396   :  { %v6214_v38 = vshrl.u32 %v6213_v24, 7 }
 0x412   :  { %v5585_v63 = vpop.f32.mrb[180].mxu1 }
 0x413   :  { %v9274_v11 = vpop.f32.mrb[181].mxu1 }
 0x414   :  { %v9912_v11 = vpack.c.bf16 %v6405_v4, %v6404_v55  ;;  %v6215_v55 = vsub.s32 0, %v6214_v38  ;;  %v6223_v4 = vsub.s32 2, %v6214_v38 }
 0x416   :  { %v5512_v47 = vpop.f32.mrb[172].mxu0 }
 0x417   :  { %v5586_v61 = vadd.f32 %v5585_v63, %v5512_v47  ;;  %v9255_v37 = vpop.f32.mrb[173].mxu0  ;;  %v6389_v63 = vld [vmem:[%s13227_s9 + $0x38] sm:$0xff]  ;;  %v9944_v47 = vpack.c.bf16 %v6437_v22, %v6436_v35  ;;  %v6211_v35 = vld [vmem:[%s13229_s8] sm:$0xf]  ;;  %v6219_v22 = vsub.s32 1, %v6214_v38 }
 0x418   :  { %v6421_v37 = vld [vmem:[%s13227_s9 + $0x138] sm:$0xff] }
 0x422   :  { %v5750_v39 = vpop.f32.mrb[182].mxu1 }
 0x423   :  { %v9312_v60 = vpop.f32.mrb[183].mxu1 }
 0x424   :  { %v6407_v60 = vld [vmem:[%s13227_s9 + $0xc8] sm:$0xff] }
 0x426   :  { %v5667_v25 = vpop.f32.mrb[174].mxu0 }
 0x427   :  { %v5671_v32 = vadd.f32 %v5667_v25, %v5586_v61  ;;  %v9293_v62 = vpop.f32.mrb[175].mxu0  ;;  %v6420_v61 = vld [vmem:[%s13227_s9 + $0x130] sm:$0xff]  ;;  %v6438_v25 = vld [vmem:[%s13227_s9 + $0x1c0] sm:$0xff] }
 0x428   :  { %v9914_v62 = vpack.c.bf16 %v6389_v63, %v6388_v18  ;;  %v6224_v18 = vrot.slane %v6211_v35, %v6223_v4  ;;  %v6220_v63 = vrot.slane %v6211_v35, %v6219_v22 }
 0x429   :  { %v5754_v9 = vadd.f32 %v5750_v39, %v5671_v32  ;;  %v6406_v39 = vld [vmem:[%s13227_s9 + $0xc0] sm:$0xff]  ;;  %v6439_v32 = vld [vmem:[%s13227_s9 + $0x1c8] sm:$0xff] }
 0x432   :  { %v5916_v40 = vpop.f32.mrb[184].mxu1 }
 0x433   :  { %v9350_v34 = vpop.f32.mrb[185].mxu1 }
 0x434   :  { %v6391_v34 = vld [vmem:[%s13227_s9 + $0x48] sm:$0xff] }
 0x436   :  { %v5833_v30 = vpop.f32.mrb[176].mxu0 }
 0x437   :  { %v5837_v23 = vadd.f32 %v5833_v30, %v5754_v9  ;;  %v9331_v36 = vpop.f32.mrb[177].mxu0  ;;  %v9946_v9 = vpack.c.bf16 %v6421_v37, %v6420_v61  ;;  %v9916_v30 = vpack.c.bf16 %v6407_v60, %v6406_v39 }
 0x438   :  { %v6422_v36 = vld [vmem:[%s13227_s9 + $0x140] sm:$0xff] }
 0x439   :  { %v5920_v59 = vadd.f32 %v5916_v40, %v5837_v23  ;;  %v6390_v40 = vld [vmem:[%s13227_s9 + $0x40] sm:$0xff]  ;;  %v9948_v23 = vpack.c.bf16 %v6439_v32, %v6438_v25 }
 0x442   :  { %v6082_v58 = vpop.f32.mrb[186].mxu1 }
 0x443   :  { %v9388_v43 = vpop.f32.mrb[187].mxu1 }
 0x444   :  { %v6409_v43 = vld [vmem:[%s13227_s9 + $0xd8] sm:$0xff] }
 0x446   :  { %v5999_v50 = vpop.f32.mrb[178].mxu0 }
 0x447   :  { %v6003_v17 = vadd.f32 %v5999_v50, %v5920_v59  ;;  %v9369_v19 = vpop.f32.mrb[179].mxu0  ;;  %v6423_v59 = vld [vmem:[%s13227_s9 + $0x148] sm:$0xff]  ;;  %v6440_v50 = vld [vmem:[%s13227_s9 + $0x1d0] sm:$0xff] }
 0x448   :  { %v9918_v19 = vpack.c.bf16 %v6391_v34, %v6390_v40 }
 0x449   :  { %v6086_v26 = vadd.f32 %v6082_v58, %v6003_v17  ;;  %v6408_v58 = vld [vmem:[%s13227_s9 + $0xd0] sm:$0xff]  ;;  %v6441_v17 = vld [vmem:[%s13227_s9 + $0x1d8] sm:$0xff] }
 0x44a   :  { %v9920_v13 = vpack.c.bf16 %v6409_v43, %v6408_v58  ;;  %v9952_v48 = vpack.c.bf16 %v6441_v17, %v6440_v50 }
 0x456   :  { %v6165_v21 = vpop.f32.mrb[180].mxu0 }
 0x457   :  { %v6169_v53 = vadd.f32 %v6165_v21, %v6086_v26  ;;  %v9407_v31 = vpop.f32.mrb[181].mxu0  ;;  %v9950_v26 = vpack.c.bf16 %v6423_v59, %v6422_v36  ;;  %v6392_v21 = vld [vmem:[%s13227_s9 + $0x50] sm:$0xff]  ;;  %v10169_v36 = vmov 0  }
 0x458   :  { %v6425_v31 = vld [vmem:[%s13227_s9 + $0x158] sm:$0xff]  ;;  %10164 = vset.pattern.permute.xlu0 %v10169_v36 }
 0x459   :  { %v6177_v12 = vadd.f32 %v7290_v15, %v6169_v53  ;;  %v6393_v15 = vld [vmem:[%s13227_s9 + $0x58] sm:$0xff]  ;;  %v6424_v53 = vld [vmem:[%s13227_s9 + $0x150] sm:$0xff] }
 0x45a   :  { %v9922_v3 = vpack.c.bf16 %v6393_v15, %v6392_v21  ;;  %v9954_v42 = vpack.c.bf16 %v6425_v31, %v6424_v53 }
 0x45b   :  { %v6178_v41 = vmax.f32 %v6177_v12, 0.0  ;;  %v9924_v12 = vpack.c.bf16 %v6411_v45, %v6410_v28 }
 0x45d   :  { %7291 = vmatmul.mubr.msk.f32.vlgmr.msra.gmra.mrb[188].mxu1 %vm90_vm0, %v6178_v41  ;;  %7292 = vmatmul.mubr.msk.f32.vlgmr.msra.gmra.mrb[182].mxu0 %vm90_vm0, %v6178_v41 }
 0x45e   :  { %9903 = vmatpush3.bf16.msra.mxu1 %v9902_v33  ;;  %9935 = vmatpush3.bf16.msra.mxu0 %v9934_v27  ;;  %v9956_v33 = vpack.c.bf16 %v6443_v29, %v6442_v57  ;;  %v6394_v27 = vld [vmem:[%s13227_s9 + $0x60] sm:$0xff] }
 0x45f   :  { %9905 = vmatprep.subr.bf16.mxu1 %v9904_v7  ;;  %9937 = vmatprep.subr.bf16.mxu0 %v9936_v6  ;;  %v9926_v41 = vpack.c.bf16 %v6395_v49, %v6394_v27  ;;  %v6427_v7 = vld [vmem:[%s13227_s9 + $0x168] sm:$0xff] }
 0x460   :  { %v9958_v6 = vpack.c.bf16 %v6427_v7, %v6426_v52 }
 0x462   :  { %9907 = vmatpush3.bf16.msra.mxu1 %v9906_v51  ;;  %9939 = vmatpush3.bf16.msra.mxu0 %v9938_v0  ;;  %v6397_v51 = vld [vmem:[%s13227_s9 + $0x78] sm:$0xff]  ;;  %v9960_v0 = vpack.c.bf16 %v6445_v16, %v6444_v8 }
 0x463   :  { %9909 = vmatprep.subr.bf16.mxu1 %v9908_v2  ;;  %9941 = vmatprep.subr.bf16.mxu0 %v9940_v54  ;;  %v9930_v46 = vpack.c.bf16 %v6397_v51, %v6396_v1  ;;  %v6429_v2 = vld [vmem:[%s13227_s9 + $0x178] sm:$0xff] }
 0x464   :  { %v9962_v54 = vpack.c.bf16 %v6429_v2, %v6428_v20 }
 0x466   :  { %9911 = vmatpush3.bf16.msra.mxu1 %v9910_v56  ;;  %9943 = vmatpush3.bf16.msra.mxu0 %v9942_v44  ;;  %v6227_v56 = vsub.s32 3, %v6214_v38  ;;  %v6216_v44 = vrot.slane %v6211_v35, %v6215_v55 }
 0x467   :  { %9913 = vmatprep.subr.bf16.mxu1 %v9912_v11  ;;  %9945 = vmatprep.subr.bf16.mxu0 %v9944_v47 }
 0x468   :  { %v6228_v11 = vrot.slane %v6211_v35, %v6227_v56 }
 0x46a   :  { %9915 = vmatpush3.bf16.msra.mxu1 %v9914_v62  ;;  %9947 = vmatpush3.bf16.msra.mxu0 %v9946_v9 }
 0x46b   :  { %9917 = vmatprep.subr.bf16.mxu1 %v9916_v30  ;;  %9949 = vmatprep.subr.bf16.mxu0 %v9948_v23  ;;  %v16_v23 = vstv %s13230_s10 }
 0x46c   :  { %17 = vst [vmem:[#allocation2] sm:$0x1] %v16_v23 }
 0x46e   :  { %9919 = vmatpush3.bf16.msra.mxu1 %v9918_v19  ;;  %9951 = vmatpush3.bf16.msra.mxu0 %v9950_v26 }
 0x46f   :  { %9921 = vmatprep.subr.bf16.mxu1 %v9920_v13  ;;  %9953 = vmatprep.subr.bf16.mxu0 %v9952_v48 }
 0x472   :  { %9923 = vmatpush3.bf16.msra.mxu1 %v9922_v3  ;;  %9955 = vmatpush3.bf16.msra.mxu0 %v9954_v42 }
 0x473   :  { %9925 = vmatprep.subr.bf16.mxu1 %v9924_v12  ;;  %9957 = vmatprep.subr.bf16.mxu0 %v9956_v33  ;;  %v7293_v43 = vld [vmem:[#allocation2] ss:$0 sm:$0xff] }
 0x476   :  { %9927 = vmatpush3.bf16.msra.mxu1 %v9926_v41  ;;  %9959 = vmatpush3.bf16.msra.mxu0 %v9958_v6 }
 0x477   :  { %9929 = vmatprep.subr.bf16.mxu1 %v9928_v5  ;;  %9961 = vmatprep.subr.bf16.mxu0 %v9960_v0 }
 0x47a   :  { %9931 = vmatpush3.bf16.msra.mxu1 %v9930_v46  ;;  %9963 = vmatpush3.bf16.msra.mxu0 %v9962_v54 }
 0x530   :  { %v6302_v47 = vpop.f32.mrb[188].mxu1  ;;  %v6373_v61 = vpop.f32.mrb[182].mxu0 }
 0x531   :  { %v6303_v37 = vadd.f32 %v6302_v47, %v6216_v44  ;;  %v6374_v39 = vadd.f32 %v6373_v61, %v6224_v18  ;;  %v6304_v60 = vpop.f32.mrb[189].mxu1  ;;  %v6375_v25 = vpop.f32.mrb[183].mxu0 }
 0x532   :  { %v6305_v32 = vadd.f32 %v6304_v60, %v6220_v63  ;;  %v6376_v62 = vadd.f32 %v6375_v25, %v6228_v11 }
 0x533   :  { %v6378_v34 = vmax.f32 %v6303_v37, 0.0  ;;  %v6380_v30 = vmax.f32 %v6374_v39, 0.0 }
 0x534   :  { %v6379_v9 = vmax.f32 %v6305_v32, 0.0  ;;  %v6381_v40 = vmax.f32 %v6376_v62, 0.0 }
 0x536   :  { %6517 = vmatprep.mubr.f32.mxu1 %v6379_v9  ;;  %6587 = vmatprep.mubr.f32.mxu0 %v6381_v40 }
 0x537   :  { %6518 = vmatmul.mubr.f32.vlgmr.msra.gmra.mrb[190].mxu1 %v6378_v34  ;;  %6588 = vmatmul.mubr.f32.vlgmr.msra.gmra.mrb[184].mxu0 %v6380_v30 }
 0x60a   :  { %v7999_v59 = vpop.f32.mrb[190].mxu1  ;;  %v8034_v58 = vpop.f32.mrb[184].mxu0 }
 0x60b   :  { %v8000_v50 = vpop.f32.mrb[191].mxu1  ;;  %v8035_v17 = vpop.f32.mrb[185].mxu0 }
 0x60c   :  { %v8001_v19 = vadd.f32 %v8000_v50, %v7999_v59  ;;  %v8036_v26 = vadd.f32 %v8035_v17, %v8034_v58 }
 0x60e   :  { %v6520_v21 = vadd.f32 %v8001_v19, %v7293_v43 }
 0x610   :  { %v6590_v15 = vadd.f32 %v8036_v26, %v6520_v21 }
 0x612   :  { %6595 = vperm.xlu0 %10164, %v6590_v15  }
 0x691   :  { %v6596_v13 = vpop.permute.xlu0 %6595 }
 0x692   :  { %6598 = vst [vmem:[%s13231_s11] sm:$0xff] %v6596_v13 }

</bundles_post_ra>
